<compile_context>
chip_gen: v5e
topology: v5e:2x2
jax: 0.10.0
libtpu: 0.0.40
codegen_flags: <defaults>
</compile_context>

<pallas_src>
import functools

import jax
import jax.numpy as jnp
from jax.experimental import pallas as pl
from jax.experimental.pallas import tpu as pltpu


# ---------------------------------------------------------------------------
# helpers
# ---------------------------------------------------------------------------
def _fit(dim, pref, granule):
    """Largest tile <= pref (multiple of granule) dividing dim, else whole dim."""
    if dim <= pref:
        return dim
    t = (pref // granule) * granule
    while t >= granule:
        if dim % t == 0:
            return t
        t -= granule
    return dim  # TODO(synk): pad to a tileable size instead of whole-axis fallback.


def _row_tile(n, pref=256, granule=16):
    """bf16-friendly row tile (granule 16); prefer >=2 blocks so v7x megacore has work."""
    t = _fit(n, pref, granule)
    if t == n and n % 2 == 0 and (n // 2) % granule == 0:
        t = n // 2
    return t


def _full_spec(a):
    """BlockSpec covering the whole (small) array; block index constant -> no re-DMA."""
    nd = a.ndim
    return pl.BlockSpec(a.shape, lambda *_: (0,) * nd)


def _gelu_tanh(x):
    # TODO(synk): HF BART "gelu" is the exact erf GELU; tanh approximation used here.
    c = 0.7978845608028654  # sqrt(2/pi)
    return 0.5 * x * (1.0 + jnp.tanh(c * (x + 0.044715 * x * x * x)))


def _layernorm_f32(y, gamma, beta, eps):
    mu = jnp.mean(y, axis=-1, keepdims=True)
    var = jnp.mean((y - mu) * (y - mu), axis=-1, keepdims=True)
    return (y - mu) * jax.lax.rsqrt(var + eps) * gamma + beta


def _mha_core(q, k, v, w_o_ref, b_o, *, H, Dh, key_mask=None, causal_add=None):
    """Multi-head softmax attention + output projection, fully in registers/VMEM.

    q: (Sq, D) f32 (already scaled), k/v: (Sk, D) f32, w_o_ref: (D, D) bf16 ref.
    The head-concat is folded into the projection: out += o_h @ Wo[h*Dh:(h+1)*Dh, :].
    """
    Sq, D = q.shape
    out = jnp.zeros((Sq, D), jnp.float32)
    for h in range(H):
        sl = slice(h * Dh, (h + 1) * Dh)
        qh = q[:, sl].astype(jnp.bfloat16)
        kh = k[:, sl].astype(jnp.bfloat16)
        vh = v[:, sl].astype(jnp.bfloat16)
        s = jax.lax.dot_general(qh, kh, (((1,), (1,)), ((), ())),
                                preferred_element_type=jnp.float32)        # (Sq, Sk)
        if key_mask is not None:
            s = s + key_mask
        if causal_add is not None:
            s = s + causal_add
        s = s - jnp.max(s, axis=-1, keepdims=True)
        p = jnp.exp(s)
        p = p / jnp.sum(p, axis=-1, keepdims=True)
        oh = jnp.dot(p.astype(jnp.bfloat16), vh, preferred_element_type=jnp.float32)
        out = out + jnp.dot(oh.astype(jnp.bfloat16),
                            w_o_ref[h * Dh:(h + 1) * Dh, :],
                            preferred_element_type=jnp.float32)
    return out + b_o


# ---------------------------------------------------------------------------
# Kernel 1: embedding (gathered rows) + positional emb + LayerNorm, lane-dense tiles
# ---------------------------------------------------------------------------
def _add_ln_kernel(tok_ref, pos_ref, g_ref, be_ref, o_ref, *, eps):
    y = tok_ref[...].astype(jnp.float32) + pos_ref[...].astype(jnp.float32)
    o_ref[...] = _layernorm_f32(y, g_ref[...], be_ref[...], eps).astype(o_ref.dtype)


def embed(ids, tok_emb, pos_emb, gamma, beta, *, pos_offset=2, eps=1e-5):
    """tok_emb[ids] + pos_emb[pos+2] then LN; gather in XLA, add+LN as one Pallas kernel."""
    B, S = ids.shape
    D = tok_emb.shape[1]
    N = B * S
    tok = jnp.take(tok_emb, ids.reshape(-1).astype(jnp.int32), axis=0)          # (N, D)
    pos_ids = jnp.arange(S, dtype=jnp.int32) + pos_offset
    pos = jnp.take(pos_emb, pos_ids, axis=0)                                    # (S, D)
    pos = jnp.broadcast_to(pos[None], (B, S, D)).reshape(N, D)

    tm = _row_tile(N)
    out = pl.pallas_call(
        functools.partial(_add_ln_kernel, eps=eps),
        out_shape=jax.ShapeDtypeStruct((N, D), jnp.bfloat16),
        grid=(N // tm,),
        in_specs=[
            pl.BlockSpec((tm, D), lambda i: (i, 0)),
            pl.BlockSpec((tm, D), lambda i: (i, 0)),
            pl.BlockSpec((1, D), lambda i: (0, 0)),
            pl.BlockSpec((1, D), lambda i: (0, 0)),
        ],
        out_specs=pl.BlockSpec((tm, D), lambda i: (i, 0)),
        compiler_params=pltpu.CompilerParams(dimension_semantics=("parallel",)),
    )(tok, pos, gamma, beta)
    return out.reshape(B, S, D)


# ---------------------------------------------------------------------------
# Kernel 2: fused encoder layer (self-attn + res + LN + FFN + res + LN), grid over batch
# ---------------------------------------------------------------------------
def _enc_layer_kernel(x_ref, qkv_w, qkv_b, o_w, o_b, g1, b1,
                      w1, c1, w2, c2, g2, b2, mask_ref, o_ref,
                      *, H, Dh, scale, eps):
    x = x_ref[0]                                                   # (S, D) bf16
    D = x.shape[-1]
    qkv = jnp.dot(x, qkv_w[...], preferred_element_type=jnp.float32) + qkv_b[...]
    key_mask = mask_ref[0]                                         # (1, Sk) additive
    attn = _mha_core(qkv[:, :D] * scale, qkv[:, D:2 * D], qkv[:, 2 * D:],
                     o_w, o_b[...], H=H, Dh=Dh, key_mask=key_mask)
    h = _layernorm_f32(attn + x.astype(jnp.float32), g1[...], b1[...], eps)

    ff = jnp.dot(h.astype(jnp.bfloat16), w1[...],
                 preferred_element_type=jnp.float32) + c1[...]
    ff = _gelu_tanh(ff)
    y = jnp.dot(ff.astype(jnp.bfloat16), w2[...],
                preferred_element_type=jnp.float32) + c2[...]
    o_ref[0] = _layernorm_f32(y + h, g2[...], b2[...], eps).astype(o_ref.dtype)


def encoder_layer(x, layer, enc_mask3, cfg, *, eps=1e-5):
    B, S, D = x.shape
    blk, f = layer["self"], layer["ffn"]
    H = cfg.n_heads
    Dh = D // H
    kern = functools.partial(_enc_layer_kernel, H=H, Dh=Dh,
                             scale=1.0 / float(Dh) ** 0.5, eps=eps)
    return pl.pallas_call(
        kern,
        out_shape=jax.ShapeDtypeStruct((B, S, D), jnp.bfloat16),
        grid=(B,),
        in_specs=[
            pl.BlockSpec((1, S, D), lambda b: (b, 0, 0)),
            _full_spec(blk["qkv_w"]), _full_spec(blk["qkv_b"]),
            _full_spec(blk["o_w"]), _full_spec(blk["o_b"]),
            _full_spec(blk["ln_g"]), _full_spec(blk["ln_b"]),
            _full_spec(f["fc1_w"]), _full_spec(f["fc1_b"]),
            _full_spec(f["fc2_w"]), _full_spec(f["fc2_b"]),
            _full_spec(f["ln_g"]), _full_spec(f["ln_b"]),
            pl.BlockSpec((1, 1, S), lambda b: (b, 0, 0)),
        ],
        out_specs=pl.BlockSpec((1, S, D), lambda b: (b, 0, 0)),
        compiler_params=pltpu.CompilerParams(dimension_semantics=("parallel",)),
    )(x, blk["qkv_w"], blk["qkv_b"], blk["o_w"], blk["o_b"], blk["ln_g"], blk["ln_b"],
      f["fc1_w"], f["fc1_b"], f["fc2_w"], f["fc2_b"], f["ln_g"], f["ln_b"], enc_mask3)


# ---------------------------------------------------------------------------
# Kernel 3: fused decoder layer (causal self-attn + cross-attn + FFN, each +res+LN)
# ---------------------------------------------------------------------------
def _dec_layer_kernel(d_ref, e_ref,
                      s_qkv_w, s_qkv_b, s_ow, s_ob, s_g, s_b,
                      c_qw, c_qb, c_kvw, c_kvb, c_ow, c_ob, c_g, c_b,
                      w1, c1, w2, c2, f_g, f_b,
                      emask_ref, o_ref, *, H, Dh, scale, eps):
    d = d_ref[0]                                                   # (St, D) bf16
    e = e_ref[0]                                                   # (Ss, D) bf16
    D = d.shape[-1]
    St = d.shape[0]

    # --- causal self-attention + residual + LN ---
    qkv = jnp.dot(d, s_qkv_w[...], preferred_element_type=jnp.float32) + s_qkv_b[...]
    rows = jax.lax.broadcasted_iota(jnp.int32, (St, St), 0)
    cols = jax.lax.broadcasted_iota(jnp.int32, (St, St), 1)
    causal_add = jnp.where(cols <= rows, 0.0, -1e9)
    attn = _mha_core(qkv[:, :D] * scale, qkv[:, D:2 * D], qkv[:, 2 * D:],
                     s_ow, s_ob[...], H=H, Dh=Dh, causal_add=causal_add)
    h1 = _layernorm_f32(attn + d.astype(jnp.float32), s_g[...], s_b[...], eps)

    # --- cross-attention (keys/values from encoder) + residual + LN ---
    q = jnp.dot(h1.astype(jnp.bfloat16), c_qw[...],
                preferred_element_type=jnp.float32) + c_qb[...]
    kv = jnp.dot(e, c_kvw[...], preferred_element_type=jnp.float32) + c_kvb[...]
    key_mask = emask_ref[0]                                        # (1, Ss) additive
    attn2 = _mha_core(q * scale, kv[:, :D], kv[:, D:],
                      c_ow, c_ob[...], H=H, Dh=Dh, key_mask=key_mask)
    h2 = _layernorm_f32(attn2 + h1, c_g[...], c_b[...], eps)

    # --- FFN + residual + LN ---
    ff = jnp.dot(h2.astype(jnp.bfloat16), w1[...],
                 preferred_element_type=jnp.float32) + c1[...]
    ff = _gelu_tanh(ff)
    y = jnp.dot(ff.astype(jnp.bfloat16), w2[...],
                preferred_element_type=jnp.float32) + c2[...]
    o_ref[0] = _layernorm_f32(y + h2, f_g[...], f_b[...], eps).astype(o_ref.dtype)


def decoder_layer(d, enc_out, layer, enc_mask3, cfg, *, eps=1e-5):
    B, St, D = d.shape
    Ss = enc_out.shape[1]
    sa, ca, f = layer["self"], layer["cross"], layer["ffn"]
    H = cfg.n_heads
    Dh = D // H
    kern = functools.partial(_dec_layer_kernel, H=H, Dh=Dh,
                             scale=1.0 / float(Dh) ** 0.5, eps=eps)
    return pl.pallas_call(
        kern,
        out_shape=jax.ShapeDtypeStruct((B, St, D), jnp.bfloat16),
        grid=(B,),
        in_specs=[
            pl.BlockSpec((1, St, D), lambda b: (b, 0, 0)),
            pl.BlockSpec((1, Ss, D), lambda b: (b, 0, 0)),
            _full_spec(sa["qkv_w"]), _full_spec(sa["qkv_b"]),
            _full_spec(sa["o_w"]), _full_spec(sa["o_b"]),
            _full_spec(sa["ln_g"]), _full_spec(sa["ln_b"]),
            _full_spec(ca["q_w"]), _full_spec(ca["q_b"]),
            _full_spec(ca["kv_w"]), _full_spec(ca["kv_b"]),
            _full_spec(ca["o_w"]), _full_spec(ca["o_b"]),
            _full_spec(ca["ln_g"]), _full_spec(ca["ln_b"]),
            _full_spec(f["fc1_w"]), _full_spec(f["fc1_b"]),
            _full_spec(f["fc2_w"]), _full_spec(f["fc2_b"]),
            _full_spec(f["ln_g"]), _full_spec(f["ln_b"]),
            pl.BlockSpec((1, 1, Ss), lambda b: (b, 0, 0)),
        ],
        out_specs=pl.BlockSpec((1, St, D), lambda b: (b, 0, 0)),
        compiler_params=pltpu.CompilerParams(dimension_semantics=("parallel",)),
    )(d, enc_out,
      sa["qkv_w"], sa["qkv_b"], sa["o_w"], sa["o_b"], sa["ln_g"], sa["ln_b"],
      ca["q_w"], ca["q_b"], ca["kv_w"], ca["kv_b"], ca["o_w"], ca["o_b"],
      ca["ln_g"], ca["ln_b"],
      f["fc1_w"], f["fc1_b"], f["fc2_w"], f["fc2_b"], f["ln_g"], f["ln_b"],
      enc_mask3)


# ---------------------------------------------------------------------------
# Kernel 4: fused LM head + cross-entropy (vocab tiled, online logsumexp,
#           ignore_index=-100 masked mean finished in-kernel -> scalar output)
# ---------------------------------------------------------------------------
def _lmhead_ce_kernel(x_ref, w_ref, b_ref, lab_ref, out_ref,
                      m_sc, l_sc, t_sc, ls_sc, cnt_sc):
    i = pl.program_id(0)
    vt = pl.program_id(1)
    nv = pl.num_programs(1)

    @pl.when(jnp.logical_and(i == 0, vt == 0))
    def _():
        ls_sc[...] = jnp.zeros_like(ls_sc)
        cnt_sc[...] = jnp.zeros_like(cnt_sc)
        out_ref[...] = jnp.zeros_like(out_ref)

    @pl.when(vt == 0)
    def _():
        m_sc[...] = jnp.full_like(m_sc, -jnp.inf)
        l_sc[...] = jnp.zeros_like(l_sc)
        t_sc[...] = jnp.zeros_like(t_sc)

    # logits tile = x @ W_t (pre-transposed tied embedding: plain matmul, no XLU transpose)
    logits = jnp.dot(x_ref[...], w_ref[...],
                     preferred_element_type=jnp.float32) + b_ref[...]     # (tm, tv)
    labels = lab_ref[...]                                                 # (tm, 1) int32
    tv = logits.shape[1]

    col = vt * tv + jax.lax.broadcasted_iota(jnp.int32, logits.shape, 1)
    t_sc[...] += jnp.sum(jnp.where(col == labels, logits, 0.0),
                         axis=-1, keepdims=True)

    m_new = jnp.maximum(m_sc[...], jnp.max(logits, axis=-1, keepdims=True))
    l_sc[...] = (l_sc[...] * jnp.exp(m_sc[...] - m_new)
                 + jnp.sum(jnp.exp(logits - m_new), axis=-1, keepdims=True))
    m_sc[...] = m_new

    @pl.when(vt == nv - 1)
    def _():
        valid = (labels != -100).astype(jnp.float32)                      # (tm, 1)
        lse = m_sc[...] + jnp.log(l_sc[...])
        row_loss = (lse - t_sc[...]) * valid
        ls_sc[...] += jnp.sum(row_loss, axis=0, keepdims=True)
        cnt_sc[...] += jnp.sum(valid, axis=0, keepdims=True)

    @pl.when(jnp.logical_and(i == pl.num_programs(0) - 1, vt == nv - 1))
    def _():
        out_ref[...] = ls_sc[...] / jnp.maximum(cnt_sc[...], 1.0)         # guards 0/0


def lm_head_cross_entropy(x, emb_w_t, bias, labels, *, tm_pref=256, tv_pref=512):
    """x: (N, D) bf16, emb_w_t: (D, V) bf16 (tied, pre-transposed), bias: (1, V) f32."""
    N, D = x.shape
    V = emb_w_t.shape[1]
    tm = _row_tile(N, tm_pref, 16)
    tv = _fit(V, tv_pref, 128)        # multiple of 256 when V allows (v6e/v7x MXU width)
    loss = pl.pallas_call(
        _lmhead_ce_kernel,
        out_shape=jax.ShapeDtypeStruct((1, 1), jnp.float32),
        grid=(N // tm, V // tv),
        in_specs=[
            pl.BlockSpec((tm, D), lambda i, vt: (i, 0)),
            pl.BlockSpec((D, tv), lambda i, vt: (0, vt)),
            pl.BlockSpec((1, tv), lambda i, vt: (0, vt)),
            pl.BlockSpec((tm, 1), lambda i, vt: (i, 0)),
        ],
        out_specs=pl.BlockSpec((1, 1), lambda i, vt: (0, 0)),
        scratch_shapes=[pltpu.VMEM((tm, 1), jnp.float32),
                        pltpu.VMEM((tm, 1), jnp.float32),
                        pltpu.VMEM((tm, 1), jnp.float32),
                        pltpu.VMEM((1, 1), jnp.float32),
                        pltpu.VMEM((1, 1), jnp.float32)],
        compiler_params=pltpu.CompilerParams(
            dimension_semantics=("arbitrary", "arbitrary")),
    )(x, emb_w_t, bias, labels.reshape(N, 1).astype(jnp.int32))
    return loss.reshape(())


# ---------------------------------------------------------------------------
# Mini-BART model (deterministic synthetic parameters, bf16 weights)
# ---------------------------------------------------------------------------
class Config:
    vocab = 512
    d_model = 128      # lane-dense
    n_heads = 4        # head_dim = 32
    d_ff = 256
    n_enc = 1
    n_dec = 1
    max_pos = 32


def _init_params(key, cfg):
    keys = iter(jax.random.split(key, 64))

    def w(shape, scale=0.02):
        return (scale * jax.random.normal(next(keys), shape,
                                          jnp.float32)).astype(jnp.bfloat16)

    def zeros(shape):
        return jnp.zeros(shape, jnp.float32)

    def ones(shape):
        return jnp.ones(shape, jnp.float32)

    D, F, V = cfg.d_model, cfg.d_ff, cfg.vocab
    p = {
        "tok_emb": w((V, D)),
        "pos_emb": w((cfg.max_pos, D)),
        "emb_ln_g": ones((1, D)), "emb_ln_b": zeros((1, D)),
        "final_logits_bias": zeros((1, V)),
    }

    def self_attn():
        return {"qkv_w": w((D, 3 * D)), "qkv_b": zeros((1, 3 * D)),
                "o_w": w((D, D)), "o_b": zeros((1, D)),
                "ln_g": ones((1, D)), "ln_b": zeros((1, D))}

    def cross_attn():
        return {"q_w": w((D, D)), "q_b": zeros((1, D)),
                "kv_w": w((D, 2 * D)), "kv_b": zeros((1, 2 * D)),
                "o_w": w((D, D)), "o_b": zeros((1, D)),
                "ln_g": ones((1, D)), "ln_b": zeros((1, D))}

    def ffn():
        return {"fc1_w": w((D, F)), "fc1_b": zeros((1, F)),
                "fc2_w": w((F, D)), "fc2_b": zeros((1, D)),
                "ln_g": ones((1, D)), "ln_b": zeros((1, D))}

    p["enc"] = [{"self": self_attn(), "ffn": ffn()} for _ in range(cfg.n_enc)]
    p["dec"] = [{"self": self_attn(), "cross": cross_attn(), "ffn": ffn()}
                for _ in range(cfg.n_dec)]
    return p


def fcbart_forward(params, cfg, input_ids, attention_mask,
                   decoder_input_ids, decoder_labels):
    """Returns the scalar CE loss, matching FCBART.forward semantics."""
    B, Ssrc = input_ids.shape
    Stgt = decoder_input_ids.shape[1]
    D = cfg.d_model

    # O(S) additive key-padding mask for encoder keys, shaped (B, 1, Ssrc).
    enc_mask3 = ((1.0 - attention_mask.astype(jnp.float32)) * -1e9)[:, None, :]

    # ---- encoder ----
    h = embed(input_ids, params["tok_emb"], params["pos_emb"],
              params["emb_ln_g"], params["emb_ln_b"])              # (B, Ssrc, D) bf16
    for layer in params["enc"]:
        h = encoder_layer(h, layer, enc_mask3, cfg)
    enc_out = h

    # ---- decoder ----
    d = embed(decoder_input_ids, params["tok_emb"], params["pos_emb"],
              params["emb_ln_g"], params["emb_ln_b"])              # (B, Stgt, D) bf16
    for layer in params["dec"]:
        d = decoder_layer(d, enc_out, layer, enc_mask3, cfg)

    # ---- tied LM head + cross entropy (fused, logits never materialized) ----
    emb_w_t = params["tok_emb"].T                                  # one-time (D, V)
    return lm_head_cross_entropy(d.reshape(B * Stgt, D), emb_w_t,
                                 params["final_logits_bias"],
                                 decoder_labels.reshape(-1))


# ---------------------------------------------------------------------------
# main
# ---------------------------------------------------------------------------
if __name__ == "__main__":
    cfg = Config()
    B, Ssrc, Stgt = 2, 16, 16

    key = jax.random.PRNGKey(0)
    k_param, k_src, k_tgt, k_lbl = jax.random.split(key, 4)
    params = _init_params(k_param, cfg)

    input_ids = jax.random.randint(k_src, (B, Ssrc), 0, cfg.vocab, dtype=jnp.int32)
    attention_mask = jnp.ones((B, Ssrc), dtype=jnp.int32).at[1, -4:].set(0)  # padding
    decoder_input_ids = jax.random.randint(k_tgt, (B, Stgt), 0, cfg.vocab,
                                           dtype=jnp.int32)
    decoder_labels = jax.random.randint(k_lbl, (B, Stgt), 0, cfg.vocab,
                                        dtype=jnp.int32)
    decoder_labels = decoder_labels.at[1, -2:].set(-100)  # exercise ignore_index

    loss = jax.jit(functools.partial(fcbart_forward, params, cfg))(
        input_ids, attention_mask, decoder_input_ids, decoder_labels)
    loss = jax.block_until_ready(loss)

    assert loss.shape == () and bool(jnp.isfinite(loss))
    print("KERNEL_OK")
</pallas_src>

<mosaic_0001>
module attributes {stable_mosaic.version = 11 : i64} {
  func.func @_add_ln_kernel(%arg0: i32, %arg1: memref<16x128xbf16, #tpu.memory_space<vmem>>, %arg2: memref<16x128xbf16, #tpu.memory_space<vmem>>, %arg3: memref<1x128xf32, #tpu.memory_space<vmem>>, %arg4: memref<1x128xf32, #tpu.memory_space<vmem>>, %arg5: memref<16x128xbf16, #tpu.memory_space<vmem>>) attributes {dimension_semantics = [#tpu.dimension_semantics<parallel>], iteration_bounds = array<i64: 2>, scalar_prefetch = 0 : i64, scratch_operands = 0 : i64, tpu.core_type = #tpu.core_type<tc>, window_params = [{transform_indices = @transform_0, window_bounds = array<i64: 16, 128>}, {transform_indices = @transform_1, window_bounds = array<i64: 16, 128>}, {pipeline_mode = #tpu.pipeline_mode<synchronous>, transform_indices = @transform_2, window_bounds = array<i64: 1, 128>}, {pipeline_mode = #tpu.pipeline_mode<synchronous>, transform_indices = @transform_3, window_bounds = array<i64: 1, 128>}, {transform_indices = @transform_4, window_bounds = array<i64: 16, 128>}]} {
    %c0 = arith.constant 0 : index
    %c0_0 = arith.constant 0 : index
    %0 = vector.load %arg1[%c0, %c0_0] : memref<16x128xbf16, #tpu.memory_space<vmem>>, vector<16x128xbf16>
    %1 = arith.extf %0 : vector<16x128xbf16> to vector<16x128xf32>
    %c0_1 = arith.constant 0 : index
    %c0_2 = arith.constant 0 : index
    %2 = vector.load %arg2[%c0_1, %c0_2] : memref<16x128xbf16, #tpu.memory_space<vmem>>, vector<16x128xbf16>
    %3 = arith.extf %2 : vector<16x128xbf16> to vector<16x128xf32>
    %4 = arith.addf %1, %3 : vector<16x128xf32>
    %c0_3 = arith.constant 0 : index
    %c0_4 = arith.constant 0 : index
    %5 = vector.load %arg3[%c0_3, %c0_4] : memref<1x128xf32, #tpu.memory_space<vmem>>, vector<1x128xf32>
    %c0_5 = arith.constant 0 : index
    %c0_6 = arith.constant 0 : index
    %6 = vector.load %arg4[%c0_5, %c0_6] : memref<1x128xf32, #tpu.memory_space<vmem>>, vector<1x128xf32>
    %cst = arith.constant dense<0.000000e+00> : vector<16xf32>
    %7 = vector.multi_reduction <add>, %4, %cst [1] : vector<16x128xf32> to vector<16xf32>
    %8 = vector.shape_cast %7 : vector<16xf32> to vector<16x1xf32>
    %cst_7 = arith.constant 1.280000e+02 : f32
    %9 = vector.broadcast %cst_7 : f32 to vector<16x1xf32>
    %10 = arith.divf %8, %9 : vector<16x1xf32>
    %11 = vector.broadcast %10 : vector<16x1xf32> to vector<16x128xf32>
    %12 = arith.subf %4, %11 : vector<16x128xf32>
    %13 = vector.broadcast %10 : vector<16x1xf32> to vector<16x128xf32>
    %14 = arith.subf %4, %13 : vector<16x128xf32>
    %15 = arith.mulf %12, %14 : vector<16x128xf32>
    %cst_8 = arith.constant dense<0.000000e+00> : vector<16xf32>
    %16 = vector.multi_reduction <add>, %15, %cst_8 [1] : vector<16x128xf32> to vector<16xf32>
    %17 = vector.shape_cast %16 : vector<16xf32> to vector<16x1xf32>
    %cst_9 = arith.constant 1.280000e+02 : f32
    %18 = vector.broadcast %cst_9 : f32 to vector<16x1xf32>
    %19 = arith.divf %17, %18 : vector<16x1xf32>
    %20 = vector.broadcast %10 : vector<16x1xf32> to vector<16x128xf32>
    %21 = arith.subf %4, %20 : vector<16x128xf32>
    %cst_10 = arith.constant 9.99999974E-6 : f32
    %22 = vector.broadcast %cst_10 : f32 to vector<16x1xf32>
    %23 = arith.addf %19, %22 : vector<16x1xf32>
    %24 = math.rsqrt %23 : vector<16x1xf32>
    %25 = vector.broadcast %24 : vector<16x1xf32> to vector<16x128xf32>
    %26 = arith.mulf %21, %25 : vector<16x128xf32>
    %27 = vector.broadcast %5 : vector<1x128xf32> to vector<16x128xf32>
    %28 = arith.mulf %26, %27 : vector<16x128xf32>
    %29 = vector.broadcast %6 : vector<1x128xf32> to vector<16x128xf32>
    %30 = arith.addf %28, %29 : vector<16x128xf32>
    %31 = arith.truncf %30 : vector<16x128xf32> to vector<16x128xbf16>
    %c0_11 = arith.constant 0 : index
    %c0_12 = arith.constant 0 : index
    %32 = vector.load %arg5[%c0_11, %c0_12] : memref<16x128xbf16, #tpu.memory_space<vmem>>, vector<16x128xbf16>
    tpu.vector_store %arg5[%c0_11, %c0_12], %31 {strides = array<i32>} : memref<16x128xbf16, #tpu.memory_space<vmem>>, vector<16x128xbf16>,
    return
  }
  func.func @transform_0(%arg0: i32) -> (i32, i32) {
    %c0_i32 = arith.constant 0 : i32
    %c0_i32_0 = arith.constant 0 : i32
    return %arg0, %c0_i32 : i32, i32
  }
  func.func @transform_1(%arg0: i32) -> (i32, i32) {
    %c0_i32 = arith.constant 0 : i32
    %c0_i32_0 = arith.constant 0 : i32
    return %arg0, %c0_i32 : i32, i32
  }
  func.func @transform_2(%arg0: i32) -> (i32, i32) {
    %c0_i32 = arith.constant 0 : i32
    %c0_i32_0 = arith.constant 0 : i32
    %c0_i32_1 = arith.constant 0 : i32
    return %c0_i32, %c0_i32_0 : i32, i32
  }
  func.func @transform_3(%arg0: i32) -> (i32, i32) {
    %c0_i32 = arith.constant 0 : i32
    %c0_i32_0 = arith.constant 0 : i32
    %c0_i32_1 = arith.constant 0 : i32
    return %c0_i32, %c0_i32_0 : i32, i32
  }
  func.func @transform_4(%arg0: i32) -> (i32, i32) {
    %c0_i32 = arith.constant 0 : i32
    %c0_i32_0 = arith.constant 0 : i32
    return %arg0, %c0_i32 : i32, i32
  }
}

module attributes {stable_mosaic.version = 11 : i64} {
  func.func @_lmhead_ce_kernel(%arg0: i32, %arg1: i32, %arg2: memref<16x128xbf16, #tpu.memory_space<vmem>>, %arg3: memref<128x512xbf16, #tpu.memory_space<vmem>>, %arg4: memref<1x512xf32, #tpu.memory_space<vmem>>, %arg5: memref<16x1xi32, #tpu.memory_space<vmem>>, %arg6: memref<1x1xf32, #tpu.memory_space<vmem>>, %arg7: memref<16x1xf32, #tpu.memory_space<vmem>>, %arg8: memref<16x1xf32, #tpu.memory_space<vmem>>, %arg9: memref<16x1xf32, #tpu.memory_space<vmem>>, %arg10: memref<1x1xf32, #tpu.memory_space<vmem>>, %arg11: memref<1x1xf32, #tpu.memory_space<vmem>>) attributes {dimension_semantics = [#tpu.dimension_semantics<arbitrary>, #tpu.dimension_semantics<arbitrary>], iteration_bounds = array<i64: 2, 1>, scalar_prefetch = 0 : i64, scratch_operands = 5 : i64, tpu.core_type = #tpu.core_type<tc>, window_params = [{transform_indices = @transform_0, window_bounds = array<i64: 16, 128>}, {transform_indices = @transform_1, window_bounds = array<i64: 128, 512>}, {transform_indices = @transform_2, window_bounds = array<i64: 1, 512>}, {transform_indices = @transform_3, window_bounds = array<i64: 16, 1>}, {pipeline_mode = #tpu.pipeline_mode<synchronous>, transform_indices = @transform_4, window_bounds = array<i64: 1, 1>}]} {
    %c0_i32 = arith.constant 0 : i32
    %0 = arith.cmpi eq, %arg0, %c0_i32 : i32
    %c0_i32_0 = arith.constant 0 : i32
    %1 = arith.cmpi eq, %arg1, %c0_i32_0 : i32
    %2 = arith.andi %0, %1 : i1
    %3 = arith.extui %2 : i1 to i32
    %c0_i32_1 = arith.constant 0 : i32
    %4 = arith.cmpi ne, %3, %c0_i32_1 : i32
    scf.if %4 {
      %cst_33 = arith.constant 0.000000e+00 : f32
      %53 = vector.broadcast %cst_33 : f32 to vector<1x1xf32>
      %c0_34 = arith.constant 0 : index
      %c0_35 = arith.constant 0 : index
      %54 = vector.load %arg10[%c0_34, %c0_35] : memref<1x1xf32, #tpu.memory_space<vmem>>, vector<1x1xf32>
      tpu.vector_store %arg10[%c0_34, %c0_35], %53 {strides = array<i32>} : memref<1x1xf32, #tpu.memory_space<vmem>>, vector<1x1xf32>,
      %cst_36 = arith.constant 0.000000e+00 : f32
      %55 = vector.broadcast %cst_36 : f32 to vector<1x1xf32>
      %c0_37 = arith.constant 0 : index
      %c0_38 = arith.constant 0 : index
      %56 = vector.load %arg11[%c0_37, %c0_38] : memref<1x1xf32, #tpu.memory_space<vmem>>, vector<1x1xf32>
      tpu.vector_store %arg11[%c0_37, %c0_38], %55 {strides = array<i32>} : memref<1x1xf32, #tpu.memory_space<vmem>>, vector<1x1xf32>,
      %cst_39 = arith.constant 0.000000e+00 : f32
      %57 = vector.broadcast %cst_39 : f32 to vector<1x1xf32>
      %c0_40 = arith.constant 0 : index
      %c0_41 = arith.constant 0 : index
      %58 = vector.load %arg6[%c0_40, %c0_41] : memref<1x1xf32, #tpu.memory_space<vmem>>, vector<1x1xf32>
      tpu.vector_store %arg6[%c0_40, %c0_41], %57 {strides = array<i32>} : memref<1x1xf32, #tpu.memory_space<vmem>>, vector<1x1xf32>,
    } else {
    }
    %c0_i32_2 = arith.constant 0 : i32
    %5 = arith.cmpi eq, %arg1, %c0_i32_2 : i32
    %6 = arith.extui %5 : i1 to i32
    %c0_i32_3 = arith.constant 0 : i32
    %7 = arith.cmpi ne, %6, %c0_i32_3 : i32
    scf.if %7 {
      %cst_33 = arith.constant 0xFF800000 : f32
      %53 = vector.broadcast %cst_33 : f32 to vector<16x1xf32>
      %c0_34 = arith.constant 0 : index
      %c0_35 = arith.constant 0 : index
      %54 = vector.load %arg7[%c0_34, %c0_35] : memref<16x1xf32, #tpu.memory_space<vmem>>, vector<16x1xf32>
      tpu.vector_store %arg7[%c0_34, %c0_35], %53 {strides = array<i32>} : memref<16x1xf32, #tpu.memory_space<vmem>>, vector<16x1xf32>,
      %cst_36 = arith.constant 0.000000e+00 : f32
      %55 = vector.broadcast %cst_36 : f32 to vector<16x1xf32>
      %c0_37 = arith.constant 0 : index
      %c0_38 = arith.constant 0 : index
      %56 = vector.load %arg8[%c0_37, %c0_38] : memref<16x1xf32, #tpu.memory_space<vmem>>, vector<16x1xf32>
      tpu.vector_store %arg8[%c0_37, %c0_38], %55 {strides = array<i32>} : memref<16x1xf32, #tpu.memory_space<vmem>>, vector<16x1xf32>,
      %cst_39 = arith.constant 0.000000e+00 : f32
      %57 = vector.broadcast %cst_39 : f32 to vector<16x1xf32>
      %c0_40 = arith.constant 0 : index
      %c0_41 = arith.constant 0 : index
      %58 = vector.load %arg9[%c0_40, %c0_41] : memref<16x1xf32, #tpu.memory_space<vmem>>, vector<16x1xf32>
      tpu.vector_store %arg9[%c0_40, %c0_41], %57 {strides = array<i32>} : memref<16x1xf32, #tpu.memory_space<vmem>>, vector<16x1xf32>,
    } else {
    }
    %c0 = arith.constant 0 : index
    %c0_4 = arith.constant 0 : index
    %8 = vector.load %arg2[%c0, %c0_4] : memref<16x128xbf16, #tpu.memory_space<vmem>>, vector<16x128xbf16>
    %c0_5 = arith.constant 0 : index
    %c0_6 = arith.constant 0 : index
    %9 = vector.load %arg3[%c0_5, %c0_6] : memref<128x512xbf16, #tpu.memory_space<vmem>>, vector<128x512xbf16>
    %cst = arith.constant dense<0.000000e+00> : vector<16x512xf32>
    %10 = tpu.matmul %8, %9, %cst {dimension_numbers = #tpu.dot_dimension_numbers<[1], [0], [0], [1], [0, 0, 1, 1], [], []>} : vector<16x128xbf16>, vector<128x512xbf16>, vector<16x512xf32> -> vector<16x512xf32>
    %c0_7 = arith.constant 0 : index
    %c0_8 = arith.constant 0 : index
    %11 = vector.load %arg4[%c0_7, %c0_8] : memref<1x512xf32, #tpu.memory_space<vmem>>, vector<1x512xf32>
    %12 = vector.broadcast %11 : vector<1x512xf32> to vector<16x512xf32>
    %13 = arith.addf %10, %12 : vector<16x512xf32>
    %c0_9 = arith.constant 0 : index
    %c0_10 = arith.constant 0 : index
    %14 = vector.load %arg5[%c0_9, %c0_10] : memref<16x1xi32, #tpu.memory_space<vmem>>, vector<16x1xi32>
    %c512_i32 = arith.constant 512 : i32
    %15 = arith.muli %arg1, %c512_i32 : i32
    %16 = tpu.iota {dimensions = array<i32: 1>} : vector<16x512xi32>
    %17 = vector.broadcast %15 : i32 to vector<16x512xi32>
    %18 = arith.addi %17, %16 : vector<16x512xi32>
    %c0_11 = arith.constant 0 : index
    %c0_12 = arith.constant 0 : index
    %19 = vector.load %arg9[%c0_11, %c0_12] : memref<16x1xf32, #tpu.memory_space<vmem>>, vector<16x1xf32>
    %20 = vector.broadcast %14 : vector<16x1xi32> to vector<16x512xi32>
    %21 = arith.cmpi eq, %18, %20 : vector<16x512xi32>
    %cst_13 = arith.constant 0.000000e+00 : f32
    %22 = vector.broadcast %cst_13 : f32 to vector<16x512xf32>
    %23 = arith.select %21, %13, %22 : vector<16x512xi1>, vector<16x512xf32>
    %cst_14 = arith.constant dense<0.000000e+00> : vector<16xf32>
    %24 = vector.multi_reduction <add>, %23, %cst_14 [1] : vector<16x512xf32> to vector<16xf32>
    %25 = vector.shape_cast %24 : vector<16xf32> to vector<16x1xf32>
    %26 = arith.addf %19, %25 : vector<16x1xf32>
    %c0_15 = arith.constant 0 : index
    %c0_16 = arith.constant 0 : index
    %27 = vector.load %arg9[%c0_15, %c0_16] : memref<16x1xf32, #tpu.memory_space<vmem>>, vector<16x1xf32>
    tpu.vector_store %arg9[%c0_15, %c0_16], %26 {strides = array<i32>} : memref<16x1xf32, #tpu.memory_space<vmem>>, vector<16x1xf32>,
    %c0_17 = arith.constant 0 : index
    %c0_18 = arith.constant 0 : index
    %28 = vector.load %arg7[%c0_17, %c0_18] : memref<16x1xf32, #tpu.memory_space<vmem>>, vector<16x1xf32>
    %cst_19 = arith.constant dense<0xFF800000> : vector<16xf32>
    %29 = vector.multi_reduction <maximumf>, %13, %cst_19 [1] : vector<16x512xf32> to vector<16xf32>
    %30 = vector.shape_cast %29 : vector<16xf32> to vector<16x1xf32>
    %31 = arith.maximumf %28, %30 : vector<16x1xf32>
    %c0_20 = arith.constant 0 : index
    %c0_21 = arith.constant 0 : index
    %32 = vector.load %arg8[%c0_20, %c0_21] : memref<16x1xf32, #tpu.memory_space<vmem>>, vector<16x1xf32>
    %c0_22 = arith.constant 0 : index
    %c0_23 = arith.constant 0 : index
    %33 = vector.load %arg7[%c0_22, %c0_23] : memref<16x1xf32, #tpu.memory_space<vmem>>, vector<16x1xf32>
    %34 = arith.subf %33, %31 : vector<16x1xf32>
    %35 = math.exp %34 : vector<16x1xf32>
    %36 = arith.mulf %32, %35 : vector<16x1xf32>
    %37 = vector.broadcast %31 : vector<16x1xf32> to vector<16x512xf32>
    %38 = arith.subf %13, %37 : vector<16x512xf32>
    %39 = math.exp %38 : vector<16x512xf32>
    %cst_24 = arith.constant dense<0.000000e+00> : vector<16xf32>
    %40 = vector.multi_reduction <add>, %39, %cst_24 [1] : vector<16x512xf32> to vector<16xf32>
    %41 = vector.shape_cast %40 : vector<16xf32> to vector<16x1xf32>
    %42 = arith.addf %36, %41 : vector<16x1xf32>
    %c0_25 = arith.constant 0 : index
    %c0_26 = arith.constant 0 : index
    %43 = vector.load %arg8[%c0_25, %c0_26] : memref<16x1xf32, #tpu.memory_space<vmem>>, vector<16x1xf32>
    tpu.vector_store %arg8[%c0_25, %c0_26], %42 {strides = array<i32>} : memref<16x1xf32, #tpu.memory_space<vmem>>, vector<16x1xf32>,
    %c0_27 = arith.constant 0 : index
    %c0_28 = arith.constant 0 : index
    %44 = vector.load %arg7[%c0_27, %c0_28] : memref<16x1xf32, #tpu.memory_space<vmem>>, vector<16x1xf32>
    tpu.vector_store %arg7[%c0_27, %c0_28], %31 {strides = array<i32>} : memref<16x1xf32, #tpu.memory_space<vmem>>, vector<16x1xf32>,
    %c0_i32_29 = arith.constant 0 : i32
    %45 = arith.cmpi eq, %arg1, %c0_i32_29 : i32
    %46 = arith.extui %45 : i1 to i32
    %c0_i32_30 = arith.constant 0 : i32
    %47 = arith.cmpi ne, %46, %c0_i32_30 : i32
    scf.if %47 {
      %c-100_i32 = arith.constant -100 : i32
      %53 = vector.broadcast %c-100_i32 : i32 to vector<16x1xi32>
      %54 = arith.cmpi ne, %14, %53 : vector<16x1xi32>
      %55 = arith.extui %54 : vector<16x1xi1> to vector<16x1xi32>
      %56 = arith.sitofp %55 : vector<16x1xi32> to vector<16x1xf32>
      %c0_33 = arith.constant 0 : index
      %c0_34 = arith.constant 0 : index
      %57 = vector.load %arg7[%c0_33, %c0_34] : memref<16x1xf32, #tpu.memory_space<vmem>>, vector<16x1xf32>
      %c0_35 = arith.constant 0 : index
      %c0_36 = arith.constant 0 : index
      %58 = vector.load %arg8[%c0_35, %c0_36] : memref<16x1xf32, #tpu.memory_space<vmem>>, vector<16x1xf32>
      %59 = math.log %58 : vector<16x1xf32>
      %60 = arith.addf %57, %59 : vector<16x1xf32>
      %c0_37 = arith.constant 0 : index
      %c0_38 = arith.constant 0 : index
      %61 = vector.load %arg9[%c0_37, %c0_38] : memref<16x1xf32, #tpu.memory_space<vmem>>, vector<16x1xf32>
      %62 = arith.subf %60, %61 : vector<16x1xf32>
      %63 = arith.mulf %62, %56 : vector<16x1xf32>
      %c0_39 = arith.constant 0 : index
      %c0_40 = arith.constant 0 : index
      %64 = vector.load %arg10[%c0_39, %c0_40] : memref<1x1xf32, #tpu.memory_space<vmem>>, vector<1x1xf32>
      %cst_41 = arith.constant dense<0.000000e+00> : vector<1xf32>
      %65 = vector.multi_reduction <add>, %63, %cst_41 [0] : vector<16x1xf32> to vector<1xf32>
      %66 = vector.shape_cast %65 : vector<1xf32> to vector<1x1xf32>
      %67 = arith.addf %64, %66 : vector<1x1xf32>
      %c0_42 = arith.constant 0 : index
      %c0_43 = arith.constant 0 : index
      %68 = vector.load %arg10[%c0_42, %c0_43] : memref<1x1xf32, #tpu.memory_space<vmem>>, vector<1x1xf32>
      tpu.vector_store %arg10[%c0_42, %c0_43], %67 {strides = array<i32>} : memref<1x1xf32, #tpu.memory_space<vmem>>, vector<1x1xf32>,
      %c0_44 = arith.constant 0 : index
      %c0_45 = arith.constant 0 : index
      %69 = vector.load %arg11[%c0_44, %c0_45] : memref<1x1xf32, #tpu.memory_space<vmem>>, vector<1x1xf32>
      %cst_46 = arith.constant dense<0.000000e+00> : vector<1xf32>
      %70 = vector.multi_reduction <add>, %56, %cst_46 [0] : vector<16x1xf32> to vector<1xf32>
      %71 = vector.shape_cast %70 : vector<1xf32> to vector<1x1xf32>
      %72 = arith.addf %69, %71 : vector<1x1xf32>
      %c0_47 = arith.constant 0 : index
      %c0_48 = arith.constant 0 : index
      %73 = vector.load %arg11[%c0_47, %c0_48] : memref<1x1xf32, #tpu.memory_space<vmem>>, vector<1x1xf32>
      tpu.vector_store %arg11[%c0_47, %c0_48], %72 {strides = array<i32>} : memref<1x1xf32, #tpu.memory_space<vmem>>, vector<1x1xf32>,
    } else {
    }
    %c1_i32 = arith.constant 1 : i32
    %48 = arith.cmpi eq, %arg0, %c1_i32 : i32
    %c0_i32_31 = arith.constant 0 : i32
    %49 = arith.cmpi eq, %arg1, %c0_i32_31 : i32
    %50 = arith.andi %48, %49 : i1
    %51 = arith.extui %50 : i1 to i32
    %c0_i32_32 = arith.constant 0 : i32
    %52 = arith.cmpi ne, %51, %c0_i32_32 : i32
    scf.if %52 {
      %c0_33 = arith.constant 0 : index
      %c0_34 = arith.constant 0 : index
      %53 = vector.load %arg10[%c0_33, %c0_34] : memref<1x1xf32, #tpu.memory_space<vmem>>, vector<1x1xf32>
      %c0_35 = arith.constant 0 : index
      %c0_36 = arith.constant 0 : index
      %54 = vector.load %arg11[%c0_35, %c0_36] : memref<1x1xf32, #tpu.memory_space<vmem>>, vector<1x1xf32>
      %cst_37 = arith.constant 1.000000e+00 : f32
      %55 = vector.broadcast %cst_37 : f32 to vector<1x1xf32>
      %56 = arith.maximumf %54, %55 : vector<1x1xf32>
      %57 = arith.divf %53, %56 : vector<1x1xf32>
      %c0_38 = arith.constant 0 : index
      %c0_39 = arith.constant 0 : index
      %58 = vector.load %arg6[%c0_38, %c0_39] : memref<1x1xf32, #tpu.memory_space<vmem>>, vector<1x1xf32>
      tpu.vector_store %arg6[%c0_38, %c0_39], %57 {strides = array<i32>} : memref<1x1xf32, #tpu.memory_space<vmem>>, vector<1x1xf32>,
    } else {
    }
    return
  }
  func.func @transform_0(%arg0: i32, %arg1: i32) -> (i32, i32) {
    %c0_i32 = arith.constant 0 : i32
    %c0_i32_0 = arith.constant 0 : i32
    return %arg0, %c0_i32 : i32, i32
  }
  func.func @transform_1(%arg0: i32, %arg1: i32) -> (i32, i32) {
    %c0_i32 = arith.constant 0 : i32
    %c0_i32_0 = arith.constant 0 : i32
    return %c0_i32, %arg1 : i32, i32
  }
  func.func @transform_2(%arg0: i32, %arg1: i32) -> (i32, i32) {
    %c0_i32 = arith.constant 0 : i32
    %c0_i32_0 = arith.constant 0 : i32
    return %c0_i32, %arg1 : i32, i32
  }
  func.func @transform_3(%arg0: i32, %arg1: i32) -> (i32, i32) {
    %c0_i32 = arith.constant 0 : i32
    %c0_i32_0 = arith.constant 0 : i32
    return %arg0, %c0_i32 : i32, i32
  }
  func.func @transform_4(%arg0: i32, %arg1: i32) -> (i32, i32) {
    %c0_i32 = arith.constant 0 : i32
    %c0_i32_0 = arith.constant 0 : i32
    %c0_i32_1 = arith.constant 0 : i32
    return %c0_i32, %c0_i32_0 : i32, i32
  }
}

module attributes {stable_mosaic.version = 11 : i64} {
  func.func @_enc_layer_kernel(%arg0: i32, %arg1: memref<1x16x128xbf16, #tpu.memory_space<vmem>>, %arg2: memref<128x384xbf16, #tpu.memory_space<vmem>>, %arg3: memref<1x384xf32, #tpu.memory_space<vmem>>, %arg4: memref<128x128xbf16, #tpu.memory_space<vmem>>, %arg5: memref<1x128xf32, #tpu.memory_space<vmem>>, %arg6: memref<1x128xf32, #tpu.memory_space<vmem>>, %arg7: memref<1x128xf32, #tpu.memory_space<vmem>>, %arg8: memref<128x256xbf16, #tpu.memory_space<vmem>>, %arg9: memref<1x256xf32, #tpu.memory_space<vmem>>, %arg10: memref<256x128xbf16, #tpu.memory_space<vmem>>, %arg11: memref<1x128xf32, #tpu.memory_space<vmem>>, %arg12: memref<1x128xf32, #tpu.memory_space<vmem>>, %arg13: memref<1x128xf32, #tpu.memory_space<vmem>>, %arg14: memref<1x1x16xf32, #tpu.memory_space<vmem>>, %arg15: memref<1x16x128xbf16, #tpu.memory_space<vmem>>) attributes {dimension_semantics = [#tpu.dimension_semantics<parallel>], iteration_bounds = array<i64: 2>, scalar_prefetch = 0 : i64, scratch_operands = 0 : i64, tpu.core_type = #tpu.core_type<tc>, window_params = [{transform_indices = @transform_0, window_bounds = array<i64: 1, 16, 128>}, {pipeline_mode = #tpu.pipeline_mode<synchronous>, transform_indices = @transform_1, window_bounds = array<i64: 128, 384>}, {pipeline_mode = #tpu.pipeline_mode<synchronous>, transform_indices = @transform_2, window_bounds = array<i64: 1, 384>}, {pipeline_mode = #tpu.pipeline_mode<synchronous>, transform_indices = @transform_3, window_bounds = array<i64: 128, 128>}, {pipeline_mode = #tpu.pipeline_mode<synchronous>, transform_indices = @transform_4, window_bounds = array<i64: 1, 128>}, {pipeline_mode = #tpu.pipeline_mode<synchronous>, transform_indices = @transform_5, window_bounds = array<i64: 1, 128>}, {pipeline_mode = #tpu.pipeline_mode<synchronous>, transform_indices = @transform_6, window_bounds = array<i64: 1, 128>}, {pipeline_mode = #tpu.pipeline_mode<synchronous>, transform_indices = @transform_7, window_bounds = array<i64: 128, 256>}, {pipeline_mode = #tpu.pipeline_mode<synchronous>, transform_indices = @transform_8, window_bounds = array<i64: 1, 256>}, {pipeline_mode = #tpu.pipeline_mode<synchronous>, transform_indices = @transform_9, window_bounds = array<i64: 256, 128>}, {pipeline_mode = #tpu.pipeline_mode<synchronous>, transform_indices = @transform_10, window_bounds = array<i64: 1, 128>}, {pipeline_mode = #tpu.pipeline_mode<synchronous>, transform_indices = @transform_11, window_bounds = array<i64: 1, 128>}, {pipeline_mode = #tpu.pipeline_mode<synchronous>, transform_indices = @transform_12, window_bounds = array<i64: 1, 128>}, {transform_indices = @transform_13, window_bounds = array<i64: 1, 1, 16>}, {transform_indices = @transform_14, window_bounds = array<i64: 1, 16, 128>}]} {
    %c0 = arith.constant 0 : index
    %c0_0 = arith.constant 0 : index
    %c0_1 = arith.constant 0 : index
    %0 = vector.load %arg1[%c0, %c0_0, %c0_1] : memref<1x16x128xbf16, #tpu.memory_space<vmem>>, vector<1x16x128xbf16>
    %1 = vector.shape_cast %0 : vector<1x16x128xbf16> to vector<16x128xbf16>
    %c0_2 = arith.constant 0 : index
    %c0_3 = arith.constant 0 : index
    %2 = vector.load %arg2[%c0_2, %c0_3] : memref<128x384xbf16, #tpu.memory_space<vmem>>, vector<128x384xbf16>
    %cst = arith.constant dense<0.000000e+00> : vector<16x384xf32>
    %3 = tpu.matmul %1, %2, %cst {dimension_numbers = #tpu.dot_dimension_numbers<[1], [0], [0], [1], [0, 0, 1, 1], [], []>} : vector<16x128xbf16>, vector<128x384xbf16>, vector<16x384xf32> -> vector<16x384xf32>
    %c0_4 = arith.constant 0 : index
    %c0_5 = arith.constant 0 : index
    %4 = vector.load %arg3[%c0_4, %c0_5] : memref<1x384xf32, #tpu.memory_space<vmem>>, vector<1x384xf32>
    %5 = vector.broadcast %4 : vector<1x384xf32> to vector<16x384xf32>
    %6 = arith.addf %3, %5 : vector<16x384xf32>
    %c0_6 = arith.constant 0 : index
    %c0_7 = arith.constant 0 : index
    %c0_8 = arith.constant 0 : index
    %7 = vector.load %arg14[%c0_6, %c0_7, %c0_8] : memref<1x1x16xf32, #tpu.memory_space<vmem>>, vector<1x1x16xf32>
    %8 = vector.shape_cast %7 : vector<1x1x16xf32> to vector<1x16xf32>
    %9 = vector.extract_strided_slice %6 {offsets = [0, 0], sizes = [16, 128], strides = [1, 1]} : vector<16x384xf32> to vector<16x128xf32>
    %cst_9 = arith.constant 0.176776692 : f32
    %10 = vector.broadcast %cst_9 : f32 to vector<16x128xf32>
    %11 = arith.mulf %9, %10 : vector<16x128xf32>
    %12 = vector.extract_strided_slice %6 {offsets = [0, 128], sizes = [16, 128], strides = [1, 1]} : vector<16x384xf32> to vector<16x128xf32>
    %13 = vector.extract_strided_slice %6 {offsets = [0, 256], sizes = [16, 128], strides = [1, 1]} : vector<16x384xf32> to vector<16x128xf32>
    %c0_10 = arith.constant 0 : index
    %c0_11 = arith.constant 0 : index
    %14 = vector.load %arg5[%c0_10, %c0_11] : memref<1x128xf32, #tpu.memory_space<vmem>>, vector<1x128xf32>
    %cst_12 = arith.constant 0.000000e+00 : f32
    %15 = vector.broadcast %cst_12 : f32 to vector<16x128xf32>
    %16 = vector.extract_strided_slice %11 {offsets = [0, 0], sizes = [16, 32], strides = [1, 1]} : vector<16x128xf32> to vector<16x32xf32>
    %17 = arith.truncf %16 : vector<16x32xf32> to vector<16x32xbf16>
    %18 = vector.extract_strided_slice %12 {offsets = [0, 0], sizes = [16, 32], strides = [1, 1]} : vector<16x128xf32> to vector<16x32xf32>
    %19 = arith.truncf %18 : vector<16x32xf32> to vector<16x32xbf16>
    %20 = vector.extract_strided_slice %13 {offsets = [0, 0], sizes = [16, 32], strides = [1, 1]} : vector<16x128xf32> to vector<16x32xf32>
    %21 = arith.truncf %20 : vector<16x32xf32> to vector<16x32xbf16>
    %cst_13 = arith.constant dense<0.000000e+00> : vector<16x16xf32>
    %22 = tpu.matmul %17, %19, %cst_13 {dimension_numbers = #tpu.dot_dimension_numbers<[1], [1], [0], [0], [0, 0, 1, 0], [], []>} : vector<16x32xbf16>, vector<16x32xbf16>, vector<16x16xf32> -> vector<16x16xf32>
    %23 = vector.broadcast %8 : vector<1x16xf32> to vector<16x16xf32>
    %24 = arith.addf %22, %23 : vector<16x16xf32>
    %cst_14 = arith.constant dense<0xFF800000> : vector<16xf32>
    %25 = vector.multi_reduction <maximumf>, %24, %cst_14 [1] : vector<16x16xf32> to vector<16xf32>
    %26 = vector.shape_cast %25 : vector<16xf32> to vector<16x1xf32>
    %27 = vector.broadcast %26 : vector<16x1xf32> to vector<16x16xf32>
    %28 = arith.subf %24, %27 : vector<16x16xf32>
    %29 = math.exp %28 : vector<16x16xf32>
    %cst_15 = arith.constant dense<0.000000e+00> : vector<16xf32>
    %30 = vector.multi_reduction <add>, %29, %cst_15 [1] : vector<16x16xf32> to vector<16xf32>
    %31 = vector.shape_cast %30 : vector<16xf32> to vector<16x1xf32>
    %32 = vector.broadcast %31 : vector<16x1xf32> to vector<16x16xf32>
    %33 = arith.divf %29, %32 : vector<16x16xf32>
    %34 = arith.truncf %33 : vector<16x16xf32> to vector<16x16xbf16>
    %cst_16 = arith.constant dense<0.000000e+00> : vector<16x32xf32>
    %35 = tpu.matmul %34, %21, %cst_16 {dimension_numbers = #tpu.dot_dimension_numbers<[1], [0], [0], [1], [0, 0, 1, 1], [], []>} : vector<16x16xbf16>, vector<16x32xbf16>, vector<16x32xf32> -> vector<16x32xf32>
    %36 = arith.truncf %35 : vector<16x32xf32> to vector<16x32xbf16>
    %c0_17 = arith.constant 0 : index
    %c0_18 = arith.constant 0 : index
    %37 = vector.load %arg4[%c0_17, %c0_18] : memref<128x128xbf16, #tpu.memory_space<vmem>>, vector<32x128xbf16>
    %cst_19 = arith.constant dense<0.000000e+00> : vector<16x128xf32>
    %38 = tpu.matmul %36, %37, %cst_19 {dimension_numbers = #tpu.dot_dimension_numbers<[1], [0], [0], [1], [0, 0, 1, 1], [], []>} : vector<16x32xbf16>, vector<32x128xbf16>, vector<16x128xf32> -> vector<16x128xf32>
    %39 = arith.addf %15, %38 : vector<16x128xf32>
    %40 = vector.extract_strided_slice %11 {offsets = [0, 32], sizes = [16, 32], strides = [1, 1]} : vector<16x128xf32> to vector<16x32xf32>
    %41 = arith.truncf %40 : vector<16x32xf32> to vector<16x32xbf16>
    %42 = vector.extract_strided_slice %12 {offsets = [0, 32], sizes = [16, 32], strides = [1, 1]} : vector<16x128xf32> to vector<16x32xf32>
    %43 = arith.truncf %42 : vector<16x32xf32> to vector<16x32xbf16>
    %44 = vector.extract_strided_slice %13 {offsets = [0, 32], sizes = [16, 32], strides = [1, 1]} : vector<16x128xf32> to vector<16x32xf32>
    %45 = arith.truncf %44 : vector<16x32xf32> to vector<16x32xbf16>
    %cst_20 = arith.constant dense<0.000000e+00> : vector<16x16xf32>
    %46 = tpu.matmul %41, %43, %cst_20 {dimension_numbers = #tpu.dot_dimension_numbers<[1], [1], [0], [0], [0, 0, 1, 0], [], []>} : vector<16x32xbf16>, vector<16x32xbf16>, vector<16x16xf32> -> vector<16x16xf32>
    %47 = vector.broadcast %8 : vector<1x16xf32> to vector<16x16xf32>
    %48 = arith.addf %46, %47 : vector<16x16xf32>
    %cst_21 = arith.constant dense<0xFF800000> : vector<16xf32>
    %49 = vector.multi_reduction <maximumf>, %48, %cst_21 [1] : vector<16x16xf32> to vector<16xf32>
    %50 = vector.shape_cast %49 : vector<16xf32> to vector<16x1xf32>
    %51 = vector.broadcast %50 : vector<16x1xf32> to vector<16x16xf32>
    %52 = arith.subf %48, %51 : vector<16x16xf32>
    %53 = math.exp %52 : vector<16x16xf32>
    %cst_22 = arith.constant dense<0.000000e+00> : vector<16xf32>
    %54 = vector.multi_reduction <add>, %53, %cst_22 [1] : vector<16x16xf32> to vector<16xf32>
    %55 = vector.shape_cast %54 : vector<16xf32> to vector<16x1xf32>
    %56 = vector.broadcast %55 : vector<16x1xf32> to vector<16x16xf32>
    %57 = arith.divf %53, %56 : vector<16x16xf32>
    %58 = arith.truncf %57 : vector<16x16xf32> to vector<16x16xbf16>
    %cst_23 = arith.constant dense<0.000000e+00> : vector<16x32xf32>
    %59 = tpu.matmul %58, %45, %cst_23 {dimension_numbers = #tpu.dot_dimension_numbers<[1], [0], [0], [1], [0, 0, 1, 1], [], []>} : vector<16x16xbf16>, vector<16x32xbf16>, vector<16x32xf32> -> vector<16x32xf32>
    %60 = arith.truncf %59 : vector<16x32xf32> to vector<16x32xbf16>
    %c32 = arith.constant 32 : index
    %c0_24 = arith.constant 0 : index
    %61 = vector.load %arg4[%c32, %c0_24] : memref<128x128xbf16, #tpu.memory_space<vmem>>, vector<32x128xbf16>
    %cst_25 = arith.constant dense<0.000000e+00> : vector<16x128xf32>
    %62 = tpu.matmul %60, %61, %cst_25 {dimension_numbers = #tpu.dot_dimension_numbers<[1], [0], [0], [1], [0, 0, 1, 1], [], []>} : vector<16x32xbf16>, vector<32x128xbf16>, vector<16x128xf32> -> vector<16x128xf32>
    %63 = arith.addf %39, %62 : vector<16x128xf32>
    %64 = vector.extract_strided_slice %11 {offsets = [0, 64], sizes = [16, 32], strides = [1, 1]} : vector<16x128xf32> to vector<16x32xf32>
    %65 = arith.truncf %64 : vector<16x32xf32> to vector<16x32xbf16>
    %66 = vector.extract_strided_slice %12 {offsets = [0, 64], sizes = [16, 32], strides = [1, 1]} : vector<16x128xf32> to vector<16x32xf32>
    %67 = arith.truncf %66 : vector<16x32xf32> to vector<16x32xbf16>
    %68 = vector.extract_strided_slice %13 {offsets = [0, 64], sizes = [16, 32], strides = [1, 1]} : vector<16x128xf32> to vector<16x32xf32>
    %69 = arith.truncf %68 : vector<16x32xf32> to vector<16x32xbf16>
    %cst_26 = arith.constant dense<0.000000e+00> : vector<16x16xf32>
    %70 = tpu.matmul %65, %67, %cst_26 {dimension_numbers = #tpu.dot_dimension_numbers<[1], [1], [0], [0], [0, 0, 1, 0], [], []>} : vector<16x32xbf16>, vector<16x32xbf16>, vector<16x16xf32> -> vector<16x16xf32>
    %71 = vector.broadcast %8 : vector<1x16xf32> to vector<16x16xf32>
    %72 = arith.addf %70, %71 : vector<16x16xf32>
    %cst_27 = arith.constant dense<0xFF800000> : vector<16xf32>
    %73 = vector.multi_reduction <maximumf>, %72, %cst_27 [1] : vector<16x16xf32> to vector<16xf32>
    %74 = vector.shape_cast %73 : vector<16xf32> to vector<16x1xf32>
    %75 = vector.broadcast %74 : vector<16x1xf32> to vector<16x16xf32>
    %76 = arith.subf %72, %75 : vector<16x16xf32>
    %77 = math.exp %76 : vector<16x16xf32>
    %cst_28 = arith.constant dense<0.000000e+00> : vector<16xf32>
    %78 = vector.multi_reduction <add>, %77, %cst_28 [1] : vector<16x16xf32> to vector<16xf32>
    %79 = vector.shape_cast %78 : vector<16xf32> to vector<16x1xf32>
    %80 = vector.broadcast %79 : vector<16x1xf32> to vector<16x16xf32>
    %81 = arith.divf %77, %80 : vector<16x16xf32>
    %82 = arith.truncf %81 : vector<16x16xf32> to vector<16x16xbf16>
    %cst_29 = arith.constant dense<0.000000e+00> : vector<16x32xf32>
    %83 = tpu.matmul %82, %69, %cst_29 {dimension_numbers = #tpu.dot_dimension_numbers<[1], [0], [0], [1], [0, 0, 1, 1], [], []>} : vector<16x16xbf16>, vector<16x32xbf16>, vector<16x32xf32> -> vector<16x32xf32>
    %84 = arith.truncf %83 : vector<16x32xf32> to vector<16x32xbf16>
    %c64 = arith.constant 64 : index
    %c0_30 = arith.constant 0 : index
    %85 = vector.load %arg4[%c64, %c0_30] : memref<128x128xbf16, #tpu.memory_space<vmem>>, vector<32x128xbf16>
    %cst_31 = arith.constant dense<0.000000e+00> : vector<16x128xf32>
    %86 = tpu.matmul %84, %85, %cst_31 {dimension_numbers = #tpu.dot_dimension_numbers<[1], [0], [0], [1], [0, 0, 1, 1], [], []>} : vector<16x32xbf16>, vector<32x128xbf16>, vector<16x128xf32> -> vector<16x128xf32>
    %87 = arith.addf %63, %86 : vector<16x128xf32>
    %88 = vector.extract_strided_slice %11 {offsets = [0, 96], sizes = [16, 32], strides = [1, 1]} : vector<16x128xf32> to vector<16x32xf32>
    %89 = arith.truncf %88 : vector<16x32xf32> to vector<16x32xbf16>
    %90 = vector.extract_strided_slice %12 {offsets = [0, 96], sizes = [16, 32], strides = [1, 1]} : vector<16x128xf32> to vector<16x32xf32>
    %91 = arith.truncf %90 : vector<16x32xf32> to vector<16x32xbf16>
    %92 = vector.extract_strided_slice %13 {offsets = [0, 96], sizes = [16, 32], strides = [1, 1]} : vector<16x128xf32> to vector<16x32xf32>
    %93 = arith.truncf %92 : vector<16x32xf32> to vector<16x32xbf16>
    %cst_32 = arith.constant dense<0.000000e+00> : vector<16x16xf32>
    %94 = tpu.matmul %89, %91, %cst_32 {dimension_numbers = #tpu.dot_dimension_numbers<[1], [1], [0], [0], [0, 0, 1, 0], [], []>} : vector<16x32xbf16>, vector<16x32xbf16>, vector<16x16xf32> -> vector<16x16xf32>
    %95 = vector.broadcast %8 : vector<1x16xf32> to vector<16x16xf32>
    %96 = arith.addf %94, %95 : vector<16x16xf32>
    %cst_33 = arith.constant dense<0xFF800000> : vector<16xf32>
    %97 = vector.multi_reduction <maximumf>, %96, %cst_33 [1] : vector<16x16xf32> to vector<16xf32>
    %98 = vector.shape_cast %97 : vector<16xf32> to vector<16x1xf32>
    %99 = vector.broadcast %98 : vector<16x1xf32> to vector<16x16xf32>
    %100 = arith.subf %96, %99 : vector<16x16xf32>
    %101 = math.exp %100 : vector<16x16xf32>
    %cst_34 = arith.constant dense<0.000000e+00> : vector<16xf32>
    %102 = vector.multi_reduction <add>, %101, %cst_34 [1] : vector<16x16xf32> to vector<16xf32>
    %103 = vector.shape_cast %102 : vector<16xf32> to vector<16x1xf32>
    %104 = vector.broadcast %103 : vector<16x1xf32> to vector<16x16xf32>
    %105 = arith.divf %101, %104 : vector<16x16xf32>
    %106 = arith.truncf %105 : vector<16x16xf32> to vector<16x16xbf16>
    %cst_35 = arith.constant dense<0.000000e+00> : vector<16x32xf32>
    %107 = tpu.matmul %106, %93, %cst_35 {dimension_numbers = #tpu.dot_dimension_numbers<[1], [0], [0], [1], [0, 0, 1, 1], [], []>} : vector<16x16xbf16>, vector<16x32xbf16>, vector<16x32xf32> -> vector<16x32xf32>
    %108 = arith.truncf %107 : vector<16x32xf32> to vector<16x32xbf16>
    %c96 = arith.constant 96 : index
    %c0_36 = arith.constant 0 : index
    %109 = vector.load %arg4[%c96, %c0_36] : memref<128x128xbf16, #tpu.memory_space<vmem>>, vector<32x128xbf16>
    %cst_37 = arith.constant dense<0.000000e+00> : vector<16x128xf32>
    %110 = tpu.matmul %108, %109, %cst_37 {dimension_numbers = #tpu.dot_dimension_numbers<[1], [0], [0], [1], [0, 0, 1, 1], [], []>} : vector<16x32xbf16>, vector<32x128xbf16>, vector<16x128xf32> -> vector<16x128xf32>
    %111 = arith.addf %87, %110 : vector<16x128xf32>
    %112 = vector.broadcast %14 : vector<1x128xf32> to vector<16x128xf32>
    %113 = arith.addf %111, %112 : vector<16x128xf32>
    %114 = arith.extf %1 : vector<16x128xbf16> to vector<16x128xf32>
    %115 = arith.addf %113, %114 : vector<16x128xf32>
    %c0_38 = arith.constant 0 : index
    %c0_39 = arith.constant 0 : index
    %116 = vector.load %arg6[%c0_38, %c0_39] : memref<1x128xf32, #tpu.memory_space<vmem>>, vector<1x128xf32>
    %c0_40 = arith.constant 0 : index
    %c0_41 = arith.constant 0 : index
    %117 = vector.load %arg7[%c0_40, %c0_41] : memref<1x128xf32, #tpu.memory_space<vmem>>, vector<1x128xf32>
    %cst_42 = arith.constant dense<0.000000e+00> : vector<16xf32>
    %118 = vector.multi_reduction <add>, %115, %cst_42 [1] : vector<16x128xf32> to vector<16xf32>
    %119 = vector.shape_cast %118 : vector<16xf32> to vector<16x1xf32>
    %cst_43 = arith.constant 1.280000e+02 : f32
    %120 = vector.broadcast %cst_43 : f32 to vector<16x1xf32>
    %121 = arith.divf %119, %120 : vector<16x1xf32>
    %122 = vector.broadcast %121 : vector<16x1xf32> to vector<16x128xf32>
    %123 = arith.subf %115, %122 : vector<16x128xf32>
    %124 = vector.broadcast %121 : vector<16x1xf32> to vector<16x128xf32>
    %125 = arith.subf %115, %124 : vector<16x128xf32>
    %126 = arith.mulf %123, %125 : vector<16x128xf32>
    %cst_44 = arith.constant dense<0.000000e+00> : vector<16xf32>
    %127 = vector.multi_reduction <add>, %126, %cst_44 [1] : vector<16x128xf32> to vector<16xf32>
    %128 = vector.shape_cast %127 : vector<16xf32> to vector<16x1xf32>
    %cst_45 = arith.constant 1.280000e+02 : f32
    %129 = vector.broadcast %cst_45 : f32 to vector<16x1xf32>
    %130 = arith.divf %128, %129 : vector<16x1xf32>
    %131 = vector.broadcast %121 : vector<16x1xf32> to vector<16x128xf32>
    %132 = arith.subf %115, %131 : vector<16x128xf32>
    %cst_46 = arith.constant 9.99999974E-6 : f32
    %133 = vector.broadcast %cst_46 : f32 to vector<16x1xf32>
    %134 = arith.addf %130, %133 : vector<16x1xf32>
    %135 = math.rsqrt %134 : vector<16x1xf32>
    %136 = vector.broadcast %135 : vector<16x1xf32> to vector<16x128xf32>
    %137 = arith.mulf %132, %136 : vector<16x128xf32>
    %138 = vector.broadcast %116 : vector<1x128xf32> to vector<16x128xf32>
    %139 = arith.mulf %137, %138 : vector<16x128xf32>
    %140 = vector.broadcast %117 : vector<1x128xf32> to vector<16x128xf32>
    %141 = arith.addf %139, %140 : vector<16x128xf32>
    %142 = arith.truncf %141 : vector<16x128xf32> to vector<16x128xbf16>
    %c0_47 = arith.constant 0 : index
    %c0_48 = arith.constant 0 : index
    %143 = vector.load %arg8[%c0_47, %c0_48] : memref<128x256xbf16, #tpu.memory_space<vmem>>, vector<128x256xbf16>
    %cst_49 = arith.constant dense<0.000000e+00> : vector<16x256xf32>
    %144 = tpu.matmul %142, %143, %cst_49 {dimension_numbers = #tpu.dot_dimension_numbers<[1], [0], [0], [1], [0, 0, 1, 1], [], []>} : vector<16x128xbf16>, vector<128x256xbf16>, vector<16x256xf32> -> vector<16x256xf32>
    %c0_50 = arith.constant 0 : index
    %c0_51 = arith.constant 0 : index
    %145 = vector.load %arg9[%c0_50, %c0_51] : memref<1x256xf32, #tpu.memory_space<vmem>>, vector<1x256xf32>
    %146 = vector.broadcast %145 : vector<1x256xf32> to vector<16x256xf32>
    %147 = arith.addf %144, %146 : vector<16x256xf32>
    %cst_52 = arith.constant 5.000000e-01 : f32
    %148 = vector.broadcast %cst_52 : f32 to vector<16x256xf32>
    %149 = arith.mulf %148, %147 : vector<16x256xf32>
    %cst_53 = arith.constant 4.471500e-02 : f32
    %150 = vector.broadcast %cst_53 : f32 to vector<16x256xf32>
    %151 = arith.mulf %150, %147 : vector<16x256xf32>
    %152 = arith.mulf %151, %147 : vector<16x256xf32>
    %153 = arith.mulf %152, %147 : vector<16x256xf32>
    %154 = arith.addf %147, %153 : vector<16x256xf32>
    %cst_54 = arith.constant 0.797884583 : f32
    %155 = vector.broadcast %cst_54 : f32 to vector<16x256xf32>
    %156 = arith.mulf %155, %154 : vector<16x256xf32>
    %157 = math.tanh %156 : vector<16x256xf32>
    %cst_55 = arith.constant 1.000000e+00 : f32
    %158 = vector.broadcast %cst_55 : f32 to vector<16x256xf32>
    %159 = arith.addf %158, %157 : vector<16x256xf32>
    %160 = arith.mulf %149, %159 : vector<16x256xf32>
    %161 = arith.truncf %160 : vector<16x256xf32> to vector<16x256xbf16>
    %c0_56 = arith.constant 0 : index
    %c0_57 = arith.constant 0 : index
    %162 = vector.load %arg10[%c0_56, %c0_57] : memref<256x128xbf16, #tpu.memory_space<vmem>>, vector<256x128xbf16>
    %cst_58 = arith.constant dense<0.000000e+00> : vector<16x128xf32>
    %163 = tpu.matmul %161, %162, %cst_58 {dimension_numbers = #tpu.dot_dimension_numbers<[1], [0], [0], [1], [0, 0, 1, 1], [], []>} : vector<16x256xbf16>, vector<256x128xbf16>, vector<16x128xf32> -> vector<16x128xf32>
    %c0_59 = arith.constant 0 : index
    %c0_60 = arith.constant 0 : index
    %164 = vector.load %arg11[%c0_59, %c0_60] : memref<1x128xf32, #tpu.memory_space<vmem>>, vector<1x128xf32>
    %165 = vector.broadcast %164 : vector<1x128xf32> to vector<16x128xf32>
    %166 = arith.addf %163, %165 : vector<16x128xf32>
    %167 = arith.addf %166, %141 : vector<16x128xf32>
    %c0_61 = arith.constant 0 : index
    %c0_62 = arith.constant 0 : index
    %168 = vector.load %arg12[%c0_61, %c0_62] : memref<1x128xf32, #tpu.memory_space<vmem>>, vector<1x128xf32>
    %c0_63 = arith.constant 0 : index
    %c0_64 = arith.constant 0 : index
    %169 = vector.load %arg13[%c0_63, %c0_64] : memref<1x128xf32, #tpu.memory_space<vmem>>, vector<1x128xf32>
    %cst_65 = arith.constant dense<0.000000e+00> : vector<16xf32>
    %170 = vector.multi_reduction <add>, %167, %cst_65 [1] : vector<16x128xf32> to vector<16xf32>
    %171 = vector.shape_cast %170 : vector<16xf32> to vector<16x1xf32>
    %cst_66 = arith.constant 1.280000e+02 : f32
    %172 = vector.broadcast %cst_66 : f32 to vector<16x1xf32>
    %173 = arith.divf %171, %172 : vector<16x1xf32>
    %174 = vector.broadcast %173 : vector<16x1xf32> to vector<16x128xf32>
    %175 = arith.subf %167, %174 : vector<16x128xf32>
    %176 = vector.broadcast %173 : vector<16x1xf32> to vector<16x128xf32>
    %177 = arith.subf %167, %176 : vector<16x128xf32>
    %178 = arith.mulf %175, %177 : vector<16x128xf32>
    %cst_67 = arith.constant dense<0.000000e+00> : vector<16xf32>
    %179 = vector.multi_reduction <add>, %178, %cst_67 [1] : vector<16x128xf32> to vector<16xf32>
    %180 = vector.shape_cast %179 : vector<16xf32> to vector<16x1xf32>
    %cst_68 = arith.constant 1.280000e+02 : f32
    %181 = vector.broadcast %cst_68 : f32 to vector<16x1xf32>
    %182 = arith.divf %180, %181 : vector<16x1xf32>
    %183 = vector.broadcast %173 : vector<16x1xf32> to vector<16x128xf32>
    %184 = arith.subf %167, %183 : vector<16x128xf32>
    %cst_69 = arith.constant 9.99999974E-6 : f32
    %185 = vector.broadcast %cst_69 : f32 to vector<16x1xf32>
    %186 = arith.addf %182, %185 : vector<16x1xf32>
    %187 = math.rsqrt %186 : vector<16x1xf32>
    %188 = vector.broadcast %187 : vector<16x1xf32> to vector<16x128xf32>
    %189 = arith.mulf %184, %188 : vector<16x128xf32>
    %190 = vector.broadcast %168 : vector<1x128xf32> to vector<16x128xf32>
    %191 = arith.mulf %189, %190 : vector<16x128xf32>
    %192 = vector.broadcast %169 : vector<1x128xf32> to vector<16x128xf32>
    %193 = arith.addf %191, %192 : vector<16x128xf32>
    %194 = arith.truncf %193 : vector<16x128xf32> to vector<16x128xbf16>
    %c0_70 = arith.constant 0 : index
    %c0_71 = arith.constant 0 : index
    %c0_72 = arith.constant 0 : index
    %195 = vector.load %arg15[%c0_70, %c0_71, %c0_72] : memref<1x16x128xbf16, #tpu.memory_space<vmem>>, vector<1x16x128xbf16>
    %196 = vector.shape_cast %195 : vector<1x16x128xbf16> to vector<16x128xbf16>
    %197 = vector.shape_cast %194 : vector<16x128xbf16> to vector<1x16x128xbf16>
    tpu.vector_store %arg15[%c0_70, %c0_71, %c0_72], %197 {strides = array<i32>} : memref<1x16x128xbf16, #tpu.memory_space<vmem>>, vector<1x16x128xbf16>,
    return
  }
  func.func @transform_0(%arg0: i32) -> (i32, i32, i32) {
    %c0_i32 = arith.constant 0 : i32
    %c0_i32_0 = arith.constant 0 : i32
    %c0_i32_1 = arith.constant 0 : i32
    return %arg0, %c0_i32, %c0_i32_0 : i32, i32, i32
  }
  func.func @transform_1(%arg0: i32) -> (i32, i32) {
    %c0_i32 = arith.constant 0 : i32
    %c0_i32_0 = arith.constant 0 : i32
    %c0_i32_1 = arith.constant 0 : i32
    return %c0_i32, %c0_i32_0 : i32, i32
  }
  func.func @transform_2(%arg0: i32) -> (i32, i32) {
    %c0_i32 = arith.constant 0 : i32
    %c0_i32_0 = arith.constant 0 : i32
    %c0_i32_1 = arith.constant 0 : i32
    return %c0_i32, %c0_i32_0 : i32, i32
  }
  func.func @transform_3(%arg0: i32) -> (i32, i32) {
    %c0_i32 = arith.constant 0 : i32
    %c0_i32_0 = arith.constant 0 : i32
    %c0_i32_1 = arith.constant 0 : i32
    return %c0_i32, %c0_i32_0 : i32, i32
  }
  func.func @transform_4(%arg0: i32) -> (i32, i32) {
    %c0_i32 = arith.constant 0 : i32
    %c0_i32_0 = arith.constant 0 : i32
    %c0_i32_1 = arith.constant 0 : i32
    return %c0_i32, %c0_i32_0 : i32, i32
  }
  func.func @transform_5(%arg0: i32) -> (i32, i32) {
    %c0_i32 = arith.constant 0 : i32
    %c0_i32_0 = arith.constant 0 : i32
    %c0_i32_1 = arith.constant 0 : i32
    return %c0_i32, %c0_i32_0 : i32, i32
  }
  func.func @transform_6(%arg0: i32) -> (i32, i32) {
    %c0_i32 = arith.constant 0 : i32
    %c0_i32_0 = arith.constant 0 : i32
    %c0_i32_1 = arith.constant 0 : i32
    return %c0_i32, %c0_i32_0 : i32, i32
  }
  func.func @transform_7(%arg0: i32) -> (i32, i32) {
    %c0_i32 = arith.constant 0 : i32
    %c0_i32_0 = arith.constant 0 : i32
    %c0_i32_1 = arith.constant 0 : i32
    return %c0_i32, %c0_i32_0 : i32, i32
  }
  func.func @transform_8(%arg0: i32) -> (i32, i32) {
    %c0_i32 = arith.constant 0 : i32
    %c0_i32_0 = arith.constant 0 : i32
    %c0_i32_1 = arith.constant 0 : i32
    return %c0_i32, %c0_i32_0 : i32, i32
  }
  func.func @transform_9(%arg0: i32) -> (i32, i32) {
    %c0_i32 = arith.constant 0 : i32
    %c0_i32_0 = arith.constant 0 : i32
    %c0_i32_1 = arith.constant 0 : i32
    return %c0_i32, %c0_i32_0 : i32, i32
  }
  func.func @transform_10(%arg0: i32) -> (i32, i32) {
    %c0_i32 = arith.constant 0 : i32
    %c0_i32_0 = arith.constant 0 : i32
    %c0_i32_1 = arith.constant 0 : i32
    return %c0_i32, %c0_i32_0 : i32, i32
  }
  func.func @transform_11(%arg0: i32) -> (i32, i32) {
    %c0_i32 = arith.constant 0 : i32
    %c0_i32_0 = arith.constant 0 : i32
    %c0_i32_1 = arith.constant 0 : i32
    return %c0_i32, %c0_i32_0 : i32, i32
  }
  func.func @transform_12(%arg0: i32) -> (i32, i32) {
    %c0_i32 = arith.constant 0 : i32
    %c0_i32_0 = arith.constant 0 : i32
    %c0_i32_1 = arith.constant 0 : i32
    return %c0_i32, %c0_i32_0 : i32, i32
  }
  func.func @transform_13(%arg0: i32) -> (i32, i32, i32) {
    %c0_i32 = arith.constant 0 : i32
    %c0_i32_0 = arith.constant 0 : i32
    %c0_i32_1 = arith.constant 0 : i32
    return %arg0, %c0_i32, %c0_i32_0 : i32, i32, i32
  }
  func.func @transform_14(%arg0: i32) -> (i32, i32, i32) {
    %c0_i32 = arith.constant 0 : i32
    %c0_i32_0 = arith.constant 0 : i32
    %c0_i32_1 = arith.constant 0 : i32
    return %arg0, %c0_i32, %c0_i32_0 : i32, i32, i32
  }
}

module attributes {stable_mosaic.version = 11 : i64} {
  func.func @_dec_layer_kernel(%arg0: i32, %arg1: memref<1x16x128xbf16, #tpu.memory_space<vmem>>, %arg2: memref<1x16x128xbf16, #tpu.memory_space<vmem>>, %arg3: memref<128x384xbf16, #tpu.memory_space<vmem>>, %arg4: memref<1x384xf32, #tpu.memory_space<vmem>>, %arg5: memref<128x128xbf16, #tpu.memory_space<vmem>>, %arg6: memref<1x128xf32, #tpu.memory_space<vmem>>, %arg7: memref<1x128xf32, #tpu.memory_space<vmem>>, %arg8: memref<1x128xf32, #tpu.memory_space<vmem>>, %arg9: memref<128x128xbf16, #tpu.memory_space<vmem>>, %arg10: memref<1x128xf32, #tpu.memory_space<vmem>>, %arg11: memref<128x256xbf16, #tpu.memory_space<vmem>>, %arg12: memref<1x256xf32, #tpu.memory_space<vmem>>, %arg13: memref<128x128xbf16, #tpu.memory_space<vmem>>, %arg14: memref<1x128xf32, #tpu.memory_space<vmem>>, %arg15: memref<1x128xf32, #tpu.memory_space<vmem>>, %arg16: memref<1x128xf32, #tpu.memory_space<vmem>>, %arg17: memref<128x256xbf16, #tpu.memory_space<vmem>>, %arg18: memref<1x256xf32, #tpu.memory_space<vmem>>, %arg19: memref<256x128xbf16, #tpu.memory_space<vmem>>, %arg20: memref<1x128xf32, #tpu.memory_space<vmem>>, %arg21: memref<1x128xf32, #tpu.memory_space<vmem>>, %arg22: memref<1x128xf32, #tpu.memory_space<vmem>>, %arg23: memref<1x1x16xf32, #tpu.memory_space<vmem>>, %arg24: memref<1x16x128xbf16, #tpu.memory_space<vmem>>) attributes {dimension_semantics = [#tpu.dimension_semantics<parallel>], iteration_bounds = array<i64: 2>, scalar_prefetch = 0 : i64, scratch_operands = 0 : i64, tpu.core_type = #tpu.core_type<tc>, window_params = [{transform_indices = @transform_0, window_bounds = array<i64: 1, 16, 128>}, {transform_indices = @transform_1, window_bounds = array<i64: 1, 16, 128>}, {pipeline_mode = #tpu.pipeline_mode<synchronous>, transform_indices = @transform_2, window_bounds = array<i64: 128, 384>}, {pipeline_mode = #tpu.pipeline_mode<synchronous>, transform_indices = @transform_3, window_bounds = array<i64: 1, 384>}, {pipeline_mode = #tpu.pipeline_mode<synchronous>, transform_indices = @transform_4, window_bounds = array<i64: 128, 128>}, {pipeline_mode = #tpu.pipeline_mode<synchronous>, transform_indices = @transform_5, window_bounds = array<i64: 1, 128>}, {pipeline_mode = #tpu.pipeline_mode<synchronous>, transform_indices = @transform_6, window_bounds = array<i64: 1, 128>}, {pipeline_mode = #tpu.pipeline_mode<synchronous>, transform_indices = @transform_7, window_bounds = array<i64: 1, 128>}, {pipeline_mode = #tpu.pipeline_mode<synchronous>, transform_indices = @transform_8, window_bounds = array<i64: 128, 128>}, {pipeline_mode = #tpu.pipeline_mode<synchronous>, transform_indices = @transform_9, window_bounds = array<i64: 1, 128>}, {pipeline_mode = #tpu.pipeline_mode<synchronous>, transform_indices = @transform_10, window_bounds = array<i64: 128, 256>}, {pipeline_mode = #tpu.pipeline_mode<synchronous>, transform_indices = @transform_11, window_bounds = array<i64: 1, 256>}, {pipeline_mode = #tpu.pipeline_mode<synchronous>, transform_indices = @transform_12, window_bounds = array<i64: 128, 128>}, {pipeline_mode = #tpu.pipeline_mode<synchronous>, transform_indices = @transform_13, window_bounds = array<i64: 1, 128>}, {pipeline_mode = #tpu.pipeline_mode<synchronous>, transform_indices = @transform_14, window_bounds = array<i64: 1, 128>}, {pipeline_mode = #tpu.pipeline_mode<synchronous>, transform_indices = @transform_15, window_bounds = array<i64: 1, 128>}, {pipeline_mode = #tpu.pipeline_mode<synchronous>, transform_indices = @transform_16, window_bounds = array<i64: 128, 256>}, {pipeline_mode = #tpu.pipeline_mode<synchronous>, transform_indices = @transform_17, window_bounds = array<i64: 1, 256>}, {pipeline_mode = #tpu.pipeline_mode<synchronous>, transform_indices = @transform_18, window_bounds = array<i64: 256, 128>}, {pipeline_mode = #tpu.pipeline_mode<synchronous>, transform_indices = @transform_19, window_bounds = array<i64: 1, 128>}, {pipeline_mode = #tpu.pipeline_mode<synchronous>, transform_indices = @transform_20, window_bounds = array<i64: 1, 128>}, {pipeline_mode = #tpu.pipeline_mode<synchronous>, transform_indices = @transform_21, window_bounds = array<i64: 1, 128>}, {transform_indices = @transform_22, window_bounds = array<i64: 1, 1, 16>}, {transform_indices = @transform_23, window_bounds = array<i64: 1, 16, 128>}]} {
    %c0 = arith.constant 0 : index
    %c0_0 = arith.constant 0 : index
    %c0_1 = arith.constant 0 : index
    %0 = vector.load %arg1[%c0, %c0_0, %c0_1] : memref<1x16x128xbf16, #tpu.memory_space<vmem>>, vector<1x16x128xbf16>
    %1 = vector.shape_cast %0 : vector<1x16x128xbf16> to vector<16x128xbf16>
    %c0_2 = arith.constant 0 : index
    %c0_3 = arith.constant 0 : index
    %c0_4 = arith.constant 0 : index
    %2 = vector.load %arg2[%c0_2, %c0_3, %c0_4] : memref<1x16x128xbf16, #tpu.memory_space<vmem>>, vector<1x16x128xbf16>
    %3 = vector.shape_cast %2 : vector<1x16x128xbf16> to vector<16x128xbf16>
    %c0_5 = arith.constant 0 : index
    %c0_6 = arith.constant 0 : index
    %4 = vector.load %arg3[%c0_5, %c0_6] : memref<128x384xbf16, #tpu.memory_space<vmem>>, vector<128x384xbf16>
    %cst = arith.constant dense<0.000000e+00> : vector<16x384xf32>
    %5 = tpu.matmul %1, %4, %cst {dimension_numbers = #tpu.dot_dimension_numbers<[1], [0], [0], [1], [0, 0, 1, 1], [], []>} : vector<16x128xbf16>, vector<128x384xbf16>, vector<16x384xf32> -> vector<16x384xf32>
    %c0_7 = arith.constant 0 : index
    %c0_8 = arith.constant 0 : index
    %6 = vector.load %arg4[%c0_7, %c0_8] : memref<1x384xf32, #tpu.memory_space<vmem>>, vector<1x384xf32>
    %7 = vector.broadcast %6 : vector<1x384xf32> to vector<16x384xf32>
    %8 = arith.addf %5, %7 : vector<16x384xf32>
    %9 = tpu.iota {dimensions = array<i32: 0>} : vector<16x16xi32>
    %10 = tpu.iota {dimensions = array<i32: 1>} : vector<16x16xi32>
    %11 = arith.cmpi sle, %10, %9 : vector<16x16xi32>
    %cst_9 = arith.constant 0.000000e+00 : f32
    %cst_10 = arith.constant -1.000000e+09 : f32
    %12 = vector.broadcast %cst_9 : f32 to vector<16x16xf32>
    %13 = vector.broadcast %cst_10 : f32 to vector<16x16xf32>
    %14 = arith.select %11, %12, %13 : vector<16x16xi1>, vector<16x16xf32>
    %15 = vector.extract_strided_slice %8 {offsets = [0, 0], sizes = [16, 128], strides = [1, 1]} : vector<16x384xf32> to vector<16x128xf32>
    %cst_11 = arith.constant 0.176776692 : f32
    %16 = vector.broadcast %cst_11 : f32 to vector<16x128xf32>
    %17 = arith.mulf %15, %16 : vector<16x128xf32>
    %18 = vector.extract_strided_slice %8 {offsets = [0, 128], sizes = [16, 128], strides = [1, 1]} : vector<16x384xf32> to vector<16x128xf32>
    %19 = vector.extract_strided_slice %8 {offsets = [0, 256], sizes = [16, 128], strides = [1, 1]} : vector<16x384xf32> to vector<16x128xf32>
    %c0_12 = arith.constant 0 : index
    %c0_13 = arith.constant 0 : index
    %20 = vector.load %arg6[%c0_12, %c0_13] : memref<1x128xf32, #tpu.memory_space<vmem>>, vector<1x128xf32>
    %cst_14 = arith.constant 0.000000e+00 : f32
    %21 = vector.broadcast %cst_14 : f32 to vector<16x128xf32>
    %22 = vector.extract_strided_slice %17 {offsets = [0, 0], sizes = [16, 32], strides = [1, 1]} : vector<16x128xf32> to vector<16x32xf32>
    %23 = arith.truncf %22 : vector<16x32xf32> to vector<16x32xbf16>
    %24 = vector.extract_strided_slice %18 {offsets = [0, 0], sizes = [16, 32], strides = [1, 1]} : vector<16x128xf32> to vector<16x32xf32>
    %25 = arith.truncf %24 : vector<16x32xf32> to vector<16x32xbf16>
    %26 = vector.extract_strided_slice %19 {offsets = [0, 0], sizes = [16, 32], strides = [1, 1]} : vector<16x128xf32> to vector<16x32xf32>
    %27 = arith.truncf %26 : vector<16x32xf32> to vector<16x32xbf16>
    %cst_15 = arith.constant dense<0.000000e+00> : vector<16x16xf32>
    %28 = tpu.matmul %23, %25, %cst_15 {dimension_numbers = #tpu.dot_dimension_numbers<[1], [1], [0], [0], [0, 0, 1, 0], [], []>} : vector<16x32xbf16>, vector<16x32xbf16>, vector<16x16xf32> -> vector<16x16xf32>
    %29 = arith.addf %28, %14 : vector<16x16xf32>
    %cst_16 = arith.constant dense<0xFF800000> : vector<16xf32>
    %30 = vector.multi_reduction <maximumf>, %29, %cst_16 [1] : vector<16x16xf32> to vector<16xf32>
    %31 = vector.shape_cast %30 : vector<16xf32> to vector<16x1xf32>
    %32 = vector.broadcast %31 : vector<16x1xf32> to vector<16x16xf32>
    %33 = arith.subf %29, %32 : vector<16x16xf32>
    %34 = math.exp %33 : vector<16x16xf32>
    %cst_17 = arith.constant dense<0.000000e+00> : vector<16xf32>
    %35 = vector.multi_reduction <add>, %34, %cst_17 [1] : vector<16x16xf32> to vector<16xf32>
    %36 = vector.shape_cast %35 : vector<16xf32> to vector<16x1xf32>
    %37 = vector.broadcast %36 : vector<16x1xf32> to vector<16x16xf32>
    %38 = arith.divf %34, %37 : vector<16x16xf32>
    %39 = arith.truncf %38 : vector<16x16xf32> to vector<16x16xbf16>
    %cst_18 = arith.constant dense<0.000000e+00> : vector<16x32xf32>
    %40 = tpu.matmul %39, %27, %cst_18 {dimension_numbers = #tpu.dot_dimension_numbers<[1], [0], [0], [1], [0, 0, 1, 1], [], []>} : vector<16x16xbf16>, vector<16x32xbf16>, vector<16x32xf32> -> vector<16x32xf32>
    %41 = arith.truncf %40 : vector<16x32xf32> to vector<16x32xbf16>
    %c0_19 = arith.constant 0 : index
    %c0_20 = arith.constant 0 : index
    %42 = vector.load %arg5[%c0_19, %c0_20] : memref<128x128xbf16, #tpu.memory_space<vmem>>, vector<32x128xbf16>
    %cst_21 = arith.constant dense<0.000000e+00> : vector<16x128xf32>
    %43 = tpu.matmul %41, %42, %cst_21 {dimension_numbers = #tpu.dot_dimension_numbers<[1], [0], [0], [1], [0, 0, 1, 1], [], []>} : vector<16x32xbf16>, vector<32x128xbf16>, vector<16x128xf32> -> vector<16x128xf32>
    %44 = arith.addf %21, %43 : vector<16x128xf32>
    %45 = vector.extract_strided_slice %17 {offsets = [0, 32], sizes = [16, 32], strides = [1, 1]} : vector<16x128xf32> to vector<16x32xf32>
    %46 = arith.truncf %45 : vector<16x32xf32> to vector<16x32xbf16>
    %47 = vector.extract_strided_slice %18 {offsets = [0, 32], sizes = [16, 32], strides = [1, 1]} : vector<16x128xf32> to vector<16x32xf32>
    %48 = arith.truncf %47 : vector<16x32xf32> to vector<16x32xbf16>
    %49 = vector.extract_strided_slice %19 {offsets = [0, 32], sizes = [16, 32], strides = [1, 1]} : vector<16x128xf32> to vector<16x32xf32>
    %50 = arith.truncf %49 : vector<16x32xf32> to vector<16x32xbf16>
    %cst_22 = arith.constant dense<0.000000e+00> : vector<16x16xf32>
    %51 = tpu.matmul %46, %48, %cst_22 {dimension_numbers = #tpu.dot_dimension_numbers<[1], [1], [0], [0], [0, 0, 1, 0], [], []>} : vector<16x32xbf16>, vector<16x32xbf16>, vector<16x16xf32> -> vector<16x16xf32>
    %52 = arith.addf %51, %14 : vector<16x16xf32>
    %cst_23 = arith.constant dense<0xFF800000> : vector<16xf32>
    %53 = vector.multi_reduction <maximumf>, %52, %cst_23 [1] : vector<16x16xf32> to vector<16xf32>
    %54 = vector.shape_cast %53 : vector<16xf32> to vector<16x1xf32>
    %55 = vector.broadcast %54 : vector<16x1xf32> to vector<16x16xf32>
    %56 = arith.subf %52, %55 : vector<16x16xf32>
    %57 = math.exp %56 : vector<16x16xf32>
    %cst_24 = arith.constant dense<0.000000e+00> : vector<16xf32>
    %58 = vector.multi_reduction <add>, %57, %cst_24 [1] : vector<16x16xf32> to vector<16xf32>
    %59 = vector.shape_cast %58 : vector<16xf32> to vector<16x1xf32>
    %60 = vector.broadcast %59 : vector<16x1xf32> to vector<16x16xf32>
    %61 = arith.divf %57, %60 : vector<16x16xf32>
    %62 = arith.truncf %61 : vector<16x16xf32> to vector<16x16xbf16>
    %cst_25 = arith.constant dense<0.000000e+00> : vector<16x32xf32>
    %63 = tpu.matmul %62, %50, %cst_25 {dimension_numbers = #tpu.dot_dimension_numbers<[1], [0], [0], [1], [0, 0, 1, 1], [], []>} : vector<16x16xbf16>, vector<16x32xbf16>, vector<16x32xf32> -> vector<16x32xf32>
    %64 = arith.truncf %63 : vector<16x32xf32> to vector<16x32xbf16>
    %c32 = arith.constant 32 : index
    %c0_26 = arith.constant 0 : index
    %65 = vector.load %arg5[%c32, %c0_26] : memref<128x128xbf16, #tpu.memory_space<vmem>>, vector<32x128xbf16>
    %cst_27 = arith.constant dense<0.000000e+00> : vector<16x128xf32>
    %66 = tpu.matmul %64, %65, %cst_27 {dimension_numbers = #tpu.dot_dimension_numbers<[1], [0], [0], [1], [0, 0, 1, 1], [], []>} : vector<16x32xbf16>, vector<32x128xbf16>, vector<16x128xf32> -> vector<16x128xf32>
    %67 = arith.addf %44, %66 : vector<16x128xf32>
    %68 = vector.extract_strided_slice %17 {offsets = [0, 64], sizes = [16, 32], strides = [1, 1]} : vector<16x128xf32> to vector<16x32xf32>
    %69 = arith.truncf %68 : vector<16x32xf32> to vector<16x32xbf16>
    %70 = vector.extract_strided_slice %18 {offsets = [0, 64], sizes = [16, 32], strides = [1, 1]} : vector<16x128xf32> to vector<16x32xf32>
    %71 = arith.truncf %70 : vector<16x32xf32> to vector<16x32xbf16>
    %72 = vector.extract_strided_slice %19 {offsets = [0, 64], sizes = [16, 32], strides = [1, 1]} : vector<16x128xf32> to vector<16x32xf32>
    %73 = arith.truncf %72 : vector<16x32xf32> to vector<16x32xbf16>
    %cst_28 = arith.constant dense<0.000000e+00> : vector<16x16xf32>
    %74 = tpu.matmul %69, %71, %cst_28 {dimension_numbers = #tpu.dot_dimension_numbers<[1], [1], [0], [0], [0, 0, 1, 0], [], []>} : vector<16x32xbf16>, vector<16x32xbf16>, vector<16x16xf32> -> vector<16x16xf32>
    %75 = arith.addf %74, %14 : vector<16x16xf32>
    %cst_29 = arith.constant dense<0xFF800000> : vector<16xf32>
    %76 = vector.multi_reduction <maximumf>, %75, %cst_29 [1] : vector<16x16xf32> to vector<16xf32>
    %77 = vector.shape_cast %76 : vector<16xf32> to vector<16x1xf32>
    %78 = vector.broadcast %77 : vector<16x1xf32> to vector<16x16xf32>
    %79 = arith.subf %75, %78 : vector<16x16xf32>
    %80 = math.exp %79 : vector<16x16xf32>
    %cst_30 = arith.constant dense<0.000000e+00> : vector<16xf32>
    %81 = vector.multi_reduction <add>, %80, %cst_30 [1] : vector<16x16xf32> to vector<16xf32>
    %82 = vector.shape_cast %81 : vector<16xf32> to vector<16x1xf32>
    %83 = vector.broadcast %82 : vector<16x1xf32> to vector<16x16xf32>
    %84 = arith.divf %80, %83 : vector<16x16xf32>
    %85 = arith.truncf %84 : vector<16x16xf32> to vector<16x16xbf16>
    %cst_31 = arith.constant dense<0.000000e+00> : vector<16x32xf32>
    %86 = tpu.matmul %85, %73, %cst_31 {dimension_numbers = #tpu.dot_dimension_numbers<[1], [0], [0], [1], [0, 0, 1, 1], [], []>} : vector<16x16xbf16>, vector<16x32xbf16>, vector<16x32xf32> -> vector<16x32xf32>
    %87 = arith.truncf %86 : vector<16x32xf32> to vector<16x32xbf16>
    %c64 = arith.constant 64 : index
    %c0_32 = arith.constant 0 : index
    %88 = vector.load %arg5[%c64, %c0_32] : memref<128x128xbf16, #tpu.memory_space<vmem>>, vector<32x128xbf16>
    %cst_33 = arith.constant dense<0.000000e+00> : vector<16x128xf32>
    %89 = tpu.matmul %87, %88, %cst_33 {dimension_numbers = #tpu.dot_dimension_numbers<[1], [0], [0], [1], [0, 0, 1, 1], [], []>} : vector<16x32xbf16>, vector<32x128xbf16>, vector<16x128xf32> -> vector<16x128xf32>
    %90 = arith.addf %67, %89 : vector<16x128xf32>
    %91 = vector.extract_strided_slice %17 {offsets = [0, 96], sizes = [16, 32], strides = [1, 1]} : vector<16x128xf32> to vector<16x32xf32>
    %92 = arith.truncf %91 : vector<16x32xf32> to vector<16x32xbf16>
    %93 = vector.extract_strided_slice %18 {offsets = [0, 96], sizes = [16, 32], strides = [1, 1]} : vector<16x128xf32> to vector<16x32xf32>
    %94 = arith.truncf %93 : vector<16x32xf32> to vector<16x32xbf16>
    %95 = vector.extract_strided_slice %19 {offsets = [0, 96], sizes = [16, 32], strides = [1, 1]} : vector<16x128xf32> to vector<16x32xf32>
    %96 = arith.truncf %95 : vector<16x32xf32> to vector<16x32xbf16>
    %cst_34 = arith.constant dense<0.000000e+00> : vector<16x16xf32>
    %97 = tpu.matmul %92, %94, %cst_34 {dimension_numbers = #tpu.dot_dimension_numbers<[1], [1], [0], [0], [0, 0, 1, 0], [], []>} : vector<16x32xbf16>, vector<16x32xbf16>, vector<16x16xf32> -> vector<16x16xf32>
    %98 = arith.addf %97, %14 : vector<16x16xf32>
    %cst_35 = arith.constant dense<0xFF800000> : vector<16xf32>
    %99 = vector.multi_reduction <maximumf>, %98, %cst_35 [1] : vector<16x16xf32> to vector<16xf32>
    %100 = vector.shape_cast %99 : vector<16xf32> to vector<16x1xf32>
    %101 = vector.broadcast %100 : vector<16x1xf32> to vector<16x16xf32>
    %102 = arith.subf %98, %101 : vector<16x16xf32>
    %103 = math.exp %102 : vector<16x16xf32>
    %cst_36 = arith.constant dense<0.000000e+00> : vector<16xf32>
    %104 = vector.multi_reduction <add>, %103, %cst_36 [1] : vector<16x16xf32> to vector<16xf32>
    %105 = vector.shape_cast %104 : vector<16xf32> to vector<16x1xf32>
    %106 = vector.broadcast %105 : vector<16x1xf32> to vector<16x16xf32>
    %107 = arith.divf %103, %106 : vector<16x16xf32>
    %108 = arith.truncf %107 : vector<16x16xf32> to vector<16x16xbf16>
    %cst_37 = arith.constant dense<0.000000e+00> : vector<16x32xf32>
    %109 = tpu.matmul %108, %96, %cst_37 {dimension_numbers = #tpu.dot_dimension_numbers<[1], [0], [0], [1], [0, 0, 1, 1], [], []>} : vector<16x16xbf16>, vector<16x32xbf16>, vector<16x32xf32> -> vector<16x32xf32>
    %110 = arith.truncf %109 : vector<16x32xf32> to vector<16x32xbf16>
    %c96 = arith.constant 96 : index
    %c0_38 = arith.constant 0 : index
    %111 = vector.load %arg5[%c96, %c0_38] : memref<128x128xbf16, #tpu.memory_space<vmem>>, vector<32x128xbf16>
    %cst_39 = arith.constant dense<0.000000e+00> : vector<16x128xf32>
    %112 = tpu.matmul %110, %111, %cst_39 {dimension_numbers = #tpu.dot_dimension_numbers<[1], [0], [0], [1], [0, 0, 1, 1], [], []>} : vector<16x32xbf16>, vector<32x128xbf16>, vector<16x128xf32> -> vector<16x128xf32>
    %113 = arith.addf %90, %112 : vector<16x128xf32>
    %114 = vector.broadcast %20 : vector<1x128xf32> to vector<16x128xf32>
    %115 = arith.addf %113, %114 : vector<16x128xf32>
    %116 = arith.extf %1 : vector<16x128xbf16> to vector<16x128xf32>
    %117 = arith.addf %115, %116 : vector<16x128xf32>
    %c0_40 = arith.constant 0 : index
    %c0_41 = arith.constant 0 : index
    %118 = vector.load %arg7[%c0_40, %c0_41] : memref<1x128xf32, #tpu.memory_space<vmem>>, vector<1x128xf32>
    %c0_42 = arith.constant 0 : index
    %c0_43 = arith.constant 0 : index
    %119 = vector.load %arg8[%c0_42, %c0_43] : memref<1x128xf32, #tpu.memory_space<vmem>>, vector<1x128xf32>
    %cst_44 = arith.constant dense<0.000000e+00> : vector<16xf32>
    %120 = vector.multi_reduction <add>, %117, %cst_44 [1] : vector<16x128xf32> to vector<16xf32>
    %121 = vector.shape_cast %120 : vector<16xf32> to vector<16x1xf32>
    %cst_45 = arith.constant 1.280000e+02 : f32
    %122 = vector.broadcast %cst_45 : f32 to vector<16x1xf32>
    %123 = arith.divf %121, %122 : vector<16x1xf32>
    %124 = vector.broadcast %123 : vector<16x1xf32> to vector<16x128xf32>
    %125 = arith.subf %117, %124 : vector<16x128xf32>
    %126 = vector.broadcast %123 : vector<16x1xf32> to vector<16x128xf32>
    %127 = arith.subf %117, %126 : vector<16x128xf32>
    %128 = arith.mulf %125, %127 : vector<16x128xf32>
    %cst_46 = arith.constant dense<0.000000e+00> : vector<16xf32>
    %129 = vector.multi_reduction <add>, %128, %cst_46 [1] : vector<16x128xf32> to vector<16xf32>
    %130 = vector.shape_cast %129 : vector<16xf32> to vector<16x1xf32>
    %cst_47 = arith.constant 1.280000e+02 : f32
    %131 = vector.broadcast %cst_47 : f32 to vector<16x1xf32>
    %132 = arith.divf %130, %131 : vector<16x1xf32>
    %133 = vector.broadcast %123 : vector<16x1xf32> to vector<16x128xf32>
    %134 = arith.subf %117, %133 : vector<16x128xf32>
    %cst_48 = arith.constant 9.99999974E-6 : f32
    %135 = vector.broadcast %cst_48 : f32 to vector<16x1xf32>
    %136 = arith.addf %132, %135 : vector<16x1xf32>
    %137 = math.rsqrt %136 : vector<16x1xf32>
    %138 = vector.broadcast %137 : vector<16x1xf32> to vector<16x128xf32>
    %139 = arith.mulf %134, %138 : vector<16x128xf32>
    %140 = vector.broadcast %118 : vector<1x128xf32> to vector<16x128xf32>
    %141 = arith.mulf %139, %140 : vector<16x128xf32>
    %142 = vector.broadcast %119 : vector<1x128xf32> to vector<16x128xf32>
    %143 = arith.addf %141, %142 : vector<16x128xf32>
    %144 = arith.truncf %143 : vector<16x128xf32> to vector<16x128xbf16>
    %c0_49 = arith.constant 0 : index
    %c0_50 = arith.constant 0 : index
    %145 = vector.load %arg9[%c0_49, %c0_50] : memref<128x128xbf16, #tpu.memory_space<vmem>>, vector<128x128xbf16>
    %cst_51 = arith.constant dense<0.000000e+00> : vector<16x128xf32>
    %146 = tpu.matmul %144, %145, %cst_51 {dimension_numbers = #tpu.dot_dimension_numbers<[1], [0], [0], [1], [0, 0, 1, 1], [], []>} : vector<16x128xbf16>, vector<128x128xbf16>, vector<16x128xf32> -> vector<16x128xf32>
    %c0_52 = arith.constant 0 : index
    %c0_53 = arith.constant 0 : index
    %147 = vector.load %arg10[%c0_52, %c0_53] : memref<1x128xf32, #tpu.memory_space<vmem>>, vector<1x128xf32>
    %148 = vector.broadcast %147 : vector<1x128xf32> to vector<16x128xf32>
    %149 = arith.addf %146, %148 : vector<16x128xf32>
    %c0_54 = arith.constant 0 : index
    %c0_55 = arith.constant 0 : index
    %150 = vector.load %arg11[%c0_54, %c0_55] : memref<128x256xbf16, #tpu.memory_space<vmem>>, vector<128x256xbf16>
    %cst_56 = arith.constant dense<0.000000e+00> : vector<16x256xf32>
    %151 = tpu.matmul %3, %150, %cst_56 {dimension_numbers = #tpu.dot_dimension_numbers<[1], [0], [0], [1], [0, 0, 1, 1], [], []>} : vector<16x128xbf16>, vector<128x256xbf16>, vector<16x256xf32> -> vector<16x256xf32>
    %c0_57 = arith.constant 0 : index
    %c0_58 = arith.constant 0 : index
    %152 = vector.load %arg12[%c0_57, %c0_58] : memref<1x256xf32, #tpu.memory_space<vmem>>, vector<1x256xf32>
    %153 = vector.broadcast %152 : vector<1x256xf32> to vector<16x256xf32>
    %154 = arith.addf %151, %153 : vector<16x256xf32>
    %c0_59 = arith.constant 0 : index
    %c0_60 = arith.constant 0 : index
    %c0_61 = arith.constant 0 : index
    %155 = vector.load %arg23[%c0_59, %c0_60, %c0_61] : memref<1x1x16xf32, #tpu.memory_space<vmem>>, vector<1x1x16xf32>
    %156 = vector.shape_cast %155 : vector<1x1x16xf32> to vector<1x16xf32>
    %cst_62 = arith.constant 0.176776692 : f32
    %157 = vector.broadcast %cst_62 : f32 to vector<16x128xf32>
    %158 = arith.mulf %149, %157 : vector<16x128xf32>
    %159 = vector.extract_strided_slice %154 {offsets = [0, 0], sizes = [16, 128], strides = [1, 1]} : vector<16x256xf32> to vector<16x128xf32>
    %160 = vector.extract_strided_slice %154 {offsets = [0, 128], sizes = [16, 128], strides = [1, 1]} : vector<16x256xf32> to vector<16x128xf32>
    %c0_63 = arith.constant 0 : index
    %c0_64 = arith.constant 0 : index
    %161 = vector.load %arg14[%c0_63, %c0_64] : memref<1x128xf32, #tpu.memory_space<vmem>>, vector<1x128xf32>
    %cst_65 = arith.constant 0.000000e+00 : f32
    %162 = vector.broadcast %cst_65 : f32 to vector<16x128xf32>
    %163 = vector.extract_strided_slice %158 {offsets = [0, 0], sizes = [16, 32], strides = [1, 1]} : vector<16x128xf32> to vector<16x32xf32>
    %164 = arith.truncf %163 : vector<16x32xf32> to vector<16x32xbf16>
    %165 = vector.extract_strided_slice %159 {offsets = [0, 0], sizes = [16, 32], strides = [1, 1]} : vector<16x128xf32> to vector<16x32xf32>
    %166 = arith.truncf %165 : vector<16x32xf32> to vector<16x32xbf16>
    %167 = vector.extract_strided_slice %160 {offsets = [0, 0], sizes = [16, 32], strides = [1, 1]} : vector<16x128xf32> to vector<16x32xf32>
    %168 = arith.truncf %167 : vector<16x32xf32> to vector<16x32xbf16>
    %cst_66 = arith.constant dense<0.000000e+00> : vector<16x16xf32>
    %169 = tpu.matmul %164, %166, %cst_66 {dimension_numbers = #tpu.dot_dimension_numbers<[1], [1], [0], [0], [0, 0, 1, 0], [], []>} : vector<16x32xbf16>, vector<16x32xbf16>, vector<16x16xf32> -> vector<16x16xf32>
    %170 = vector.broadcast %156 : vector<1x16xf32> to vector<16x16xf32>
    %171 = arith.addf %169, %170 : vector<16x16xf32>
    %cst_67 = arith.constant dense<0xFF800000> : vector<16xf32>
    %172 = vector.multi_reduction <maximumf>, %171, %cst_67 [1] : vector<16x16xf32> to vector<16xf32>
    %173 = vector.shape_cast %172 : vector<16xf32> to vector<16x1xf32>
    %174 = vector.broadcast %173 : vector<16x1xf32> to vector<16x16xf32>
    %175 = arith.subf %171, %174 : vector<16x16xf32>
    %176 = math.exp %175 : vector<16x16xf32>
    %cst_68 = arith.constant dense<0.000000e+00> : vector<16xf32>
    %177 = vector.multi_reduction <add>, %176, %cst_68 [1] : vector<16x16xf32> to vector<16xf32>
    %178 = vector.shape_cast %177 : vector<16xf32> to vector<16x1xf32>
    %179 = vector.broadcast %178 : vector<16x1xf32> to vector<16x16xf32>
    %180 = arith.divf %176, %179 : vector<16x16xf32>
    %181 = arith.truncf %180 : vector<16x16xf32> to vector<16x16xbf16>
    %cst_69 = arith.constant dense<0.000000e+00> : vector<16x32xf32>
    %182 = tpu.matmul %181, %168, %cst_69 {dimension_numbers = #tpu.dot_dimension_numbers<[1], [0], [0], [1], [0, 0, 1, 1], [], []>} : vector<16x16xbf16>, vector<16x32xbf16>, vector<16x32xf32> -> vector<16x32xf32>
    %183 = arith.truncf %182 : vector<16x32xf32> to vector<16x32xbf16>
    %c0_70 = arith.constant 0 : index
    %c0_71 = arith.constant 0 : index
    %184 = vector.load %arg13[%c0_70, %c0_71] : memref<128x128xbf16, #tpu.memory_space<vmem>>, vector<32x128xbf16>
    %cst_72 = arith.constant dense<0.000000e+00> : vector<16x128xf32>
    %185 = tpu.matmul %183, %184, %cst_72 {dimension_numbers = #tpu.dot_dimension_numbers<[1], [0], [0], [1], [0, 0, 1, 1], [], []>} : vector<16x32xbf16>, vector<32x128xbf16>, vector<16x128xf32> -> vector<16x128xf32>
    %186 = arith.addf %162, %185 : vector<16x128xf32>
    %187 = vector.extract_strided_slice %158 {offsets = [0, 32], sizes = [16, 32], strides = [1, 1]} : vector<16x128xf32> to vector<16x32xf32>
    %188 = arith.truncf %187 : vector<16x32xf32> to vector<16x32xbf16>
    %189 = vector.extract_strided_slice %159 {offsets = [0, 32], sizes = [16, 32], strides = [1, 1]} : vector<16x128xf32> to vector<16x32xf32>
    %190 = arith.truncf %189 : vector<16x32xf32> to vector<16x32xbf16>
    %191 = vector.extract_strided_slice %160 {offsets = [0, 32], sizes = [16, 32], strides = [1, 1]} : vector<16x128xf32> to vector<16x32xf32>
    %192 = arith.truncf %191 : vector<16x32xf32> to vector<16x32xbf16>
    %cst_73 = arith.constant dense<0.000000e+00> : vector<16x16xf32>
    %193 = tpu.matmul %188, %190, %cst_73 {dimension_numbers = #tpu.dot_dimension_numbers<[1], [1], [0], [0], [0, 0, 1, 0], [], []>} : vector<16x32xbf16>, vector<16x32xbf16>, vector<16x16xf32> -> vector<16x16xf32>
    %194 = vector.broadcast %156 : vector<1x16xf32> to vector<16x16xf32>
    %195 = arith.addf %193, %194 : vector<16x16xf32>
    %cst_74 = arith.constant dense<0xFF800000> : vector<16xf32>
    %196 = vector.multi_reduction <maximumf>, %195, %cst_74 [1] : vector<16x16xf32> to vector<16xf32>
    %197 = vector.shape_cast %196 : vector<16xf32> to vector<16x1xf32>
    %198 = vector.broadcast %197 : vector<16x1xf32> to vector<16x16xf32>
    %199 = arith.subf %195, %198 : vector<16x16xf32>
    %200 = math.exp %199 : vector<16x16xf32>
    %cst_75 = arith.constant dense<0.000000e+00> : vector<16xf32>
    %201 = vector.multi_reduction <add>, %200, %cst_75 [1] : vector<16x16xf32> to vector<16xf32>
    %202 = vector.shape_cast %201 : vector<16xf32> to vector<16x1xf32>
    %203 = vector.broadcast %202 : vector<16x1xf32> to vector<16x16xf32>
    %204 = arith.divf %200, %203 : vector<16x16xf32>
    %205 = arith.truncf %204 : vector<16x16xf32> to vector<16x16xbf16>
    %cst_76 = arith.constant dense<0.000000e+00> : vector<16x32xf32>
    %206 = tpu.matmul %205, %192, %cst_76 {dimension_numbers = #tpu.dot_dimension_numbers<[1], [0], [0], [1], [0, 0, 1, 1], [], []>} : vector<16x16xbf16>, vector<16x32xbf16>, vector<16x32xf32> -> vector<16x32xf32>
    %207 = arith.truncf %206 : vector<16x32xf32> to vector<16x32xbf16>
    %c32_77 = arith.constant 32 : index
    %c0_78 = arith.constant 0 : index
    %208 = vector.load %arg13[%c32_77, %c0_78] : memref<128x128xbf16, #tpu.memory_space<vmem>>, vector<32x128xbf16>
    %cst_79 = arith.constant dense<0.000000e+00> : vector<16x128xf32>
    %209 = tpu.matmul %207, %208, %cst_79 {dimension_numbers = #tpu.dot_dimension_numbers<[1], [0], [0], [1], [0, 0, 1, 1], [], []>} : vector<16x32xbf16>, vector<32x128xbf16>, vector<16x128xf32> -> vector<16x128xf32>
    %210 = arith.addf %186, %209 : vector<16x128xf32>
    %211 = vector.extract_strided_slice %158 {offsets = [0, 64], sizes = [16, 32], strides = [1, 1]} : vector<16x128xf32> to vector<16x32xf32>
    %212 = arith.truncf %211 : vector<16x32xf32> to vector<16x32xbf16>
    %213 = vector.extract_strided_slice %159 {offsets = [0, 64], sizes = [16, 32], strides = [1, 1]} : vector<16x128xf32> to vector<16x32xf32>
    %214 = arith.truncf %213 : vector<16x32xf32> to vector<16x32xbf16>
    %215 = vector.extract_strided_slice %160 {offsets = [0, 64], sizes = [16, 32], strides = [1, 1]} : vector<16x128xf32> to vector<16x32xf32>
    %216 = arith.truncf %215 : vector<16x32xf32> to vector<16x32xbf16>
    %cst_80 = arith.constant dense<0.000000e+00> : vector<16x16xf32>
    %217 = tpu.matmul %212, %214, %cst_80 {dimension_numbers = #tpu.dot_dimension_numbers<[1], [1], [0], [0], [0, 0, 1, 0], [], []>} : vector<16x32xbf16>, vector<16x32xbf16>, vector<16x16xf32> -> vector<16x16xf32>
    %218 = vector.broadcast %156 : vector<1x16xf32> to vector<16x16xf32>
    %219 = arith.addf %217, %218 : vector<16x16xf32>
    %cst_81 = arith.constant dense<0xFF800000> : vector<16xf32>
    %220 = vector.multi_reduction <maximumf>, %219, %cst_81 [1] : vector<16x16xf32> to vector<16xf32>
    %221 = vector.shape_cast %220 : vector<16xf32> to vector<16x1xf32>
    %222 = vector.broadcast %221 : vector<16x1xf32> to vector<16x16xf32>
    %223 = arith.subf %219, %222 : vector<16x16xf32>
    %224 = math.exp %223 : vector<16x16xf32>
    %cst_82 = arith.constant dense<0.000000e+00> : vector<16xf32>
    %225 = vector.multi_reduction <add>, %224, %cst_82 [1] : vector<16x16xf32> to vector<16xf32>
    %226 = vector.shape_cast %225 : vector<16xf32> to vector<16x1xf32>
    %227 = vector.broadcast %226 : vector<16x1xf32> to vector<16x16xf32>
    %228 = arith.divf %224, %227 : vector<16x16xf32>
    %229 = arith.truncf %228 : vector<16x16xf32> to vector<16x16xbf16>
    %cst_83 = arith.constant dense<0.000000e+00> : vector<16x32xf32>
    %230 = tpu.matmul %229, %216, %cst_83 {dimension_numbers = #tpu.dot_dimension_numbers<[1], [0], [0], [1], [0, 0, 1, 1], [], []>} : vector<16x16xbf16>, vector<16x32xbf16>, vector<16x32xf32> -> vector<16x32xf32>
    %231 = arith.truncf %230 : vector<16x32xf32> to vector<16x32xbf16>
    %c64_84 = arith.constant 64 : index
    %c0_85 = arith.constant 0 : index
    %232 = vector.load %arg13[%c64_84, %c0_85] : memref<128x128xbf16, #tpu.memory_space<vmem>>, vector<32x128xbf16>
    %cst_86 = arith.constant dense<0.000000e+00> : vector<16x128xf32>
    %233 = tpu.matmul %231, %232, %cst_86 {dimension_numbers = #tpu.dot_dimension_numbers<[1], [0], [0], [1], [0, 0, 1, 1], [], []>} : vector<16x32xbf16>, vector<32x128xbf16>, vector<16x128xf32> -> vector<16x128xf32>
    %234 = arith.addf %210, %233 : vector<16x128xf32>
    %235 = vector.extract_strided_slice %158 {offsets = [0, 96], sizes = [16, 32], strides = [1, 1]} : vector<16x128xf32> to vector<16x32xf32>
    %236 = arith.truncf %235 : vector<16x32xf32> to vector<16x32xbf16>
    %237 = vector.extract_strided_slice %159 {offsets = [0, 96], sizes = [16, 32], strides = [1, 1]} : vector<16x128xf32> to vector<16x32xf32>
    %238 = arith.truncf %237 : vector<16x32xf32> to vector<16x32xbf16>
    %239 = vector.extract_strided_slice %160 {offsets = [0, 96], sizes = [16, 32], strides = [1, 1]} : vector<16x128xf32> to vector<16x32xf32>
    %240 = arith.truncf %239 : vector<16x32xf32> to vector<16x32xbf16>
    %cst_87 = arith.constant dense<0.000000e+00> : vector<16x16xf32>
    %241 = tpu.matmul %236, %238, %cst_87 {dimension_numbers = #tpu.dot_dimension_numbers<[1], [1], [0], [0], [0, 0, 1, 0], [], []>} : vector<16x32xbf16>, vector<16x32xbf16>, vector<16x16xf32> -> vector<16x16xf32>
    %242 = vector.broadcast %156 : vector<1x16xf32> to vector<16x16xf32>
    %243 = arith.addf %241, %242 : vector<16x16xf32>
    %cst_88 = arith.constant dense<0xFF800000> : vector<16xf32>
    %244 = vector.multi_reduction <maximumf>, %243, %cst_88 [1] : vector<16x16xf32> to vector<16xf32>
    %245 = vector.shape_cast %244 : vector<16xf32> to vector<16x1xf32>
    %246 = vector.broadcast %245 : vector<16x1xf32> to vector<16x16xf32>
    %247 = arith.subf %243, %246 : vector<16x16xf32>
    %248 = math.exp %247 : vector<16x16xf32>
    %cst_89 = arith.constant dense<0.000000e+00> : vector<16xf32>
    %249 = vector.multi_reduction <add>, %248, %cst_89 [1] : vector<16x16xf32> to vector<16xf32>
    %250 = vector.shape_cast %249 : vector<16xf32> to vector<16x1xf32>
    %251 = vector.broadcast %250 : vector<16x1xf32> to vector<16x16xf32>
    %252 = arith.divf %248, %251 : vector<16x16xf32>
    %253 = arith.truncf %252 : vector<16x16xf32> to vector<16x16xbf16>
    %cst_90 = arith.constant dense<0.000000e+00> : vector<16x32xf32>
    %254 = tpu.matmul %253, %240, %cst_90 {dimension_numbers = #tpu.dot_dimension_numbers<[1], [0], [0], [1], [0, 0, 1, 1], [], []>} : vector<16x16xbf16>, vector<16x32xbf16>, vector<16x32xf32> -> vector<16x32xf32>
    %255 = arith.truncf %254 : vector<16x32xf32> to vector<16x32xbf16>
    %c96_91 = arith.constant 96 : index
    %c0_92 = arith.constant 0 : index
    %256 = vector.load %arg13[%c96_91, %c0_92] : memref<128x128xbf16, #tpu.memory_space<vmem>>, vector<32x128xbf16>
    %cst_93 = arith.constant dense<0.000000e+00> : vector<16x128xf32>
    %257 = tpu.matmul %255, %256, %cst_93 {dimension_numbers = #tpu.dot_dimension_numbers<[1], [0], [0], [1], [0, 0, 1, 1], [], []>} : vector<16x32xbf16>, vector<32x128xbf16>, vector<16x128xf32> -> vector<16x128xf32>
    %258 = arith.addf %234, %257 : vector<16x128xf32>
    %259 = vector.broadcast %161 : vector<1x128xf32> to vector<16x128xf32>
    %260 = arith.addf %258, %259 : vector<16x128xf32>
    %261 = arith.addf %260, %143 : vector<16x128xf32>
    %c0_94 = arith.constant 0 : index
    %c0_95 = arith.constant 0 : index
    %262 = vector.load %arg15[%c0_94, %c0_95] : memref<1x128xf32, #tpu.memory_space<vmem>>, vector<1x128xf32>
    %c0_96 = arith.constant 0 : index
    %c0_97 = arith.constant 0 : index
    %263 = vector.load %arg16[%c0_96, %c0_97] : memref<1x128xf32, #tpu.memory_space<vmem>>, vector<1x128xf32>
    %cst_98 = arith.constant dense<0.000000e+00> : vector<16xf32>
    %264 = vector.multi_reduction <add>, %261, %cst_98 [1] : vector<16x128xf32> to vector<16xf32>
    %265 = vector.shape_cast %264 : vector<16xf32> to vector<16x1xf32>
    %cst_99 = arith.constant 1.280000e+02 : f32
    %266 = vector.broadcast %cst_99 : f32 to vector<16x1xf32>
    %267 = arith.divf %265, %266 : vector<16x1xf32>
    %268 = vector.broadcast %267 : vector<16x1xf32> to vector<16x128xf32>
    %269 = arith.subf %261, %268 : vector<16x128xf32>
    %270 = vector.broadcast %267 : vector<16x1xf32> to vector<16x128xf32>
    %271 = arith.subf %261, %270 : vector<16x128xf32>
    %272 = arith.mulf %269, %271 : vector<16x128xf32>
    %cst_100 = arith.constant dense<0.000000e+00> : vector<16xf32>
    %273 = vector.multi_reduction <add>, %272, %cst_100 [1] : vector<16x128xf32> to vector<16xf32>
    %274 = vector.shape_cast %273 : vector<16xf32> to vector<16x1xf32>
    %cst_101 = arith.constant 1.280000e+02 : f32
    %275 = vector.broadcast %cst_101 : f32 to vector<16x1xf32>
    %276 = arith.divf %274, %275 : vector<16x1xf32>
    %277 = vector.broadcast %267 : vector<16x1xf32> to vector<16x128xf32>
    %278 = arith.subf %261, %277 : vector<16x128xf32>
    %cst_102 = arith.constant 9.99999974E-6 : f32
    %279 = vector.broadcast %cst_102 : f32 to vector<16x1xf32>
    %280 = arith.addf %276, %279 : vector<16x1xf32>
    %281 = math.rsqrt %280 : vector<16x1xf32>
    %282 = vector.broadcast %281 : vector<16x1xf32> to vector<16x128xf32>
    %283 = arith.mulf %278, %282 : vector<16x128xf32>
    %284 = vector.broadcast %262 : vector<1x128xf32> to vector<16x128xf32>
    %285 = arith.mulf %283, %284 : vector<16x128xf32>
    %286 = vector.broadcast %263 : vector<1x128xf32> to vector<16x128xf32>
    %287 = arith.addf %285, %286 : vector<16x128xf32>
    %288 = arith.truncf %287 : vector<16x128xf32> to vector<16x128xbf16>
    %c0_103 = arith.constant 0 : index
    %c0_104 = arith.constant 0 : index
    %289 = vector.load %arg17[%c0_103, %c0_104] : memref<128x256xbf16, #tpu.memory_space<vmem>>, vector<128x256xbf16>
    %cst_105 = arith.constant dense<0.000000e+00> : vector<16x256xf32>
    %290 = tpu.matmul %288, %289, %cst_105 {dimension_numbers = #tpu.dot_dimension_numbers<[1], [0], [0], [1], [0, 0, 1, 1], [], []>} : vector<16x128xbf16>, vector<128x256xbf16>, vector<16x256xf32> -> vector<16x256xf32>
    %c0_106 = arith.constant 0 : index
    %c0_107 = arith.constant 0 : index
    %291 = vector.load %arg18[%c0_106, %c0_107] : memref<1x256xf32, #tpu.memory_space<vmem>>, vector<1x256xf32>
    %292 = vector.broadcast %291 : vector<1x256xf32> to vector<16x256xf32>
    %293 = arith.addf %290, %292 : vector<16x256xf32>
    %cst_108 = arith.constant 5.000000e-01 : f32
    %294 = vector.broadcast %cst_108 : f32 to vector<16x256xf32>
    %295 = arith.mulf %294, %293 : vector<16x256xf32>
    %cst_109 = arith.constant 4.471500e-02 : f32
    %296 = vector.broadcast %cst_109 : f32 to vector<16x256xf32>
    %297 = arith.mulf %296, %293 : vector<16x256xf32>
    %298 = arith.mulf %297, %293 : vector<16x256xf32>
    %299 = arith.mulf %298, %293 : vector<16x256xf32>
    %300 = arith.addf %293, %299 : vector<16x256xf32>
    %cst_110 = arith.constant 0.797884583 : f32
    %301 = vector.broadcast %cst_110 : f32 to vector<16x256xf32>
    %302 = arith.mulf %301, %300 : vector<16x256xf32>
    %303 = math.tanh %302 : vector<16x256xf32>
    %cst_111 = arith.constant 1.000000e+00 : f32
    %304 = vector.broadcast %cst_111 : f32 to vector<16x256xf32>
    %305 = arith.addf %304, %303 : vector<16x256xf32>
    %306 = arith.mulf %295, %305 : vector<16x256xf32>
    %307 = arith.truncf %306 : vector<16x256xf32> to vector<16x256xbf16>
    %c0_112 = arith.constant 0 : index
    %c0_113 = arith.constant 0 : index
    %308 = vector.load %arg19[%c0_112, %c0_113] : memref<256x128xbf16, #tpu.memory_space<vmem>>, vector<256x128xbf16>
    %cst_114 = arith.constant dense<0.000000e+00> : vector<16x128xf32>
    %309 = tpu.matmul %307, %308, %cst_114 {dimension_numbers = #tpu.dot_dimension_numbers<[1], [0], [0], [1], [0, 0, 1, 1], [], []>} : vector<16x256xbf16>, vector<256x128xbf16>, vector<16x128xf32> -> vector<16x128xf32>
    %c0_115 = arith.constant 0 : index
    %c0_116 = arith.constant 0 : index
    %310 = vector.load %arg20[%c0_115, %c0_116] : memref<1x128xf32, #tpu.memory_space<vmem>>, vector<1x128xf32>
    %311 = vector.broadcast %310 : vector<1x128xf32> to vector<16x128xf32>
    %312 = arith.addf %309, %311 : vector<16x128xf32>
    %313 = arith.addf %312, %287 : vector<16x128xf32>
    %c0_117 = arith.constant 0 : index
    %c0_118 = arith.constant 0 : index
    %314 = vector.load %arg21[%c0_117, %c0_118] : memref<1x128xf32, #tpu.memory_space<vmem>>, vector<1x128xf32>
    %c0_119 = arith.constant 0 : index
    %c0_120 = arith.constant 0 : index
    %315 = vector.load %arg22[%c0_119, %c0_120] : memref<1x128xf32, #tpu.memory_space<vmem>>, vector<1x128xf32>
    %cst_121 = arith.constant dense<0.000000e+00> : vector<16xf32>
    %316 = vector.multi_reduction <add>, %313, %cst_121 [1] : vector<16x128xf32> to vector<16xf32>
    %317 = vector.shape_cast %316 : vector<16xf32> to vector<16x1xf32>
    %cst_122 = arith.constant 1.280000e+02 : f32
    %318 = vector.broadcast %cst_122 : f32 to vector<16x1xf32>
    %319 = arith.divf %317, %318 : vector<16x1xf32>
    %320 = vector.broadcast %319 : vector<16x1xf32> to vector<16x128xf32>
    %321 = arith.subf %313, %320 : vector<16x128xf32>
    %322 = vector.broadcast %319 : vector<16x1xf32> to vector<16x128xf32>
    %323 = arith.subf %313, %322 : vector<16x128xf32>
    %324 = arith.mulf %321, %323 : vector<16x128xf32>
    %cst_123 = arith.constant dense<0.000000e+00> : vector<16xf32>
    %325 = vector.multi_reduction <add>, %324, %cst_123 [1] : vector<16x128xf32> to vector<16xf32>
    %326 = vector.shape_cast %325 : vector<16xf32> to vector<16x1xf32>
    %cst_124 = arith.constant 1.280000e+02 : f32
    %327 = vector.broadcast %cst_124 : f32 to vector<16x1xf32>
    %328 = arith.divf %326, %327 : vector<16x1xf32>
    %329 = vector.broadcast %319 : vector<16x1xf32> to vector<16x128xf32>
    %330 = arith.subf %313, %329 : vector<16x128xf32>
    %cst_125 = arith.constant 9.99999974E-6 : f32
    %331 = vector.broadcast %cst_125 : f32 to vector<16x1xf32>
    %332 = arith.addf %328, %331 : vector<16x1xf32>
    %333 = math.rsqrt %332 : vector<16x1xf32>
    %334 = vector.broadcast %333 : vector<16x1xf32> to vector<16x128xf32>
    %335 = arith.mulf %330, %334 : vector<16x128xf32>
    %336 = vector.broadcast %314 : vector<1x128xf32> to vector<16x128xf32>
    %337 = arith.mulf %335, %336 : vector<16x128xf32>
    %338 = vector.broadcast %315 : vector<1x128xf32> to vector<16x128xf32>
    %339 = arith.addf %337, %338 : vector<16x128xf32>
    %340 = arith.truncf %339 : vector<16x128xf32> to vector<16x128xbf16>
    %c0_126 = arith.constant 0 : index
    %c0_127 = arith.constant 0 : index
    %c0_128 = arith.constant 0 : index
    %341 = vector.load %arg24[%c0_126, %c0_127, %c0_128] : memref<1x16x128xbf16, #tpu.memory_space<vmem>>, vector<1x16x128xbf16>
    %342 = vector.shape_cast %341 : vector<1x16x128xbf16> to vector<16x128xbf16>
    %343 = vector.shape_cast %340 : vector<16x128xbf16> to vector<1x16x128xbf16>
    tpu.vector_store %arg24[%c0_126, %c0_127, %c0_128], %343 {strides = array<i32>} : memref<1x16x128xbf16, #tpu.memory_space<vmem>>, vector<1x16x128xbf16>,
    return
  }
  func.func @transform_0(%arg0: i32) -> (i32, i32, i32) {
    %c0_i32 = arith.constant 0 : i32
    %c0_i32_0 = arith.constant 0 : i32
    %c0_i32_1 = arith.constant 0 : i32
    return %arg0, %c0_i32, %c0_i32_0 : i32, i32, i32
  }
  func.func @transform_1(%arg0: i32) -> (i32, i32, i32) {
    %c0_i32 = arith.constant 0 : i32
    %c0_i32_0 = arith.constant 0 : i32
    %c0_i32_1 = arith.constant 0 : i32
    return %arg0, %c0_i32, %c0_i32_0 : i32, i32, i32
  }
  func.func @transform_2(%arg0: i32) -> (i32, i32) {
    %c0_i32 = arith.constant 0 : i32
    %c0_i32_0 = arith.constant 0 : i32
    %c0_i32_1 = arith.constant 0 : i32
    return %c0_i32, %c0_i32_0 : i32, i32
  }
  func.func @transform_3(%arg0: i32) -> (i32, i32) {
    %c0_i32 = arith.constant 0 : i32
    %c0_i32_0 = arith.constant 0 : i32
    %c0_i32_1 = arith.constant 0 : i32
    return %c0_i32, %c0_i32_0 : i32, i32
  }
  func.func @transform_4(%arg0: i32) -> (i32, i32) {
    %c0_i32 = arith.constant 0 : i32
    %c0_i32_0 = arith.constant 0 : i32
    %c0_i32_1 = arith.constant 0 : i32
    return %c0_i32, %c0_i32_0 : i32, i32
  }
  func.func @transform_5(%arg0: i32) -> (i32, i32) {
    %c0_i32 = arith.constant 0 : i32
    %c0_i32_0 = arith.constant 0 : i32
    %c0_i32_1 = arith.constant 0 : i32
    return %c0_i32, %c0_i32_0 : i32, i32
  }
  func.func @transform_6(%arg0: i32) -> (i32, i32) {
    %c0_i32 = arith.constant 0 : i32
    %c0_i32_0 = arith.constant 0 : i32
    %c0_i32_1 = arith.constant 0 : i32
    return %c0_i32, %c0_i32_0 : i32, i32
  }
  func.func @transform_7(%arg0: i32) -> (i32, i32) {
    %c0_i32 = arith.constant 0 : i32
    %c0_i32_0 = arith.constant 0 : i32
    %c0_i32_1 = arith.constant 0 : i32
    return %c0_i32, %c0_i32_0 : i32, i32
  }
  func.func @transform_8(%arg0: i32) -> (i32, i32) {
    %c0_i32 = arith.constant 0 : i32
    %c0_i32_0 = arith.constant 0 : i32
    %c0_i32_1 = arith.constant 0 : i32
    return %c0_i32, %c0_i32_0 : i32, i32
  }
  func.func @transform_9(%arg0: i32) -> (i32, i32) {
    %c0_i32 = arith.constant 0 : i32
    %c0_i32_0 = arith.constant 0 : i32
    %c0_i32_1 = arith.constant 0 : i32
    return %c0_i32, %c0_i32_0 : i32, i32
  }
  func.func @transform_10(%arg0: i32) -> (i32, i32) {
    %c0_i32 = arith.constant 0 : i32
    %c0_i32_0 = arith.constant 0 : i32
    %c0_i32_1 = arith.constant 0 : i32
    return %c0_i32, %c0_i32_0 : i32, i32
  }
  func.func @transform_11(%arg0: i32) -> (i32, i32) {
    %c0_i32 = arith.constant 0 : i32
    %c0_i32_0 = arith.constant 0 : i32
    %c0_i32_1 = arith.constant 0 : i32
    return %c0_i32, %c0_i32_0 : i32, i32
  }
  func.func @transform_12(%arg0: i32) -> (i32, i32) {
    %c0_i32 = arith.constant 0 : i32
    %c0_i32_0 = arith.constant 0 : i32
    %c0_i32_1 = arith.constant 0 : i32
    return %c0_i32, %c0_i32_0 : i32, i32
  }
  func.func @transform_13(%arg0: i32) -> (i32, i32) {
    %c0_i32 = arith.constant 0 : i32
    %c0_i32_0 = arith.constant 0 : i32
    %c0_i32_1 = arith.constant 0 : i32
    return %c0_i32, %c0_i32_0 : i32, i32
  }
  func.func @transform_14(%arg0: i32) -> (i32, i32) {
    %c0_i32 = arith.constant 0 : i32
    %c0_i32_0 = arith.constant 0 : i32
    %c0_i32_1 = arith.constant 0 : i32
    return %c0_i32, %c0_i32_0 : i32, i32
  }
  func.func @transform_15(%arg0: i32) -> (i32, i32) {
    %c0_i32 = arith.constant 0 : i32
    %c0_i32_0 = arith.constant 0 : i32
    %c0_i32_1 = arith.constant 0 : i32
    return %c0_i32, %c0_i32_0 : i32, i32
  }
  func.func @transform_16(%arg0: i32) -> (i32, i32) {
    %c0_i32 = arith.constant 0 : i32
    %c0_i32_0 = arith.constant 0 : i32
    %c0_i32_1 = arith.constant 0 : i32
    return %c0_i32, %c0_i32_0 : i32, i32
  }
  func.func @transform_17(%arg0: i32) -> (i32, i32) {
    %c0_i32 = arith.constant 0 : i32
    %c0_i32_0 = arith.constant 0 : i32
    %c0_i32_1 = arith.constant 0 : i32
    return %c0_i32, %c0_i32_0 : i32, i32
  }
  func.func @transform_18(%arg0: i32) -> (i32, i32) {
    %c0_i32 = arith.constant 0 : i32
    %c0_i32_0 = arith.constant 0 : i32
    %c0_i32_1 = arith.constant 0 : i32
    return %c0_i32, %c0_i32_0 : i32, i32
  }
  func.func @transform_19(%arg0: i32) -> (i32, i32) {
    %c0_i32 = arith.constant 0 : i32
    %c0_i32_0 = arith.constant 0 : i32
    %c0_i32_1 = arith.constant 0 : i32
    return %c0_i32, %c0_i32_0 : i32, i32
  }
  func.func @transform_20(%arg0: i32) -> (i32, i32) {
    %c0_i32 = arith.constant 0 : i32
    %c0_i32_0 = arith.constant 0 : i32
    %c0_i32_1 = arith.constant 0 : i32
    return %c0_i32, %c0_i32_0 : i32, i32
  }
  func.func @transform_21(%arg0: i32) -> (i32, i32) {
    %c0_i32 = arith.constant 0 : i32
    %c0_i32_0 = arith.constant 0 : i32
    %c0_i32_1 = arith.constant 0 : i32
    return %c0_i32, %c0_i32_0 : i32, i32
  }
  func.func @transform_22(%arg0: i32) -> (i32, i32, i32) {
    %c0_i32 = arith.constant 0 : i32
    %c0_i32_0 = arith.constant 0 : i32
    %c0_i32_1 = arith.constant 0 : i32
    return %arg0, %c0_i32, %c0_i32_0 : i32, i32, i32
  }
  func.func @transform_23(%arg0: i32) -> (i32, i32, i32) {
    %c0_i32 = arith.constant 0 : i32
    %c0_i32_0 = arith.constant 0 : i32
    %c0_i32_1 = arith.constant 0 : i32
    return %arg0, %c0_i32, %c0_i32_0 : i32, i32, i32
  }
}

</mosaic_0001>

<bundles_post_ra>
// kernel: fcbart_forward.7
= control target key start
LH: loop header
LB: loop body
LE: loop exit
PB: predicated region body
PF: predicated region fallthrough
CT: control target
= control target key end

     0   :  { %s441_s15 = smov 0   ;;  %s472_s0 = inlined_call_operand.vmem [shape: bf16[32,128], index: 0, kind: input, shape index: {}]   ;;  %s473_s1 = inlined_call_operand.vmem [shape: bf16[32,128], index: 1, kind: input, shape index: {}]   ;;  %s474_s2 = inlined_call_operand.vmem [shape: f32[1,128], index: 2, kind: input, shape index: {}]   ;;  %s475_s3 = inlined_call_operand.vmem [shape: f32[1,128], index: 3, kind: input, shape index: {}]   ;;  %s476_s4 = inlined_call_operand.vmem [shape: bf16[32,128], index: 4, kind: output, shape index: {}]  }
   0x1 LB: > { %s364_s16 = sadd.s32 4294967295, %s413_s15   ;;  %p368_p0 = scmp.ge.s32.totalorder %s413_s15, 1  ;;  %s413_s15 = sphi %s441_s15, %s14_s15  }
   0x2   : > { %p174_p1 = scmp.lt.s32.totalorder %s413_s15, 3 }
   0x4   : > { %p175_p2 = pnand %p368_p0, %p174_p1 }
   0x5   : > { %s369_s17 = sshll.u32 (!%p175_p2), %s364_s16, 1 }
   0x6   : > { %178 = sbr.rel (%p175_p2) target bundleno = 297 (0x129), region = 36  ;;  %p206_p3 = scmp.lt.s32.totalorder (!%p175_p2), %s369_s17, 3 }
   0xb   : > { %s478_s17 = smov (!%p206_p3, %s369_s17), 3  ;;  %v415_v8 = vmov 128.0   ;;  %v399_v41 = vld [vmem:[%s474_s2] ss:$0 sm:$0xff] }
   0xc   : > { %s449_s18 = sshll.u32 %s478_s17, 2  ;;  %401 = vrcp.f32 %v415_v8  ;;  %v400_v45 = vld [vmem:[%s475_s3] ss:$0 sm:$0xff] }
   0xd   : > { %s209_s21 = scalar_lea.vmem %s472_s0, %s449_s18  ;;  %s215_s24 = scalar_lea.vmem %s473_s1, %s449_s18 }
   0xe   : > { %v378_v0 = vld [vmem:[%s209_s21] sm:$0xff]   ;;  %s221_s5 = scalar_lea.vmem %s476_s4, %s449_s18 }
   0xf   : > { %v382_v1 = vld [vmem:[%s215_s24] sm:$0xff]   ;;  %v379_v2 = vunpack.c.l.bf16 %v378_v0  ;;  %v380_v5 = vunpack.c.h.bf16 %v378_v0 }
  0x10   : > { %v383_v3 = vunpack.c.l.bf16 %v382_v1  ;;  %v384_v6 = vunpack.c.h.bf16 %v382_v1 }
  0x12   : > { %v231_v4 = vadd.f32 %v383_v3, %v379_v2  ;;  %v232_v7 = vadd.f32 %v384_v6, %v380_v5  ;;  %v402_v9 = vpop.eup %401 }
  0x13   : > { %v240_v10 = vmul.f32 128.0, %v402_v9  ;;  %vm244_vm0 = vweird.f32 %v402_v9 }
  0x14   : > { %235 = vadd.xlane.f32.xlu0 %v231_v4 }
  0x15   : > { %v241_v11 = vsub.f32 1.0, %v240_v10 }
  0x17   : > { %v242_v12 = vmul.f32 %v402_v9, %v241_v11 }
  0x19   : > { %v243_v13 = vadd.f32 %v402_v9, %v242_v12 }
  0x1b   : > { %v245_v14 = vsel %vm244_vm0, %v402_v9, %v243_v13 }
  0x1c   : > { %237 = vadd.xlane.f32.xlu0 %v232_v7 }
  0x87   : > { %v236_v15 = vpop.xlane.xlu0 %235 }
  0x88   : > { %v246_v16 = vmul.f32 %v245_v14, %v236_v15 }
  0x8a   : > { %v248_v17 = vsub.f32 %v231_v4, %v246_v16 }
  0x8c   : > { %v250_v18 = vmul.f32 %v248_v17, %v248_v17 }
  0x8e   : > { %252 = vadd.xlane.f32.xlu1 %v250_v18 }
  0x8f   : > { %v238_v19 = vpop.xlane.xlu0 %237 }
  0x90   : > { %v247_v20 = vmul.f32 %v245_v14, %v238_v19 }
  0x92   : > { %v249_v21 = vsub.f32 %v232_v7, %v247_v20 }
  0x94   : > { %v251_v22 = vmul.f32 %v249_v21, %v249_v21 }
  0x96   : > { %254 = vadd.xlane.f32.xlu1 %v251_v22 }
 0x101   : > { %v253_v23 = vpop.xlane.xlu1 %252 }
 0x102   : > { %v256_v24 = vmul.f32 %v253_v23, %v245_v14 }
 0x104   : > { %v258_v25 = vadd.f32 1e-05, %v256_v24 }
 0x106   : > { %403 = vrsqrt.f32 %v258_v25  ;;  %vm266_vm2 = vweird.f32 %v258_v25 }
 0x109   : > { %v255_v26 = vpop.xlane.xlu1 %254 }
 0x10a   : > { %v257_v27 = vmul.f32 %v255_v26, %v245_v14 }
 0x10c   : > { %v404_v28 = vpop.eup %403  ;;  %v259_v29 = vadd.f32 1e-05, %v257_v27 }
 0x10d   : > { %v261_v30 = vmul.f32 %v404_v28, %v258_v25  ;;  %vm267_vm1 = vweird.f32 %v404_v28 }
 0x10e   : > { %405 = vrsqrt.f32 %v259_v29  ;;  %vm268_vm3 = vmor %vm266_vm2, %vm267_vm1  ;;  %vm276_vm5 = vweird.f32 %v259_v29 }
 0x10f   : > { %v262_v31 = vmul.f32 %v404_v28, %v261_v30 }
 0x111   : > { %v263_v32 = vmul.f32 0.5, %v262_v31 }
 0x113   : > { %v264_v33 = vsub.f32 1.5, %v263_v32 }
 0x114   : > { %v406_v34 = vpop.eup %405 }
 0x115   : > { %v265_v35 = vmul.f32 %v404_v28, %v264_v33  ;;  %v271_v36 = vmul.f32 %v406_v34, %v259_v29  ;;  %vm277_vm4 = vweird.f32 %v406_v34 }
 0x116   : > { %vm278_vm6 = vmor %vm276_vm5, %vm277_vm4 }
 0x117   : > { %v272_v37 = vmul.f32 %v406_v34, %v271_v36  ;;  %v269_v38 = vsel %vm268_vm3, %v404_v28, %v265_v35 }
 0x118   : > { %v280_v42 = vmul.f32 %v269_v38, %v248_v17 }
 0x119   : > { %v273_v39 = vmul.f32 0.5, %v272_v37 }
 0x11a   : > { %v285_v46 = vmul.f32 %v399_v41, %v280_v42 }
 0x11b   : > { %v274_v40 = vsub.f32 1.5, %v273_v39 }
 0x11c   : > { %v290_v49 = vadd.f32 %v400_v45, %v285_v46 }
 0x11d   : > { %v275_v43 = vmul.f32 %v406_v34, %v274_v40 }
 0x11f   : > { %v279_v44 = vsel %vm278_vm6, %v406_v34, %v275_v43 }
 0x120   : > { %v281_v47 = vmul.f32 %v279_v44, %v249_v21 }
 0x122   : > { %v286_v48 = vmul.f32 %v399_v41, %v281_v47 }
 0x124   : > { %v291_v50 = vadd.f32 %v400_v45, %v286_v48 }
 0x126   : > { %v388_v51 = vpack.c.bf16 %v291_v50, %v290_v49 }
 0x128   : > { %389 = vst [vmem:[%s221_s5] sm:$0xff] %v388_v51  }
 0x129 PF: > { %s14_s15 = sadd.s32 1, %s413_s15  }
 0x12a   : > { %p11_p4 = scmp.ge.s32.totalorder %s14_s15, 4  }
 0x12c   :  { %13 = sbr.rel (!%p11_p4) target bundleno = 1 (0x1), region = 69 }

// kernel: fcbart_forward.9
= control target key start
LH: loop header
LB: loop body
LE: loop exit
PB: predicated region body
PF: predicated region fallthrough
CT: control target
= control target key end

     0   :  { %9 = vsyncpa [#allocation8], 0  ;;  %s1341_s0 = inlined_call_operand.vmem [shape: bf16[32,128], index: 0, kind: input, shape index: {}]   ;;  %s1342_s1 = inlined_call_operand.hbm [shape: bf16[128,512], index: 1, kind: input, shape index: {}]   ;;  %s1343_s2 = inlined_call_operand.vmem [shape: f32[1,512], index: 2, kind: input, shape index: {}]   ;;  %s1344_s3 = inlined_call_operand.vmem [shape: s32[32,1], index: 3, kind: input, shape index: {}]   ;;  %s1345_s4 = inlined_call_operand.hbm [shape: f32[1,1], index: 4, kind: output, shape index: {}]  }
   0x1   :  { %10 = vsyncpa [#allocation9], 0  ;;  %s1233_s15 = smov 0   ;;  %s1235_s16 = smov 0  }
   0x2   :  { %s1237_s17 = smov 0  }
   0x3 LB: > { %s847_s18 = sadd.s32 4294967295, %s1198_s17   ;;  %s28_s19 = sadd.s32 1, %s1194_s16  ;;  %s1198_s17 = sphi %s1237_s17, %s16_s17   ;;  %s1194_s16 = sphi %s1235_s16, %s1347_s16   ;;  %s1190_s15 = sphi %s1233_s15, %s1346_s15  }
   0x4   : > { %p30_p0 = scmp.ge.s32.totalorder %s28_s19, 2  ;;  %p848_p1 = scmp.ge.s32.totalorder %s1198_s17, 1 }
   0x5   : > { %p158_p2 = scmp.lt.s32.totalorder %s1198_s17, 3  ;;  %p1045_p4 = scmp.eq.s32.totalorder %s847_s18, 0 }
   0x6   : > { %s1349_s19 = smov (%p30_p0, %s28_s19), 0  ;;  %s172_s22 = sshll.u32 %s1342_s1, 4  ;;  %s173_s22 = int_to_ptr.hbm [resolvable:$true] %s172_s22 }
   0x7   : > { %p159_p3 = pnand %p848_p1, %p158_p2  ;;  %s1200_s23 = smov [#allocation7]  }
   0x8   : > { %s174_s24 = sshll.u32 %s1200_s23, 4  ;;  %s1201_s25 = smov 256   ;;  %s175_s24 = int_to_ptr.vmem [resolvable:$true] %s174_s24 }
   0x9   : > { %p1041_p5 = pneg %p159_p3  ;;  %s1202_s26 = smov 16  }
   0xa   : > { %216 = sbr.rel (%p159_p3) target bundleno = 632 (0x278), region = 36 }
   0xb   : > { %p1042_p6 = pnand %p1045_p4, %p1041_p5 }
   0xd   : > { %1044 = dma.hbm_to_vmem [thread:$0]  (!%p1042_p6), %s173_s22, 4096, %s175_s24, [#allocation8], %s1201_s25, %s1201_s25, %s1202_s26  }
   0xf   : > { %1181 = dma.done.wait (%p1045_p4), [#allocation8], 4096  }
  0x10   : > { %1183 = vsyncadd (%p1045_p4), [#allocation8], 4294963200  ;;  %s854_s27 = sshll.u32 %s1190_s15, 1  ;;  %p265_p7 = scmp.eq.s32.totalorder %s1190_s15, 0 }
  0x11   : > { %p248_p8 = scmp.lt.s32.totalorder %s854_s27, 3  ;;  %vm271_vm0 = vcmask (%p265_p7), 0   ;;  %v1203_v0 = vmov (%p265_p7), 0.0  }
  0x12   : > { %270 = sbr.rel (!%p265_p7) target bundleno = 23 (0x17), region = 44  ;;  %272 = vst.msk [vmem:[#allocation5] sm:$0x1] (%p265_p7), %vm271_vm0, %v1203_v0 }
  0x13   : > { %s1351_s27 = smov (!%p248_p8, %s854_s27), 3  ;;  %273 = vst.msk [vmem:[#allocation6] sm:$0x1] (%p265_p7), %vm271_vm0, %v1203_v0 }
  0x14   : > { %s855_s28 = sshll.u32 %s1351_s27, 2  ;;  %s857_s29 = sshll.u32 %s1351_s27, 3  ;;  %274 = vst.msk [vmem:[#allocation10] sm:$0x1] (%p265_p7), %vm271_vm0, %v1203_v0 }
  0x15   : > { %s1264_s6 = scalar_lea.vmem %s1341_s0, %s855_s28  ;;  %s1269_s9 = scalar_lea.vmem %s1344_s3, %s857_s29 }
  0x17 PF: > { %v977_v1 = vld [vmem:[#allocation7 + $0xe0] sm:$0xf]  ;;  %v1030_v2 = vld [vmem:[#allocation7 + $0xec] sm:$0xf0]  ;;  %v1028_v3 = vld [vmem:[#allocation7 + $0xe4] sm:$0xf] }
  0x18   : > { %v978_v4 = vor.u32 %v1030_v2, %v977_v1  ;;  %v979_v5 = vld [vmem:[#allocation7 + $0xf0] sm:$0xf0]  ;;  %v985_v6 = vld [vmem:[#allocation7 + $0xe8] sm:$0xf]  ;;  %v1031_v7 = vld [vmem:[#allocation7 + $0xf4] sm:$0xf0] }
  0x19   : > { %v982_v8 = vor.u32 %v1028_v3, %v979_v5  ;;  %v986_v9 = vor.u32 %v1031_v7, %v985_v6  ;;  %v1029_v10 = vld [vmem:[#allocation7 + $0xec] sm:$0xf]  ;;  %v987_v11 = vld [vmem:[#allocation7 + $0xf8] sm:$0xf0]  ;;  %v961_v12 = vld [vmem:[#allocation7 + $0xc0] sm:$0xf] }
  0x1a   : > { %495 = vmatpush.bf16.msra.mxu0 %v978_v4  ;;  %v990_v13 = vor.u32 %v1029_v10, %v987_v11  ;;  %v1026_v14 = vld [vmem:[#allocation7 + $0xcc] sm:$0xf0]  ;;  %v1024_v15 = vld [vmem:[#allocation7 + $0xc4] sm:$0xf]  ;;  %v963_v16 = vld [vmem:[#allocation7 + $0xd0] sm:$0xf0] }
  0x1b   : > { %509 = vmatpush.bf16.msra.mxu1 %v982_v8  ;;  %523 = vmatpush.bf16.msra.mxu2 %v986_v9  ;;  %v962_v17 = vor.u32 %v1026_v14, %v961_v12  ;;  %v966_v18 = vor.u32 %v1024_v15, %v963_v16  ;;  %v969_v19 = vld [vmem:[#allocation7 + $0xc8] sm:$0xf]  ;;  %v1027_v20 = vld [vmem:[#allocation7 + $0xd4] sm:$0xf0]  ;;  %v1025_v21 = vld [vmem:[#allocation7 + $0xcc] sm:$0xf] }
  0x1c   : > { %537 = vmatpush.bf16.msra.mxu3 %v990_v13  ;;  %v970_v22 = vor.u32 %v1027_v20, %v969_v19  ;;  %v971_v23 = vld [vmem:[#allocation7 + $0xd8] sm:$0xf0]  ;;  %v945_v24 = vld [vmem:[#allocation7 + $0xa0] sm:$0xf]  ;;  %v1022_v25 = vld [vmem:[#allocation7 + $0xac] sm:$0xf0] }
  0x1d   : > { %v974_v26 = vor.u32 %v1025_v21, %v971_v23  ;;  %v1020_v27 = vld [vmem:[#allocation7 + $0xa4] sm:$0xf]  ;;  %v947_v28 = vld [vmem:[#allocation7 + $0xb0] sm:$0xf0]  ;;  %v953_v29 = vld [vmem:[#allocation7 + $0xa8] sm:$0xf]  ;;  %v946_v30 = vor.u32 %v1022_v25, %v945_v24 }
  0x1e   : > { %496 = vmatpush.bf16.msra.mxu0 %v962_v17  ;;  %v1023_v31 = vld [vmem:[#allocation7 + $0xb4] sm:$0xf0]  ;;  %v1021_v32 = vld [vmem:[#allocation7 + $0xac] sm:$0xf]  ;;  %v955_v33 = vld [vmem:[#allocation7 + $0xb8] sm:$0xf0]  ;;  %v950_v34 = vor.u32 %v1020_v27, %v947_v28 }
  0x1f   : > { %510 = vmatpush.bf16.msra.mxu1 %v966_v18  ;;  %524 = vmatpush.bf16.msra.mxu2 %v970_v22  ;;  %v954_v35 = vor.u32 %v1023_v31, %v953_v29  ;;  %v929_v36 = vld [vmem:[#allocation7 + $0x80] sm:$0xf]  ;;  %v1018_v37 = vld [vmem:[#allocation7 + $0x8c] sm:$0xf0]  ;;  %v1016_v38 = vld [vmem:[#allocation7 + $0x84] sm:$0xf]  ;;  %v958_v39 = vor.u32 %v1021_v32, %v955_v33 }
  0x20   : > { %538 = vmatpush.bf16.msra.mxu3 %v974_v26  ;;  %v931_v40 = vld [vmem:[#allocation7 + $0x90] sm:$0xf0]  ;;  %v937_v41 = vld [vmem:[#allocation7 + $0x88] sm:$0xf]  ;;  %v1019_v42 = vld [vmem:[#allocation7 + $0x94] sm:$0xf0]  ;;  %v930_v45 = vor.u32 %v1018_v37, %v929_v36 }
  0x21   : > { %v1017_v43 = vld [vmem:[#allocation7 + $0x8c] sm:$0xf]  ;;  %v939_v44 = vld [vmem:[#allocation7 + $0x98] sm:$0xf0]  ;;  %v934_v46 = vor.u32 %v1016_v38, %v931_v40  ;;  %v938_v47 = vor.u32 %v1019_v42, %v937_v41  ;;  %v913_v48 = vld [vmem:[#allocation7 + $0x60] sm:$0xf] }
  0x22   : > { %497 = vmatpush.bf16.msra.mxu0 %v946_v30  ;;  %v1014_v49 = vld [vmem:[#allocation7 + $0x6c] sm:$0xf0]  ;;  %v1012_v50 = vld [vmem:[#allocation7 + $0x64] sm:$0xf]  ;;  %v942_v51 = vor.u32 %v1017_v43, %v939_v44  ;;  %v915_v52 = vld [vmem:[#allocation7 + $0x70] sm:$0xf0] }
  0x23   : > { %511 = vmatpush.bf16.msra.mxu1 %v950_v34  ;;  %525 = vmatpush.bf16.msra.mxu2 %v954_v35  ;;  %v921_v53 = vld [vmem:[#allocation7 + $0x68] sm:$0xf]  ;;  %v1015_v54 = vld [vmem:[#allocation7 + $0x74] sm:$0xf0]  ;;  %v1013_v55 = vld [vmem:[#allocation7 + $0x6c] sm:$0xf]  ;;  %v914_v57 = vor.u32 %v1014_v49, %v913_v48  ;;  %v918_v58 = vor.u32 %v1012_v50, %v915_v52 }
  0x24   : > { %539 = vmatpush.bf16.msra.mxu3 %v958_v39  ;;  %v923_v56 = vld [vmem:[#allocation7 + $0x78] sm:$0xf0]  ;;  %v922_v59 = vor.u32 %v1015_v54, %v921_v53  ;;  %v897_v60 = vld [vmem:[#allocation7 + $0x40] sm:$0xf]  ;;  %v1010_v61 = vld [vmem:[#allocation7 + $0x4c] sm:$0xf0] }
  0x25   : > { %v1008_v62 = vld [vmem:[#allocation7 + $0x44] sm:$0xf]  ;;  %v926_v63 = vor.u32 %v1013_v55, %v923_v56  ;;  %v899_v0 = vld [vmem:[#allocation7 + $0x50] sm:$0xf0]  ;;  %v905_v1 = vld [vmem:[#allocation7 + $0x48] sm:$0xf]  ;;  %v898_v5 = vor.u32 %v1010_v61, %v897_v60 }
  0x26   : > { %498 = vmatpush.bf16.msra.mxu0 %v930_v45  ;;  %v1011_v2 = vld [vmem:[#allocation7 + $0x54] sm:$0xf0]  ;;  %v1009_v3 = vld [vmem:[#allocation7 + $0x4c] sm:$0xf]  ;;  %v907_v4 = vld [vmem:[#allocation7 + $0x58] sm:$0xf0]  ;;  %v902_v9 = vor.u32 %v1008_v62, %v899_v0 }
  0x27   : > { %512 = vmatpush.bf16.msra.mxu1 %v934_v46  ;;  %526 = vmatpush.bf16.msra.mxu2 %v938_v47  ;;  %v881_v6 = vld [vmem:[#allocation7 + $0x20] sm:$0xf]  ;;  %v1006_v7 = vld [vmem:[#allocation7 + $0x2c] sm:$0xf0]  ;;  %v1004_v8 = vld [vmem:[#allocation7 + $0x24] sm:$0xf]  ;;  %v906_v10 = vor.u32 %v1011_v2, %v905_v1  ;;  %v910_v14 = vor.u32 %v1009_v3, %v907_v4 }
  0x28   : > { %540 = vmatpush.bf16.msra.mxu3 %v942_v51  ;;  %v883_v11 = vld [vmem:[#allocation7 + $0x30] sm:$0xf0]  ;;  %v889_v12 = vld [vmem:[#allocation7 + $0x28] sm:$0xf]  ;;  %v1007_v13 = vld [vmem:[#allocation7 + $0x34] sm:$0xf0]  ;;  %v882_v22 = vor.u32 %v1006_v7, %v881_v6  ;;  %v554_v51 = vlaneseq }
  0x29   : > { %v1005_v15 = vld [vmem:[#allocation7 + $0x2c] sm:$0xf]  ;;  %v891_v16 = vld [vmem:[#allocation7 + $0x38] sm:$0xf0]  ;;  %v865_v18 = vld [vmem:[#allocation7] sm:$0xf]  ;;  %v886_v26 = vor.u32 %v1004_v8, %v883_v11  ;;  %v890_v27 = vor.u32 %v1007_v13, %v889_v12 }
  0x2a   : > { %499 = vmatpush.bf16.msra.mxu0 %v914_v57  ;;  %v551_v17 = vld [vmem:[%s1269_s9] sm:$0xff]  ;;  %v1204_v20 = vmov 0   ;;  %vm278_vm1 = vcmask 7168   ;;  %v552_v21 = vld [vmem:[%s1269_s9 + $0x8] sm:$0xff]  ;;  %v1000_v23 = vld [vmem:[#allocation7 + $0x4] sm:$0xf]  ;;  %v894_v31 = vor.u32 %v1005_v15, %v891_v16 }
  0x2b   : > { %513 = vmatpush.bf16.msra.mxu1 %v918_v58  ;;  %527 = vmatpush.bf16.msra.mxu2 %v922_v59  ;;  %v1002_v19 = vld [vmem:[#allocation7 + $0xc] sm:$0xf0]  ;;  %vm680_vm2 = vcmp.ne.s32.totalorder %v551_v17, 4294967196  ;;  %v1205_v24 = vmov 0.0   ;;  %vm681_vm3 = vcmp.ne.s32.totalorder %v552_v21, 4294967196  ;;  %vm713_vm4 = vcmask 0  }
  0x2c   : > { %541 = vmatpush.bf16.msra.mxu3 %v926_v63  ;;  %1082 = vset.pattern.permute.xlu2 %v1204_v20  ;;  %v1273_v25 = vsel %vm680_vm2, 1.0, %v1205_v24  ;;  %281 = vst.msk [vmem:[#allocation3] sm:$0xff] %vm278_vm1, %v1205_v24  ;;  %v867_v28 = vld [vmem:[#allocation7 + $0x10] sm:$0xf0]  ;;  %v1279_v30 = vsel %vm681_vm3, 1.0, %v1205_v24  ;;  %v866_v38 = vor.u32 %v1002_v19, %v865_v18  ;;  %v555_v52 = vand.u32 127, %v554_v51 }
  0x2d   : > { %1081 = vset.pattern.permute.xlu1 %v1204_v20  ;;  %567 = vperm.xlu2 %1082, %v551_v17   ;;  %v716_v29 = vsel %vm278_vm1, %v1273_v25, 0.0  ;;  %282 = vst.msk [vmem:[#allocation3 + $0x8] sm:$0xff] %vm278_vm1, %v1205_v24  ;;  %v873_v32 = vld [vmem:[#allocation7 + $0x8] sm:$0xf]  ;;  %v1003_v33 = vld [vmem:[#allocation7 + $0x14] sm:$0xf0]  ;;  %v870_v39 = vor.u32 %v1000_v23, %v867_v28 }
  0x2e   : > { %500 = vmatpush.bf16.msra.mxu0 %v898_v5  ;;  %283 = vst.msk [vmem:[#allocation4] sm:$0xff] %vm278_vm1, %v1205_v24  ;;  %v717_v34 = vsel %vm278_vm1, %v1279_v30, 0.0  ;;  %1083 = vset.pattern.permute.xlu0 %v1204_v20  ;;  %v1001_v35 = vld [vmem:[#allocation7 + $0xc] sm:$0xf]  ;;  %v875_v36 = vld [vmem:[#allocation7 + $0x18] sm:$0xf0]  ;;  %v874_v40 = vor.u32 %v1003_v33, %v873_v32 }
  0x2f   : > { %514 = vmatpush.bf16.msra.mxu1 %v902_v9  ;;  %528 = vmatpush.bf16.msra.mxu2 %v906_v10  ;;  %284 = vst.msk [vmem:[#allocation4 + $0x8] sm:$0xff] %vm278_vm1, %v1205_v24  ;;  %v718_v37 = vadd.f32 %v717_v34, %v716_v29  ;;  %v878_v42 = vor.u32 %v1001_v35, %v875_v36  ;;  %v999_v43 = vld [vmem:[%s1264_s6] sm:$0xff]  ;;  %v715_v48 = vld [vmem:[#allocation6] sm:$0x1]  ;;  %v556_v56 = vadd.s32 128, %v555_v52  ;;  %v557_v62 = vadd.s32 256, %v555_v52 }
  0x30   : > { %542 = vmatpush.bf16.msra.mxu3 %v910_v14  ;;  %v319_v53 = vld [vmem:[%s1343_s2] sm:$0xf]  ;;  %v558_v4 = vadd.s32 384, %v555_v52  ;;  %p727_p9 = scmp.eq.s32.totalorder %s1190_s15, 1 }
  0x31   : > { %v719_v41 = vrot.slane %v718_v37, 4  ;;  %v321_v55 = vperm.slane %v319_v53, 0  ;;  %v322_v57 = vperm.slane %v319_v53, 1  ;;  %v323_v63 = vperm.slane %v319_v53, 2 }
  0x32   : > { %501 = vmatpush.bf16.msra.mxu0 %v882_v22  ;;  %v324_v2 = vperm.slane %v319_v53, 3 }
  0x33   : > { %515 = vmatpush.bf16.msra.mxu1 %v886_v26  ;;  %529 = vmatpush.bf16.msra.mxu2 %v890_v27  ;;  %v720_v44 = vadd.f32 %v719_v41, %v718_v37  ;;  %v1206_v37 = vmov -inf  }
  0x34   : > { %543 = vmatpush.bf16.msra.mxu3 %v894_v31  ;;  %279 = vst.msk [vmem:[#allocation2] sm:$0xff] %vm278_vm1, %v1206_v37 }
  0x35   : > { %570 = vperm.xlu2 %1082, %v552_v21   ;;  %v721_v45 = vrot.slane %v720_v44, 2  ;;  %280 = vst.msk [vmem:[#allocation2 + $0x8] sm:$0xff] %vm278_vm1, %v1206_v37 }
  0x36   : > { %502 = vmatpush.bf16.msra.mxu0 %v866_v38 }
  0x37   : > { %516 = vmatpush.bf16.msra.mxu1 %v870_v39  ;;  %530 = vmatpush.bf16.msra.mxu2 %v874_v40  ;;  %v722_v46 = vadd.f32 %v721_v45, %v720_v44  ;;  %v564_v39 = vld [vmem:[#allocation4] sm:$0xff] }
  0x38   : > { %544 = vmatpush.bf16.msra.mxu3 %v878_v42 }
  0x39   : > { %503 = vmatmul.bf16.vlgmr.msra.gmra.mxu0 %v999_v43  ;;  %v723_v47 = vrot.slane %v722_v46, 1 }
  0x3a   : > { %517 = vmatmul.bf16.vlgmr.msra.gmra.mxu1 %v999_v43  ;;  %531 = vmatmul.bf16.vlgmr.msra.gmra.mxu2 %v999_v43 }
  0x3b   : > { %545 = vmatmul.bf16.vlgmr.msra.gmra.mxu3 %v999_v43  ;;  %v724_v49 = vadd.f32 %v723_v47, %v722_v46  ;;  %v603_v38 = vld [vmem:[#allocation2] sm:$0xff] }
  0x3c   : > { %v604_v45 = vld [vmem:[#allocation2 + $0x8] sm:$0xff] }
  0x3d   : > { %v725_v50 = vadd.f32 %v724_v49, %v715_v48 }
  0x3f   : > { %726 = vst.msk [vmem:[#allocation6] sm:$0x1] %vm713_vm4, %v725_v50 }
  0x87   : > { %v568_v54 = vpop.permute.xlu2 %567 }
  0x88   : > { %vm572_vm5 = vcmp.eq.s32.totalorder %v555_v52, %v568_v54  ;;  %vm573_vm6 = vcmp.eq.s32.totalorder %v556_v56, %v568_v54  ;;  %vm574_vm7 = vcmp.eq.s32.totalorder %v557_v62, %v568_v54  ;;  %vm575_vm10 = vcmp.eq.s32.totalorder %v558_v4, %v568_v54 }
  0x8f   : > { %v571_v3 = vpop.permute.xlu2 %570 }
  0x90   : > { %vm576_vm8 = vcmp.eq.s32.totalorder %v555_v52, %v571_v3  ;;  %vm577_vm9 = vcmp.eq.s32.totalorder %v556_v56, %v571_v3  ;;  %vm578_vm11 = vcmp.eq.s32.totalorder %v557_v62, %v571_v3  ;;  %vm579_vm12 = vcmp.eq.s32.totalorder %v558_v4, %v571_v3 }
  0xb6   : > { %v504_v58 = vpop.f32.mrf.mxu0 }
  0xb7   : > { %v1290_v59 = vadd.f32 %v504_v58, %v321_v55  ;;  %v518_v60 = vpop.f32.mrf.mxu1 }
  0xb8   : > { %v1292_v61 = vadd.f32 %v518_v60, %v322_v57 }
  0xb9   : > { %v580_v0 = vsel %vm572_vm5, %v1290_v59, 0.0 }
  0xba   : > { %v581_v1 = vsel %vm573_vm6, %v1292_v61, 0.0 }
  0xbb   : > { %v588_v6 = vadd.f32 %v581_v1, %v580_v0 }
  0xbd   : > { %v532_v5 = vpop.f32.mrf.mxu2 }
  0xbe   : > { %v533_v7 = vadd.f32 %v532_v5, %v323_v63  ;;  %v546_v8 = vpop.f32.mrf.mxu3  ;;  %v506_v9 = vpop.f32.mrf.mxu0 }
  0xbf   : > { %v547_v10 = vadd.f32 %v546_v8, %v324_v2  ;;  %v1296_v11 = vadd.f32 %v506_v9, %v321_v55  ;;  %v520_v12 = vpop.f32.mrf.mxu1 }
  0xc0   : > { %v1298_v13 = vadd.f32 %v520_v12, %v322_v57  ;;  %v605_v14 = vmax.f32 %v1290_v59, %v533_v7  ;;  %v582_v15 = vsel %vm574_vm7, %v533_v7, 0.0 }
  0xc1   : > { %v606_v16 = vmax.f32 %v1292_v61, %v547_v10  ;;  %v589_v17 = vadd.f32 %v588_v6, %v582_v15  ;;  %v584_v18 = vsel %vm576_vm8, %v1296_v11, 0.0  ;;  %v583_v19 = vsel %vm575_vm10, %v547_v10, 0.0 }
  0xc2   : > { %v585_v20 = vsel %vm577_vm9, %v1298_v13, 0.0 }
  0xc3   : > { %v607_v21 = vmax.f32 %v605_v14, %v606_v16  ;;  %v590_v22 = vadd.f32 %v589_v17, %v583_v19  ;;  %v593_v23 = vadd.f32 %v585_v20, %v584_v18  ;;  %v617_v20 = vld [vmem:[#allocation3] sm:$0xff] }
  0xc5   : > { %608 = vmax.xlane.f32.xlu0 %v607_v21  ;;  %v534_v24 = vpop.f32.mrf.mxu2  ;;  %591 = vadd.xlane.f32.xlu2 %v590_v22 }
  0xc6   : > { %v535_v26 = vadd.f32 %v534_v24, %v323_v63  ;;  %v548_v27 = vpop.f32.mrf.mxu3 }
  0xc7   : > { %v549_v28 = vadd.f32 %v548_v27, %v324_v2  ;;  %v565_v27 = vld [vmem:[#allocation4 + $0x8] sm:$0xff] }
  0xc8   : > { %v610_v29 = vmax.f32 %v1296_v11, %v535_v26  ;;  %v586_v31 = vsel %vm578_vm11, %v535_v26, 0.0 }
  0xc9   : > { %v611_v32 = vmax.f32 %v1298_v13, %v549_v28  ;;  %v594_v33 = vadd.f32 %v593_v23, %v586_v31  ;;  %v587_v34 = vsel %vm579_vm12, %v549_v28, 0.0 }
  0xcb   : > { %v612_v35 = vmax.f32 %v610_v29, %v611_v32  ;;  %v595_v36 = vadd.f32 %v594_v33, %v587_v34 }
  0xcd   : > { %613 = vmax.xlane.f32.xlu0 %v612_v35 }
 0x138   : > { %v609_v40 = vpop.xlane.xlu0 %608  ;;  %v592_v41 = vpop.xlane.xlu2 %591 }
 0x139   : > { %v615_v42 = vmax.f32 %v603_v38, %v609_v40  ;;  %v598_v43 = vadd.f32 %v592_v41, %v564_v39 }
 0x13b   : > { %v619_v44 = vsub.f32 %v603_v38, %v615_v42  ;;  %675 = vst.msk [vmem:[#allocation2] sm:$0xff] %vm278_vm1, %v615_v42  ;;  %629 = vperm.xlu1 %1081, %v615_v42  }
 0x13c   : > { %601 = vst.msk [vmem:[#allocation4] sm:$0xff] %vm278_vm1, %v598_v43 }
 0x13d   : > { %v621_v17 = vmul.f32 1.442695, %v619_v44 }
 0x140   : > { %v614_v46 = vpop.xlane.xlu0 %613 }
 0x141   : > { %v616_v47 = vmax.f32 %v604_v45, %v614_v46 }
 0x142   : > { %v686_v38 = vld [vmem:[#allocation2] sm:$0xff] }
 0x143   : > { %v620_v48 = vsub.f32 %v604_v45, %v616_v47  ;;  %676 = vst.msk [vmem:[#allocation2 + $0x8] sm:$0xff] %vm278_vm1, %v616_v47  ;;  %634 = vperm.xlu1 %1081, %v616_v47   ;;  %v696_v41 = vld [vmem:[#allocation4] sm:$0xff] }
 0x145   : > { %v623_v18 = vmul.f32 1.442695, %v620_v48 }
 0x14a   : > { %v687_v44 = vld [vmem:[#allocation2 + $0x8] sm:$0xff] }
 0x1ad   : > { %v630_v49 = vpop.permute.xlu1 %629 }
 0x1ae   : > { %v637_v50 = vsub.f32 %v1290_v59, %v630_v49  ;;  %v638_v51 = vsub.f32 %v1292_v61, %v630_v49  ;;  %v639_v52 = vsub.f32 %v533_v7, %v630_v49  ;;  %v640_v53 = vsub.f32 %v547_v10, %v630_v49 }
 0x1b0   : > { %v645_v54 = vmul.f32 1.442695, %v637_v50  ;;  %v647_v55 = vmul.f32 1.442695, %v638_v51  ;;  %v649_v56 = vmul.f32 1.442695, %v639_v52 }
 0x1b1   : > { %v651_v57 = vmul.f32 1.442695, %v640_v53 }
 0x1b2   : > { %1084 = vpow2.f32 %v645_v54 }
 0x1b3   : > { %1086 = vpow2.f32 %v647_v55 }
 0x1b4   : > { %1088 = vpow2.f32 %v649_v56 }
 0x1b5   : > { %v635_v58 = vpop.permute.xlu1 %634  ;;  %1090 = vpow2.f32 %v651_v57 }
 0x1b6   : > { %v641_v60 = vsub.f32 %v1296_v11, %v635_v58  ;;  %v642_v62 = vsub.f32 %v1298_v13, %v635_v58  ;;  %v643_v63 = vsub.f32 %v535_v26, %v635_v58  ;;  %v644_v0 = vsub.f32 %v549_v28, %v635_v58  ;;  %v618_v26 = vld [vmem:[#allocation3 + $0x8] sm:$0xff]  ;;  %v702_v58 = vld [vmem:[#allocation5] sm:$0x1] }
 0x1b8   : > { %v1085_v59 = vpop.eup %1084  ;;  %v653_v1 = vmul.f32 1.442695, %v641_v60  ;;  %v655_v61 = vmul.f32 1.442695, %v642_v62  ;;  %v657_v3 = vmul.f32 1.442695, %v643_v63 }
 0x1b9   : > { %v1087_v2 = vpop.eup %1086  ;;  %v659_v6 = vmul.f32 1.442695, %v644_v0 }
 0x1ba   : > { %1092 = vpow2.f32 %v653_v1  ;;  %v661_v4 = vadd.f32 %v1087_v2, %v1085_v59  ;;  %v1089_v5 = vpop.eup %1088 }
 0x1bb   : > { %1094 = vpow2.f32 %v655_v61  ;;  %v1091_v8 = vpop.eup %1090 }
 0x1bc   : > { %v662_v7 = vadd.f32 %v1089_v5, %v661_v4  ;;  %1096 = vpow2.f32 %v657_v3 }
 0x1bd   : > { %1098 = vpow2.f32 %v659_v6 }
 0x1be   : > { %v663_v9 = vadd.f32 %v1091_v8, %v662_v7  ;;  %1100 = vpow2.f32 %v621_v17 }
 0x1bf   : > { %1102 = vpow2.f32 %v623_v18 }
 0x1c0   : > { %v1093_v10 = vpop.eup %1092  ;;  %664 = vadd.xlane.f32.xlu0 %v663_v9 }
 0x1c1   : > { %v1095_v11 = vpop.eup %1094 }
 0x1c2   : > { %v666_v12 = vadd.f32 %v1095_v11, %v1093_v10  ;;  %v1097_v13 = vpop.eup %1096 }
 0x1c3   : > { %v1099_v15 = vpop.eup %1098 }
 0x1c4   : > { %v667_v14 = vadd.f32 %v1097_v13, %v666_v12  ;;  %v1101_v19 = vpop.eup %1100 }
 0x1c5   : > { %v625_v21 = vmul.f32 %v1101_v19, %v617_v20  ;;  %v1103_v24 = vpop.eup %1102 }
 0x1c6   : > { %v668_v16 = vadd.f32 %v1099_v15, %v667_v14  ;;  %v626_v28 = vmul.f32 %v1103_v24, %v618_v26 }
 0x1c8   : > { %596 = vadd.xlane.f32.xlu0 %v595_v36  ;;  %669 = vadd.xlane.f32.xlu1 %v668_v16 }
 0x233   : > { %v665_v22 = vpop.xlane.xlu0 %664 }
 0x234   : > { %v671_v23 = vadd.f32 %v665_v22, %v625_v21 }
 0x236   : > { %673 = vst.msk [vmem:[#allocation3] sm:$0xff] %vm278_vm1, %v671_v23 }
 0x23b   : > { %v597_v29 = vpop.xlane.xlu0 %596  ;;  %v670_v31 = vpop.xlane.xlu1 %669 }
 0x23c   : > { %v599_v32 = vadd.f32 %v597_v29, %v565_v27  ;;  %v672_v33 = vadd.f32 %v670_v31, %v626_v28 }
 0x23d   : > { %v688_v34 = vld [vmem:[#allocation3] sm:$0xff] }
 0x23e   : > { %1104 = vlog2.f32 %v688_v34  ;;  %602 = vst.msk [vmem:[#allocation4 + $0x8] sm:$0xff] %vm278_vm1, %v599_v32 }
 0x23f   : > { %674 = vst.msk [vmem:[#allocation3 + $0x8] sm:$0xff] %vm278_vm1, %v672_v33 }
 0x244   : > { %v1105_v35 = vpop.eup %1104 }
 0x245   : > { %v691_v36 = vmul.f32 0.6931472, %v1105_v35  ;;  %v697_v46 = vld [vmem:[#allocation4 + $0x8] sm:$0xff] }
 0x246   : > { %v689_v37 = vld [vmem:[#allocation3 + $0x8] sm:$0xff] }
 0x247   : > { %1106 = vlog2.f32 %v689_v37  ;;  %v694_v39 = vadd.f32 %v691_v36, %v686_v38 }
 0x249   : > { %v698_v42 = vsub.f32 %v694_v39, %v696_v41 }
 0x24b   : > { %v700_v47 = vmul.f32 %v1273_v25, %v698_v42  ;;  %v733_v25 = vld [vmem:[#allocation6] sm:$0x1] (%p727_p9) }
 0x24d   : > { %v1107_v40 = vpop.eup %1106  ;;  %v703_v50 = vsel %vm278_vm1, %v700_v47, 0.0 }
 0x24e   : > { %v693_v43 = vmul.f32 0.6931472, %v1107_v40 }
 0x250   : > { %v695_v45 = vadd.f32 %v693_v43, %v687_v44 }
 0x252   : > { %v699_v48 = vsub.f32 %v695_v45, %v697_v46 }
 0x254   : > { %v701_v49 = vmul.f32 %v1279_v30, %v699_v48  ;;  %v734_v30 = vmax.f32 (%p727_p9), %v733_v25, 1.0 }
 0x256   : > { %v704_v51 = vsel %vm278_vm1, %v701_v49, 0.0  ;;  %1108 = vrcp.f32 (%p727_p9), %v734_v30  ;;  %v746_v59 = vand.u32 (%p727_p9), 2147483648, %v734_v30  ;;  %vm740_vm13 = vweird.f32 (%p727_p9), %v734_v30 }
 0x257   : > { %v705_v52 = vadd.f32 %v704_v51, %v703_v50  ;;  %v744_v61 = vand.u32 (%p727_p9), 2147483647, %v734_v30 }
 0x258   : > { %v747_v3 = vor.u32 (%p727_p9), 1.1754944e-38, %v746_v59 }
 0x259   : > { %v706_v53 = vrot.slane %v705_v52, 4  ;;  %vm745_vm0 = vcmp.eq.f32.partialorder (%p727_p9), %v744_v61, 8.507059e+37 }
 0x25b   : > { %v707_v54 = vadd.f32 %v706_v53, %v705_v52 }
 0x25c   : > { %v1109_v63 = vpop.eup (%p727_p9), %1108 }
 0x25d   : > { %v708_v55 = vrot.slane %v707_v54, 2  ;;  %v736_v0 = vmul.f32 (%p727_p9), %v1109_v63, %v734_v30  ;;  %vm741_vm14 = vweird.f32 (%p727_p9), %v1109_v63 }
 0x25e   : > { %vm742_vm15 = vmor (%p727_p9), %vm740_vm13, %vm741_vm14 }
 0x25f   : > { %v709_v56 = vadd.f32 %v708_v55, %v707_v54  ;;  %v737_v1 = vsub.f32 (%p727_p9), 1.0, %v736_v0 }
 0x261   : > { %v710_v57 = vrot.slane %v709_v56, 1  ;;  %v738_v2 = vmul.f32 (%p727_p9), %v1109_v63, %v737_v1 }
 0x263   : > { %v711_v60 = vadd.f32 %v710_v57, %v709_v56  ;;  %731 = sbr.rel (!%p727_p9) target bundleno = 626 (0x272), region = 56  ;;  %v739_v4 = vadd.f32 (%p727_p9), %v1109_v63, %v738_v2 }
 0x265   : > { %v712_v62 = vadd.f32 %v711_v60, %v702_v58  ;;  %v743_v6 = vsel (%p727_p9), %vm742_vm15, %v1109_v63, %v739_v4 }
 0x266   : > { %v748_v7 = vsel (%p727_p9), %vm745_vm0, %v747_v3, %v743_v6 }
 0x267   : > { %714 = vst.msk [vmem:[#allocation5] sm:$0x1] %vm713_vm4, %v712_v62 }
 0x26e   : > { %v732_v5 = vld [vmem:[#allocation5] sm:$0x1] }
 0x26f   : > { %v749_v8 = vmul.f32 %v748_v7, %v732_v5 }
 0x271   : > { %751 = vst.msk [vmem:[#allocation10] sm:$0x1] %vm713_vm4, %v749_v8 }
 0x272 PF: > { %p1047_p10 = scmp.eq.s32.totalorder %s847_s18, 1  ;;  %s760_s14 = sshll.u32 %s1345_s4, 4  ;;  %s761_s14 = int_to_ptr.hbm [resolvable:$true] %s760_s14 }
 0x273   : > { %s1207_s15 = smov [#allocation10]  }
 0x274   : > { %s758_s20 = sshll.u32 %s1207_s15, 4  ;;  %s759_s20 = int_to_ptr.vmem [resolvable:$true] %s758_s20 }
 0x275   : > { %1038 = dma.vmem_to_hbm [thread:$0]  (%p1047_p10), %s759_s20, 16, %s761_s14, [#allocation9]  }
 0x276   : > { %1185 = dma.done.wait (%p1047_p10), [#allocation9], 16  }
 0x277   : > { %1187 = vsyncadd (%p1047_p10), [#allocation9], 4294967280 }
 0x278 PF: > { %s16_s17 = sadd.s32 1, %s1198_s17   ;;  %s1346_s15 = smov %s1194_s16 }
 0x279   : > { %p13_p11 = scmp.ge.s32.totalorder %s16_s17, 4   ;;  %s1347_s16 = smov %s1349_s19 }
 0x27b   :  { %15 = sbr.rel (!%p13_p11) target bundleno = 3 (0x3), region = 91 }
 0x280   :  { %774 = vsyncpa [#allocation8], 1 }
 0x281   :  { %776 = vsyncpa [#allocation8 + $0x1], 1 }
 0x282   :  { %777 = vsyncpa [#allocation9], 1 }
 0x283   :  { %779 = vsyncpa [#allocation9 + $0x1], 1 }

// kernel: fcbart_forward.6
= control target key start
LH: loop header
LB: loop body
LE: loop exit
PB: predicated region body
PF: predicated region fallthrough
CT: control target
= control target key end

     0   :  { %s2853_s0 = inlined_call_operand.vmem [shape: bf16[2,16,128], index: 0, kind: input, shape index: {}]   ;;  %s2854_s1 = inlined_call_operand.hbm [shape: bf16[128,384], index: 1, kind: input, shape index: {}]   ;;  %s2855_s2 = inlined_call_operand.vmem [shape: f32[1,384], index: 2, kind: input, shape index: {}]   ;;  %s2856_s3 = inlined_call_operand.hbm [shape: bf16[128,128], index: 3, kind: input, shape index: {}]   ;;  %s2857_s4 = inlined_call_operand.vmem [shape: f32[1,128], index: 4, kind: input, shape index: {}, may-alias: {4,6,10,12}]   ;;  %s2858_s5 = inlined_call_operand.vmem [shape: f32[1,128], index: 5, kind: input, shape index: {}, may-alias: {5,11}]   ;;  %s2859_s6 = inlined_call_operand.vmem [shape: f32[1,128], index: 6, kind: input, shape index: {}, may-alias: {4,6,10,12}]   ;;  %s2860_s7 = inlined_call_operand.hbm [shape: bf16[128,256], index: 7, kind: input, shape index: {}]   ;;  %s2861_s8 = inlined_call_operand.vmem [shape: f32[1,256], index: 8, kind: input, shape index: {}]   ;;  %s2862_s9 = inlined_call_operand.hbm [shape: bf16[256,128], index: 9, kind: input, shape index: {}]   ;;  %s2863_s10 = inlined_call_operand.vmem [shape: f32[1,128], index: 10, kind: input, shape index: {}, may-alias: {4,6,10,12}]   ;;  %s2864_s11 = inlined_call_operand.vmem [shape: f32[1,128], index: 11, kind: input, shape index: {}, may-alias: {5,11}]   ;;  %s2865_s12 = inlined_call_operand.vmem [shape: f32[1,128], index: 12, kind: input, shape index: {}, may-alias: {4,6,10,12}]   ;;  %s2866_s13 = inlined_call_operand.vmem [shape: f32[2,1,16], index: 13, kind: input, shape index: {}]   ;;  %s2867_s14 = inlined_call_operand.vmem [shape: bf16[2,16,128], index: 14, kind: output, shape index: {}]  }
   0x1   :  { %2869 = sst [smem:[#allocation13_spill]] %s2854_s1 }
   0x2   :  { %2870 = sst [smem:[#allocation14_spill]] %s2856_s3 }
   0x3   :  { %2871 = sst [smem:[#allocation15_spill]] %s2865_s12 }
   0x4   :  { %2872 = sst [smem:[#allocation16_spill]] %s2867_s14 }
   0x5   :  { %19 = vsyncpa [#allocation3], 0 }
   0x6   :  { %20 = vsyncpa [#allocation5], 0 }
   0x7   :  { %21 = vsyncpa [#allocation8], 0  ;;  %s2556_s29 = smov 0  }
   0x8 LB: > { %2873 = sst [smem:[#allocation12_spill]] %s2465_s29  ;;  %s2565_s17 = sadd.s32 4294967295, %s2465_s29   ;;  %s2465_s29 = sphi %s2556_s29, %s27_s29  }
   0x9   : > { %s2874_s3 = sld [smem:[#allocation14_spill]]  ;;  %p1850_p0 = scmp.ge.s32.totalorder %s2465_s29, 1 }
   0xa   : > { %p362_p1 = scmp.lt.s32.totalorder %s2465_s29, 3  ;;  %p2240_p2 = scmp.eq.s32.totalorder %s2565_s17, 0 }
   0xb   : > { %s2467_s19 = smov [#allocation4]   ;;  %s2876_s1 = sld [smem:[#allocation13_spill]] }
   0xc   : > { %p2570_p3 = pnand %p1850_p0, %p362_p1  ;;  %s392_s20 = sshll.u32 %s2467_s19, 4  ;;  %s393_s20 = int_to_ptr.vmem [resolvable:$true] %s392_s20 }
   0xd   : > { %s2468_s25 = smov [#allocation2]   ;;  %s2469_s27 = smov 64  }
   0xe   : > { %p2227_p4 = pneg %p2570_p3  ;;  %s375_s26 = sshll.u32 %s2468_s25, 4  ;;  %s376_s26 = int_to_ptr.vmem [resolvable:$true] %s375_s26 }
   0xf   : > { %s390_s16 = sshll.u32 %s2874_s3, 4  ;;  %s2470_s28 = smov 4   ;;  %s391_s16 = int_to_ptr.hbm [resolvable:$true] %s390_s16 }
  0x10   : > { %p2581_p5 = pnand %p2240_p2, %p2227_p4  ;;  %s413_s19 = sshll.u32 %s2860_s7, 4  ;;  %s414_s19 = int_to_ptr.hbm [resolvable:$true] %s413_s19 }
  0x11   : > { %s373_s23 = sshll.u32 %s2876_s1, 4  ;;  %s2471_s21 = smov 192   ;;  %s374_s23 = int_to_ptr.hbm [resolvable:$true] %s373_s23 }
  0x12   : > { %2233 = dma.hbm_to_vmem [thread:$0]  (!%p2581_p5), %s391_s16, 1024, %s393_s20, [#allocation5], %s2469_s27, %s2469_s27, %s2470_s28  }
  0x13   : > { %s2472_s22 = smov 12   ;;  %s2473_s1 = smov [#allocation6]  }
  0x14   : > { %2230 = dma.hbm_to_vmem [thread:$0]  (!%p2581_p5), %s374_s23, 3072, %s376_s26, [#allocation3], %s2471_s21, %s2471_s21, %s2472_s22  }
  0x15   : > { %s415_s3 = sshll.u32 %s2473_s1, 4  ;;  %s2474_s29 = smov 128   ;;  %s416_s3 = int_to_ptr.vmem [resolvable:$true] %s415_s3 }
  0x16   : > { %s2475_s25 = smov 8   ;;  %s430_s16 = sshll.u32 %s2862_s9, 4  ;;  %s431_s16 = int_to_ptr.hbm [resolvable:$true] %s430_s16 }
  0x17   : > { %2236 = dma.hbm_to_vmem [thread:$0]  (!%p2581_p5), %s414_s19, 2048, %s416_s3, [#allocation5], %s2474_s29, %s2474_s29, %s2475_s25  }
  0x18   : > { %s2476_s20 = smov [#allocation7]   ;;  %471 = sbr.rel (%p2570_p3) target bundleno = 2331 (0x91b), region = 76 }
  0x19   : > { %s432_s30 = sshll.u32 %s2476_s20, 4  ;;  %s433_s30 = int_to_ptr.vmem [resolvable:$true] %s432_s30 }
  0x1a   : > { %2239 = dma.hbm_to_vmem [thread:$0]  (!%p2581_p5), %s431_s16, 2048, %s433_s30, [#allocation8], %s2469_s27, %s2469_s27, %s2470_s28  }
  0x1d   : > { %2452 = dma.done.wait (%p2240_p2), [#allocation3], 3072  }
  0x1e   : > { %2454 = vsyncadd (%p2240_p2), [#allocation3], 4294964224 }
  0x1f   : > { %2456 = dma.done.wait (%p2240_p2), [#allocation5], 3072  }
  0x20   : > { %2458 = vsyncadd (%p2240_p2), [#allocation5], 4294964224 }
  0x21   : > { %2460 = dma.done.wait (%p2240_p2), [#allocation8], 2048  }
  0x22   : > { %2462 = vsyncadd (%p2240_p2), [#allocation8], 4294965248  ;;  %v1955_v0 = vld [vmem:[#allocation2 + $0xa8] sm:$0xf]  ;;  %v2164_v1 = vld [vmem:[#allocation2 + $0xb0] sm:$0xf0] }
  0x23   : > { %v2163_v2 = vld [vmem:[#allocation2 + $0xac] sm:$0xf]  ;;  %v1956_v3 = vor.u32 %v2164_v1, %v1955_v0  ;;  %v1957_v4 = vld [vmem:[#allocation2 + $0xb4] sm:$0xf0]  ;;  %v1943_v5 = vld [vmem:[#allocation2 + $0x90] sm:$0xf] }
  0x24   : > { %v2161_v6 = vld [vmem:[#allocation2 + $0x98] sm:$0xf0]  ;;  %v1960_v7 = vor.u32 %v2163_v2, %v1957_v4  ;;  %v2160_v8 = vld [vmem:[#allocation2 + $0x94] sm:$0xf]  ;;  %v1945_v9 = vld [vmem:[#allocation2 + $0x9c] sm:$0xf0] }
  0x25   : > { %726 = vmatpush.bf16.msra.mxu0 %v1956_v3  ;;  %v1944_v10 = vor.u32 %v2161_v6, %v1943_v5  ;;  %v1948_v11 = vor.u32 %v2160_v8, %v1945_v9  ;;  %v1931_v12 = vld [vmem:[#allocation2 + $0x78] sm:$0xf]  ;;  %v2158_v13 = vld [vmem:[#allocation2 + $0x80] sm:$0xf0]  ;;  %p536_p6 = scmp.lt.s32.totalorder %s2565_s17, 1  ;;  %vm778_vm0 = vcmask 261120  }
  0x26   : > { %740 = vmatpush.bf16.msra.mxu1 %v1960_v7  ;;  %v2157_v14 = vld [vmem:[#allocation2 + $0x7c] sm:$0xf]  ;;  %v1933_v15 = vld [vmem:[#allocation2 + $0x84] sm:$0xf0]  ;;  %v1932_v16 = vor.u32 %v2158_v13, %v1931_v12  ;;  %v1919_v18 = vld [vmem:[#allocation2 + $0x60] sm:$0xf] }
  0x27   : > { %v1936_v17 = vor.u32 %v2157_v14, %v1933_v15  ;;  %v2155_v19 = vld [vmem:[#allocation2 + $0x68] sm:$0xf0]  ;;  %s2888_s17 = smov (!%p536_p6, %s2565_s17), 1  ;;  %v2154_v20 = vld [vmem:[#allocation2 + $0x64] sm:$0xf]  ;;  %s2477_s27 = smov 96  }
  0x28   : > { %v1921_v21 = vld [vmem:[#allocation2 + $0x6c] sm:$0xf0]  ;;  %v1907_v22 = vld [vmem:[#allocation2 + $0x48] sm:$0xf]  ;;  %s543_s12 = scalar_lea.vmem %s2866_s13, %s2888_s17  ;;  %v1920_v23 = vor.u32 %v2155_v19, %v1919_v18  ;;  %v2152_v24 = vld [vmem:[#allocation2 + $0x50] sm:$0xf0] }
  0x29   : > { %727 = vmatpush.bf16.msra.mxu0 %v1944_v10  ;;  %v1963_v25 = vld [vmem:[#allocation2 + $0xb0] sm:$0xf]  ;;  %v1924_v26 = vor.u32 %v2154_v20, %v1921_v21  ;;  %v2165_v27 = vld [vmem:[#allocation2 + $0xb8] sm:$0xf0]  ;;  %v1951_v28 = vld [vmem:[#allocation2 + $0x98] sm:$0xf]  ;;  %v1908_v33 = vor.u32 %v2152_v24, %v1907_v22 }
  0x2a   : > { %741 = vmatpush.bf16.msra.mxu1 %v1948_v11  ;;  %v2162_v29 = vld [vmem:[#allocation2 + $0xa0] sm:$0xf0]  ;;  %v2151_v30 = vld [vmem:[#allocation2 + $0x4c] sm:$0xf]  ;;  %v1909_v31 = vld [vmem:[#allocation2 + $0x54] sm:$0xf0]  ;;  %v1964_v32 = vor.u32 %v2165_v27, %v1963_v25 }
  0x2b   : > { %v1895_v34 = vld [vmem:[#allocation2 + $0x30] sm:$0xf]  ;;  %v2149_v35 = vld [vmem:[#allocation2 + $0x38] sm:$0xf0]  ;;  %v1952_v36 = vor.u32 %v2162_v29, %v1951_v28  ;;  %v1912_v37 = vor.u32 %v2151_v30, %v1909_v31  ;;  %v2148_v38 = vld [vmem:[#allocation2 + $0x34] sm:$0xf] }
  0x2c   : > { %754 = vmatpush.bf16.msra.mxu2 %v1964_v32  ;;  %v1939_v39 = vld [vmem:[#allocation2 + $0x80] sm:$0xf]  ;;  %v2159_v40 = vld [vmem:[#allocation2 + $0x88] sm:$0xf0]  ;;  %v1896_v42 = vor.u32 %v2149_v35, %v1895_v34  ;;  %v1883_v43 = vld [vmem:[#allocation2 + $0x18] sm:$0xf] }
  0x2d   : > { %728 = vmatpush.bf16.msra.mxu0 %v1932_v16  ;;  %v1897_v41 = vld [vmem:[#allocation2 + $0x3c] sm:$0xf0]  ;;  %v1940_v44 = vor.u32 %v2159_v40, %v1939_v39  ;;  %v2146_v46 = vld [vmem:[#allocation2 + $0x20] sm:$0xf0]  ;;  %v1927_v47 = vld [vmem:[#allocation2 + $0x68] sm:$0xf] }
  0x2e   : > { %742 = vmatpush.bf16.msra.mxu1 %v1936_v17  ;;  %v1900_v45 = vor.u32 %v2148_v38, %v1897_v41  ;;  %v2156_v48 = vld [vmem:[#allocation2 + $0x70] sm:$0xf0]  ;;  %v2145_v49 = vld [vmem:[#allocation2 + $0x1c] sm:$0xf]  ;;  %v1885_v50 = vld [vmem:[#allocation2 + $0x24] sm:$0xf0]  ;;  %v1884_v51 = vor.u32 %v2146_v46, %v1883_v43 }
  0x2f   : > { %v1871_v52 = vld [vmem:[#allocation2] sm:$0xf]  ;;  %s2139_s14 = sshll.u32 %s2888_s17, 3  ;;  %v1928_v53 = vor.u32 %v2156_v48, %v1927_v47  ;;  %v1888_v54 = vor.u32 %v2145_v49, %v1885_v50  ;;  %v2143_v55 = vld [vmem:[#allocation2 + $0x8] sm:$0xf0]  ;;  %s2478_s28 = smov 32  }
  0x30   : > { %755 = vmatpush.bf16.msra.mxu2 %v1952_v36  ;;  %v1915_v56 = vld [vmem:[#allocation2 + $0x50] sm:$0xf]  ;;  %v2153_v57 = vld [vmem:[#allocation2 + $0x58] sm:$0xf0]  ;;  %v2142_v58 = vld [vmem:[#allocation2 + $0x4] sm:$0xf]  ;;  %v1872_v60 = vor.u32 %v2143_v55, %v1871_v52  ;;  %s2627_s23 = scalar_lea.vmem %s2853_s0, %s2139_s14 }
  0x31   : > { %729 = vmatpush.bf16.msra.mxu0 %v1920_v23  ;;  %v1873_v59 = vld [vmem:[#allocation2 + $0xc] sm:$0xf0]  ;;  %v1916_v61 = vor.u32 %v2153_v57, %v1915_v56  ;;  %v1903_v63 = vld [vmem:[#allocation2 + $0x38] sm:$0xf]  ;;  %v2150_v0 = vld [vmem:[#allocation2 + $0x40] sm:$0xf0] }
  0x32   : > { %743 = vmatpush.bf16.msra.mxu1 %v1924_v26  ;;  %v1876_v62 = vor.u32 %v2142_v58, %v1873_v59  ;;  %v2141_v1 = vld [vmem:[%s2627_s23] sm:$0xff]  ;;  %v1904_v2 = vor.u32 %v2150_v0, %v1903_v63  ;;  %v2147_v4 = vld [vmem:[#allocation2 + $0x28] sm:$0xf0]  ;;  %v1879_v6 = vld [vmem:[#allocation2 + $0x8] sm:$0xf]  ;;  %s2479_s15 = smov 64  }
  0x33   : > { %v1891_v3 = vld [vmem:[#allocation2 + $0x20] sm:$0xf]  ;;  %v2144_v7 = vld [vmem:[#allocation2 + $0x10] sm:$0xf0]  ;;  %vm799_vm1 = vcmask 130048   ;;  %v2167_v40 = vld [vmem:[#allocation4 + $0x8] sm:$0xff] }
  0x34   : > { %756 = vmatpush.bf16.msra.mxu2 %v1940_v44  ;;  %v1892_v5 = vor.u32 %v2147_v4, %v1891_v3  ;;  %v1880_v8 = vor.u32 %v2144_v7, %v1879_v6  ;;  %v584_v11 = vld [vmem:[%s2855_s2] sm:$0x7]  ;;  %s2885_s21 = sld [smem:[#allocation16_spill]] }
  0x35   : > { %730 = vmatpush.bf16.msra.mxu0 %v1908_v33  ;;  %v587_v12 = vperm.slane %v584_v11, 1  ;;  %v586_v15 = vperm.slane %v584_v11, 0  ;;  %v588_v26 = vperm.slane %v584_v11, 2  ;;  %v2648_v33 = vld [vmem:[%s543_s12] ss:$0 sm:$0xff] }
  0x36   : > { %744 = vmatpush.bf16.msra.mxu1 %v1912_v37  ;;  %v2166_v41 = vld [vmem:[#allocation4] sm:$0xff] }
  0x38   : > { %757 = vmatpush.bf16.msra.mxu2 %v1928_v53 }
  0x39   : > { %731 = vmatpush.bf16.msra.mxu0 %v1896_v42 }
  0x3a   : > { %745 = vmatpush.bf16.msra.mxu1 %v1900_v45  ;;  %s548_s22 = scalar_lea.vmem %s2885_s21, %s2139_s14 }
  0x3c   : > { %758 = vmatpush.bf16.msra.mxu2 %v1916_v61 }
  0x3d   : > { %732 = vmatpush.bf16.msra.mxu0 %v1884_v51 }
  0x3e   : > { %746 = vmatpush.bf16.msra.mxu1 %v1888_v54 }
  0x40   : > { %759 = vmatpush.bf16.msra.mxu2 %v1904_v2 }
  0x41   : > { %733 = vmatpush.bf16.msra.mxu0 %v1872_v60 }
  0x42   : > { %747 = vmatpush.bf16.msra.mxu1 %v1876_v62 }
  0x44   : > { %734 = vmatmul.bf16.vlgmr.msra.gmra.mxu0 %v2141_v1  ;;  %760 = vmatpush.bf16.msra.mxu2 %v1892_v5 }
  0x45   : > { %748 = vmatmul.bf16.vlgmr.msra.gmra.mxu1 %v2141_v1 }
  0x48   : > { %761 = vmatpush.bf16.msra.mxu2 %v1880_v8 }
  0x4b   : > { %762 = vmatmul.bf16.vlgmr.msra.gmra.mxu2 %v2141_v1 }
  0x4c   : > { %1022 = vmatpush.bf16.msrb.mxu2 %v2167_v40 }
  0x50   : > { %1023 = vmatpush.bf16.msrb.mxu2 %v2166_v41 }
  0xc1   : > { %v735_v9 = vpop.f32.mrf.mxu0 }
  0xc2   : > { %v749_v10 = vpop.f32.mrf.mxu1  ;;  %v736_v20 = vadd.f32 %v735_v9, %v586_v15 }
  0xc3   : > { %v750_v16 = vadd.f32 %v749_v10, %v587_v12 }
  0xc4   : > { %v769_v23 = vmul.f32 0.17677669, %v736_v20 }
  0xc9   : > { %v737_v13 = vpop.f32.mrf.mxu0 }
  0xca   : > { %v751_v14 = vpop.f32.mrf.mxu1  ;;  %v738_v18 = vadd.f32 %v737_v13, %v586_v15 }
  0xcb   : > { %v752_v17 = vadd.f32 %v751_v14, %v587_v12 }
  0xcc   : > { %v770_v22 = vmul.f32 0.17677669, %v738_v18 }
  0xcd   : > { %v773_v19 = vpack.c.bf16 %v752_v17, %v750_v16 }
  0xce   : > { %v763_v24 = vpop.f32.mrf.mxu2  ;;  %v772_v25 = vpack.c.bf16 %v770_v22, %v769_v23 }
  0xcf   : > { %875 = vrot.lane.b32.xlu2 %v773_v19, %s2477_s27  ;;  %v783_v21 = vsel %vm778_vm0, %v773_v19, 0  ;;  %v764_v27 = vadd.f32 %v763_v24, %v588_v26 }
  0xd0   : > { %792 = vmatpush.bf16.xpose.msra.mxu3 %v783_v21 }
  0xd6   : > { %v765_v28 = vpop.f32.mrf.mxu2 }
  0xd7   : > { %872 = vrot.lane.b32.xlu2 %v772_v25, %s2477_s27  ;;  %1965 = vmatmul.msk.bf16.vlgmr.msra.gmra.mxu3 %vm778_vm0, %v772_v25  ;;  %v766_v29 = vadd.f32 %v765_v28, %v588_v26 }
  0xd9   : > { %v2637_v30 = vpack.c.bf16 %v766_v29, %v764_v27 }
  0xdb   : > { %859 = vmatpush.bf16.msrb.mxu3 %v2637_v30 }
  0xdf   : > { %1159 = vrot.lane.b32.xlu2 %v772_v25, %s2478_s28 }
  0xe7   : > { %1030 = vrot.lane.b32.xlu2 %v772_v25, %s2479_s15 }
 0x129   : > { %v876_v31 = vpop.permute.xlu2 %875 }
 0x12a   : > { %v881_v32 = vsel %vm778_vm0, %v876_v31, 0 }
 0x12b   : > { %890 = vmatpush.bf16.xpose.msra.mxu3 %v881_v32 }
 0x131   : > { %v873_v17 = vpop.permute.xlu2 %872 }
 0x139   : > { %v1160_v18 = vpop.permute.xlu2 %1159 }
 0x15a   : > { %v794_v34 = vpop.f32.mrf.mxu3 }
 0x15b   : > { %v795_v35 = vadd.f32 %v2648_v33, %v794_v34 }
 0x15d   : > { %v800_v36 = vsel %vm799_vm1, %v795_v35, -inf }
 0x15e   : > { %801 = vmax.xlane.f32.xlu0 %v800_v36 }
 0x162   : > { %v796_v37 = vpop.f32.mrf.mxu3 }
 0x163   : > { %v797_v38 = vadd.f32 %v2648_v33, %v796_v37 }
 0x165   : > { %v803_v39 = vsel %vm799_vm1, %v797_v38, -inf }
 0x166   : > { %804 = vmax.xlane.f32.xlu0 %v803_v39 }
 0x17a   : > { %1161 = vrot.lane.b32.xlu0 %v773_v19, %s2478_s28 }
 0x1d1   : > { %v802_v42 = vpop.xlane.xlu0 %801 }
 0x1d2   : > { %v806_v43 = vsub.f32 %v795_v35, %v802_v42 }
 0x1d4   : > { %v808_v44 = vmul.f32 1.442695, %v806_v43 }
 0x1d6   : > { %2277 = vpow2.f32 %v808_v44 }
 0x1d9   : > { %v805_v45 = vpop.xlane.xlu0 %804 }
 0x1da   : > { %v807_v46 = vsub.f32 %v797_v38, %v805_v45 }
 0x1dc   : > { %v2278_v47 = vpop.eup %2277  ;;  %v810_v48 = vmul.f32 1.442695, %v807_v46 }
 0x1dd   : > { %v812_v49 = vsel %vm799_vm1, %v2278_v47, 0.0 }
 0x1de   : > { %2279 = vpow2.f32 %v810_v48  ;;  %813 = vadd.xlane.f32.xlu1 %v812_v49 }
 0x1e4   : > { %v2280_v50 = vpop.eup %2279 }
 0x1e5   : > { %v815_v51 = vsel %vm799_vm1, %v2280_v50, 0.0 }
 0x1e6   : > { %816 = vadd.xlane.f32.xlu1 %v815_v51 }
 0x1ec   : > { %v1162_v52 = vpop.permute.xlu0 %1161 }
 0x1ed   : > { %v1167_v53 = vsel %vm778_vm0, %v1162_v52, 0 }
 0x1ee   : > { %1176 = vmatpush.bf16.xpose.msra.mxu2 %v1167_v53 }
 0x1ff   : > { %1032 = vrot.lane.b32.xlu1 %v773_v19, %s2479_s15  ;;  %v1031_v19 = vpop.permute.xlu2 %1030 }
 0x251   : > { %v814_v54 = vpop.xlane.xlu1 %813 }
 0x252   : > { %2281 = vrcp.f32 %v814_v54  ;;  %v829_v63 = vand.u32 2147483648, %v814_v54  ;;  %vm823_vm3 = vweird.f32 %v814_v54  ;;  %v827_v0 = vand.u32 2147483647, %v814_v54 }
 0x254   : > { %v830_v6 = vor.u32 1.1754944e-38, %v829_v63  ;;  %vm828_vm6 = vcmp.eq.f32.partialorder %v827_v0, 8.507059e+37 }
 0x258   : > { %v2282_v55 = vpop.eup %2281 }
 0x259   : > { %v819_v56 = vmul.f32 %v2282_v55, %v814_v54  ;;  %v817_v57 = vpop.xlane.xlu1 %816  ;;  %vm824_vm2 = vweird.f32 %v2282_v55 }
 0x25a   : > { %2283 = vrcp.f32 %v817_v57  ;;  %vm825_vm4 = vmor %vm823_vm3, %vm824_vm2  ;;  %v844_v2 = vand.u32 2147483648, %v817_v57  ;;  %v842_v5 = vand.u32 2147483647, %v817_v57  ;;  %vm838_vm7 = vweird.f32 %v817_v57 }
 0x25b   : > { %v820_v58 = vsub.f32 1.0, %v819_v56 }
 0x25c   : > { %v845_v8 = vor.u32 1.1754944e-38, %v844_v2  ;;  %vm843_vm9 = vcmp.eq.f32.partialorder %v842_v5, 8.507059e+37 }
 0x25d   : > { %v821_v59 = vmul.f32 %v2282_v55, %v820_v58 }
 0x25f   : > { %v822_v61 = vadd.f32 %v2282_v55, %v821_v59 }
 0x260   : > { %v2284_v60 = vpop.eup %2283 }
 0x261   : > { %v834_v62 = vmul.f32 %v2284_v60, %v817_v57  ;;  %v826_v3 = vsel %vm825_vm4, %v2282_v55, %v822_v61  ;;  %vm839_vm5 = vweird.f32 %v2284_v60 }
 0x262   : > { %vm840_vm8 = vmor %vm838_vm7, %vm839_vm5  ;;  %v831_v9 = vsel %vm828_vm6, %v830_v6, %v826_v3 }
 0x263   : > { %v835_v1 = vsub.f32 1.0, %v834_v62  ;;  %v832_v12 = vmul.f32 %v2278_v47, %v831_v9 }
 0x265   : > { %v836_v4 = vmul.f32 %v2284_v60, %v835_v1 }
 0x267   : > { %v837_v7 = vadd.f32 %v2284_v60, %v836_v4 }
 0x269   : > { %v841_v10 = vsel %vm840_vm8, %v2284_v60, %v837_v7 }
 0x26a   : > { %v846_v11 = vsel %vm843_vm9, %v845_v8, %v841_v10 }
 0x26b   : > { %v847_v13 = vmul.f32 %v2280_v50, %v846_v11 }
 0x26d   : > { %v848_v14 = vpack.c.bf16 %v847_v13, %v832_v12 }
 0x26f   : > { %1966 = vmatmul.msk.bf16.vlgmr.msrb.gmra.mxu3 %vm799_vm1, %v848_v14 }
 0x271   : > { %v1033_v15 = vpop.permute.xlu1 %1032 }
 0x272   : > { %v1038_v16 = vsel %vm778_vm0, %v1033_v15, 0 }
 0x273   : > { %1047 = vmatpush.bf16.xpose.msrb.mxu3 %v1038_v16 }
 0x27f   : > { %1967 = vmatmul.msk.bf16.vlgmr.msra.gmra.mxu3 %vm778_vm0, %v873_v17 }
 0x28f   : > { %1987 = vmatmul.msk.bf16.vlgmr.msrb.gmra.mxu3 %vm778_vm0, %v1031_v19 }
 0x2f2   : > { %v861_v20 = vpop.f32.mrf.mxu3 }
 0x2fa   : > { %v863_v21 = vpop.f32.mrf.mxu3 }
 0x2fb   : > { %v866_v22 = vpack.c.bf16 %v863_v21, %v861_v20 }
 0x2fd   : > { %1986 = vmatmul.msk.bf16.vlgmr.msrb.gmra.mxu2 %vm778_vm0, %v866_v22 }
 0x302   : > { %v892_v23 = vpop.f32.mrf.mxu3 }
 0x303   : > { %v893_v24 = vadd.f32 %v2648_v33, %v892_v23 }
 0x305   : > { %v897_v25 = vsel %vm799_vm1, %v893_v24, -inf }
 0x306   : > { %898 = vmax.xlane.f32.xlu2 %v897_v25 }
 0x30a   : > { %v894_v26 = vpop.f32.mrf.mxu3 }
 0x30b   : > { %v895_v27 = vadd.f32 %v2648_v33, %v894_v26 }
 0x30d   : > { %1998 = vmatmul.msk.bf16.vlgmr.msra.gmra.mxu2 %vm778_vm0, %v1160_v18  ;;  %v900_v28 = vsel %vm799_vm1, %v895_v27, -inf }
 0x30e   : > { %901 = vmax.xlane.f32.xlu0 %v900_v28 }
 0x312   : > { %v1049_v29 = vpop.f32.mrf.mxu3 }
 0x313   : > { %v1050_v31 = vadd.f32 %v2648_v33, %v1049_v29 }
 0x315   : > { %v1054_v32 = vsel %vm799_vm1, %v1050_v31, -inf }
 0x316   : > { %1055 = vmax.xlane.f32.xlu0 %v1054_v32 }
 0x31a   : > { %v1051_v57 = vpop.f32.mrf.mxu3 }
 0x31b   : > { %v1052_v58 = vadd.f32 %v2648_v33, %v1051_v57 }
 0x31d   : > { %v1057_v59 = vsel %vm799_vm1, %v1052_v58, -inf }
 0x379   : > { %v899_v38 = vpop.xlane.xlu2 %898 }
 0x37a   : > { %v903_v41 = vsub.f32 %v893_v24, %v899_v38 }
 0x37c   : > { %v905_v46 = vmul.f32 1.442695, %v903_v41 }
 0x380   : > { %v2671_v34 = vpop.f32.mrf.mxu2 }
 0x381   : > { %v902_v35 = vpop.xlane.xlu0 %901 }
 0x382   : > { %v904_v36 = vsub.f32 %v895_v27, %v902_v35 }
 0x384   : > { %v907_v37 = vmul.f32 1.442695, %v904_v36 }
 0x386   : > { %2285 = vpow2.f32 %v907_v37 }
 0x388   : > { %v2673_v39 = vpop.f32.mrf.mxu2 }
 0x389   : > { %v1056_v40 = vpop.xlane.xlu0 %1055 }
 0x38a   : > { %v1060_v42 = vsub.f32 %v1050_v31, %v1056_v40 }
 0x38c   : > { %v2675_v43 = vpop.eup %2285  ;;  %v1062_v44 = vmul.f32 1.442695, %v1060_v42 }
 0x38d   : > { %v912_v45 = vsel %vm799_vm1, %v2675_v43, 0.0 }
 0x38e   : > { %2287 = vpow2.f32 %v1062_v44  ;;  %913 = vadd.xlane.f32.xlu0 %v912_v45 }
 0x38f   : > { %2289 = vpow2.f32 %v905_v46 }
 0x390   : > { %v1178_v47 = vpop.f32.mrf.mxu2 }
 0x391   : > { %v1179_v48 = vadd.f32 %v2648_v33, %v1178_v47 }
 0x393   : > { %v1183_v49 = vsel %vm799_vm1, %v1179_v48, -inf }
 0x394   : > { %v2681_v50 = vpop.eup %2287  ;;  %1184 = vmax.xlane.f32.xlu1 %v1183_v49 }
 0x395   : > { %v1066_v51 = vsel %vm799_vm1, %v2681_v50, 0.0  ;;  %v2685_v52 = vpop.eup %2289 }
 0x396   : > { %1067 = vadd.xlane.f32.xlu0 %v1066_v51  ;;  %v909_v56 = vsel %vm799_vm1, %v2685_v52, 0.0 }
 0x398   : > { %v1180_v53 = vpop.f32.mrf.mxu2 }
 0x399   : > { %v1181_v54 = vadd.f32 %v2648_v33, %v1180_v53 }
 0x39b   : > { %v1186_v55 = vsel %vm799_vm1, %v1181_v54, -inf }
 0x39c   : > { %1187 = vmax.xlane.f32.xlu2 %v1186_v55  ;;  %910 = vadd.xlane.f32.xlu1 %v909_v56 }
 0x3a4   : > { %1058 = vmax.xlane.f32.xlu2 %v1057_v59 }
 0x3aa   : > { %1232 = vrot.lane.b32.xlu0 %v2637_v30, %s2478_s28  ;;  %s2884_s28 = sld [smem:[#allocation15_spill]] }
 0x401   : > { %v2695_v60 = vpop.xlane.xlu0 %913 }
 0x402   : > { %v941_v32 = vand.u32 2147483648, %v2695_v60  ;;  %vm935_vm14 = vweird.f32 %v2695_v60  ;;  %v939_v37 = vand.u32 2147483647, %v2695_v60 }
 0x404   : > { %v942_v46 = vor.u32 1.1754944e-38, %v941_v32  ;;  %vm940_vm3 = vcmp.eq.f32.partialorder %v939_v37, 8.507059e+37  ;;  %v2170_v37 = vld [vmem:[#allocation4 + $0x20] sm:$0xff] }
 0x407   : > { %v1185_v1 = vpop.xlane.xlu1 %1184 }
 0x408   : > { %v1189_v33 = vsub.f32 %v1179_v48, %v1185_v1 }
 0x409   : > { %v2697_v0 = vpop.xlane.xlu0 %1067 }
 0x40a   : > { %v1191_v8 = vmul.f32 1.442695, %v1189_v33 }
 0x40f   : > { %v1188_v61 = vpop.xlane.xlu2 %1187  ;;  %v911_v13 = vpop.xlane.xlu1 %910 }
 0x410   : > { %v1190_v62 = vsub.f32 %v1181_v54, %v1188_v61  ;;  %v926_v26 = vand.u32 2147483648, %v911_v13  ;;  %vm920_vm12 = vweird.f32 %v911_v13  ;;  %v924_v29 = vand.u32 2147483647, %v911_v13 }
 0x412   : > { %v1193_v63 = vmul.f32 1.442695, %v1190_v62  ;;  %v927_v44 = vor.u32 1.1754944e-38, %v926_v26  ;;  %vm925_vm2 = vcmp.eq.f32.partialorder %v924_v29, 8.507059e+37 }
 0x414   : > { %2291 = vpow2.f32 %v1193_v63 }
 0x417   : > { %v1059_v2 = vpop.xlane.xlu2 %1058 }
 0x418   : > { %v1061_v3 = vsub.f32 %v1052_v58, %v1059_v2 }
 0x41a   : > { %v2699_v4 = vpop.eup %2291  ;;  %v1064_v5 = vmul.f32 1.442695, %v1061_v3 }
 0x41b   : > { %v1198_v6 = vsel %vm799_vm1, %v2699_v4, 0.0 }
 0x41c   : > { %2293 = vpow2.f32 %v1064_v5  ;;  %1199 = vadd.xlane.f32.xlu1 %v1198_v6  ;;  %v1233_v7 = vpop.permute.xlu0 %1232 }
 0x41d   : > { %1245 = vmatpush.bf16.msra.mxu3 %v1233_v7  ;;  %2295 = vpow2.f32 %v1191_v8 }
 0x41e   : > { %2297 = vrcp.f32 %v911_v13 }
 0x41f   : > { %2299 = vrcp.f32 %v2695_v60 }
 0x422   : > { %v2703_v9 = vpop.eup %2293 }
 0x423   : > { %v1069_v10 = vsel %vm799_vm1, %v2703_v9, 0.0  ;;  %v2707_v11 = vpop.eup %2295 }
 0x424   : > { %1070 = vadd.xlane.f32.xlu2 %v1069_v10  ;;  %v1195_v12 = vsel %vm799_vm1, %v2707_v11, 0.0  ;;  %v2298_v14 = vpop.eup %2297 }
 0x425   : > { %v2300_v15 = vpop.eup %2299  ;;  %v916_v16 = vmul.f32 %v2298_v14, %v911_v13  ;;  %vm921_vm10 = vweird.f32 %v2298_v14 }
 0x426   : > { %v931_v18 = vmul.f32 %v2300_v15, %v2695_v60  ;;  %vm936_vm11 = vweird.f32 %v2300_v15  ;;  %vm2733_vm13 = vmor %vm920_vm12, %vm921_vm10 }
 0x427   : > { %v917_v19 = vsub.f32 1.0, %v916_v16  ;;  %vm937_vm15 = vmor %vm935_vm14, %vm936_vm11  ;;  %vm1077_vm14 = vweird.f32 %v2697_v0  ;;  %v1083_v16 = vand.u32 2147483648, %v2697_v0 }
 0x428   : > { %v932_v20 = vsub.f32 1.0, %v931_v18 }
 0x429   : > { %v1084_v26 = vor.u32 1.1754944e-38, %v1083_v16 }
 0x42a   : > { %v933_v23 = vmul.f32 %v2300_v15, %v932_v20 }
 0x42c   : > { %1196 = vadd.xlane.f32.xlu2 %v1195_v12  ;;  %v934_v28 = vadd.f32 %v2300_v15, %v933_v23 }
 0x42e   : > { %v938_v45 = vsel %vm937_vm15, %v2300_v15, %v934_v28 }
 0x42f   : > { %v943_v53 = vsel %vm940_vm3, %v942_v46, %v938_v45 }
 0x430   : > { %v944_v61 = vmul.f32 %v2675_v43, %v943_v53 }
 0x435   : > { %947 = vrot.lane.b32.xlu1 %v2637_v30, %s2477_s27 }
 0x444   : > { %1103 = vrot.lane.b32.xlu2 %v2637_v30, %s2479_s15  ;;  %v918_v30 = vmul.f32 %v2298_v14, %v917_v19  ;;  %v1081_v19 = vand.u32 2147483647, %v2697_v0 }
 0x446   : > { %v919_v25 = vadd.f32 %v2298_v14, %v918_v30 }
 0x448   : > { %v923_v38 = vsel %vm2733_vm13, %v2298_v14, %v919_v25 }
 0x449   : > { %v928_v48 = vsel %vm925_vm2, %v927_v44, %v923_v38  ;;  %v2172_v38 = vld [vmem:[#allocation4 + $0x30] sm:$0xff] }
 0x44a   : > { %v929_v54 = vmul.f32 %v2685_v52, %v928_v48 }
 0x44c   : > { %v945_v3 = vpack.c.bf16 %v944_v61, %v929_v54 }
 0x48f   : > { %v2716_v17 = vpop.xlane.xlu1 %1199 }
 0x490   : > { %2301 = vrcp.f32 %v2716_v17  ;;  %vm1221_vm5 = vweird.f32 %v2716_v17  ;;  %v1227_v63 = vand.u32 2147483648, %v2716_v17  ;;  %v1225_v1 = vand.u32 2147483647, %v2716_v17 }
 0x491   : > { %2303 = vrcp.f32 %v2697_v0 }
 0x492   : > { %v1228_v10 = vor.u32 1.1754944e-38, %v1227_v63  ;;  %vm1226_vm11 = vcmp.eq.f32.partialorder %v1225_v1, 8.507059e+37 }
 0x496   : > { %v2720_v21 = vpop.eup %2301 }
 0x497   : > { %v2723_v22 = vpop.xlane.xlu2 %1070  ;;  %v1217_v24 = vmul.f32 %v2720_v21, %v2716_v17  ;;  %v2728_v27 = vpop.eup %2303  ;;  %vm1222_vm4 = vweird.f32 %v2720_v21 }
 0x498   : > { %2305 = vrcp.f32 %v2723_v22  ;;  %v1073_v42 = vmul.f32 %v2728_v27, %v2697_v0  ;;  %vm2754_vm6 = vmor %vm1221_vm5, %vm1222_vm4  ;;  %vm1078_vm7 = vweird.f32 %v2728_v27  ;;  %vm1092_vm10 = vweird.f32 %v2723_v22 }
 0x499   : > { %v1218_v36 = vsub.f32 1.0, %v1217_v24  ;;  %v1098_v12 = vand.u32 2147483648, %v2723_v22  ;;  %v1096_v14 = vand.u32 2147483647, %v2723_v22  ;;  %vm1079_vm3 = vmor %vm1077_vm14, %vm1078_vm7  ;;  %vm1082_vm5 = vcmp.eq.f32.partialorder %v1081_v19, 8.507059e+37 }
 0x49a   : > { %v1074_v51 = vsub.f32 1.0, %v1073_v42 }
 0x49b   : > { %v1219_v47 = vmul.f32 %v2720_v21, %v1218_v36  ;;  %v1099_v30 = vor.u32 1.1754944e-38, %v1098_v12  ;;  %vm1097_vm4 = vcmp.eq.f32.partialorder %v1096_v14, 8.507059e+37  ;;  %v2171_v36 = vld [vmem:[#allocation4 + $0x28] sm:$0xff] }
 0x49c   : > { %v1075_v62 = vmul.f32 %v2728_v27, %v1074_v51 }
 0x49d   : > { %v1220_v56 = vadd.f32 %v2720_v21, %v1219_v47 }
 0x49e   : > { %v2730_v31 = vpop.eup %2305  ;;  %v1076_v8 = vadd.f32 %v2728_v27, %v1075_v62 }
 0x49f   : > { %v1088_v40 = vmul.f32 %v2730_v31, %v2723_v22  ;;  %v1197_v41 = vpop.xlane.xlu2 %1196  ;;  %v1224_v43 = vsel %vm2754_vm6, %v2720_v21, %v1220_v56  ;;  %vm1093_vm8 = vweird.f32 %v2730_v31 }
 0x4a0   : > { %2307 = vrcp.f32 %v1197_v41  ;;  %v1212_v33 = vand.u32 2147483648, %v1197_v41  ;;  %v1210_v7 = vand.u32 2147483647, %v1197_v41  ;;  %vm2769_vm12 = vmor %vm1092_vm10, %vm1093_vm8  ;;  %vm1206_vm13 = vweird.f32 %v1197_v41 }
 0x4a1   : > { %v1089_v49 = vsub.f32 1.0, %v1088_v40  ;;  %v1229_v17 = vsel %vm1226_vm11, %v1228_v10, %v1224_v43  ;;  %v1080_v23 = vsel %vm1079_vm3, %v2728_v27, %v1076_v8  ;;  %v2169_v27 = vld [vmem:[#allocation4 + $0x18] sm:$0xff] }
 0x4a2   : > { %v1213_v18 = vor.u32 1.1754944e-38, %v1212_v33  ;;  %vm1211_vm2 = vcmp.eq.f32.partialorder %v1210_v7, 8.507059e+37  ;;  %v1230_v24 = vmul.f32 %v2699_v4, %v1229_v17  ;;  %v1085_v29 = vsel %vm1082_vm5, %v1084_v26, %v1080_v23  ;;  %993 = vmatpush.bf16.msrb.mxu1 %v2169_v27  ;;  %v2168_v4 = vld [vmem:[#allocation4 + $0x10] sm:$0xff]  ;;  %v2069_v23 = vld [vmem:[#allocation6 + $0x78] sm:$0xf0] }
 0x4a3   : > { %v1090_v57 = vmul.f32 %v2730_v31, %v1089_v49  ;;  %v1086_v32 = vmul.f32 %v2681_v50, %v1085_v29  ;;  %v2480_v33 = vmov 128.0   ;;  %v2187_v26 = vld [vmem:[#allocation6 + $0x64] sm:$0xf0]  ;;  %v2061_v29 = vld [vmem:[#allocation6 + $0x68] sm:$0xf0] }
 0x4a4   : > { %2309 = vrcp.f32 %v2480_v33  ;;  %v2184_v27 = vld [vmem:[#allocation6 + $0x54] sm:$0xf] }
 0x4a5   : > { %v1091_v5 = vadd.f32 %v2730_v31, %v1090_v57  ;;  %v2271_v57 = vld [vmem:[%s2857_s4] ss:$0 sm:$0xff] }
 0x4a6   : > { %v2308_v55 = vpop.eup %2307  ;;  %994 = vmatpush.bf16.msrb.mxu1 %v2168_v4 }
 0x4a7   : > { %v1202_v58 = vmul.f32 %v2308_v55, %v1197_v41  ;;  %v1104_v59 = vpop.permute.xlu2 %1103  ;;  %v948_v60 = vpop.permute.xlu1 %947  ;;  %vm1207_vm9 = vweird.f32 %v2308_v55  ;;  %v1095_v20 = vsel %vm2769_vm12, %v2730_v31, %v1091_v5 }
 0x4a8   : > { %960 = vmatpush.bf16.msrb.mxu0 %v948_v60  ;;  %vm1208_vm15 = vmor %vm1206_vm13, %vm1207_vm9  ;;  %v1100_v0 = vsel %vm1097_vm4, %v1099_v30, %v1095_v20  ;;  %v2067_v20 = vld [vmem:[#allocation6 + $0x70] sm:$0xf]  ;;  %v2188_v30 = vld [vmem:[#allocation6 + $0x74] sm:$0xf] }
 0x4a9   : > { %v1203_v2 = vsub.f32 1.0, %v1202_v58  ;;  %v1101_v31 = vmul.f32 %v2703_v9, %v1100_v0  ;;  %v2186_v0 = vld [vmem:[#allocation6 + $0x64] sm:$0xf] }
 0x4aa   : > { %1149 = vmatpush.bf16.msra.mxu1 %v2171_v36  ;;  %v2310_v5 = vpop.eup %2309  ;;  %v2053_v36 = vld [vmem:[#allocation6 + $0x58] sm:$0xf0] }
 0x4ab   : > { %v1204_v6 = vmul.f32 %v2308_v55, %v1203_v2  ;;  %1968 = vmatmul.msk.bf16.vlgmr.msrb.gmra.mxu0 %vm799_vm1, %v945_v3  ;;  %v1102_v35 = vpack.c.bf16 %v1101_v31, %v1086_v32  ;;  %v2064_v31 = vor.u32 %v2186_v0, %v2061_v29  ;;  %v2051_v32 = vld [vmem:[#allocation6 + $0x50] sm:$0xf] }
 0x4ac   : > { %1116 = vmatpush.bf16.msra.mxu0 %v1104_v59 }
 0x4ad   : > { %v1205_v15 = vadd.f32 %v2308_v55, %v1204_v6  ;;  %v1304_v6 = vmul.f32 128.0, %v2310_v5 }
 0x4ae   : > { %1150 = vmatpush.bf16.msra.mxu1 %v2170_v37  ;;  %v2043_v37 = vld [vmem:[#allocation6 + $0x40] sm:$0xf] }
 0x4af   : > { %v1209_v21 = vsel %vm1208_vm15, %v2308_v55, %v1205_v15  ;;  %v550_v55 = vld [vmem:[%s2627_s23] sm:$0xff]   ;;  %v1305_v7 = vsub.f32 1.0, %v1304_v6 }
 0x4b0   : > { %v1214_v22 = vsel %vm1211_vm2, %v1213_v18, %v1209_v21  ;;  %v1293_v59 = vunpack.c.l.bf16 %v550_v55  ;;  %v2189_v21 = vld [vmem:[#allocation6 + $0x74] sm:$0xf0] }
 0x4b1   : > { %v1215_v25 = vmul.f32 %v2707_v11, %v1214_v22  ;;  %v2173_v11 = vld [vmem:[#allocation4 + $0x38] sm:$0xff]  ;;  %v1306_v8 = vmul.f32 %v2310_v5, %v1305_v7  ;;  %v2068_v22 = vor.u32 %v2189_v21, %v2067_v20 }
 0x4b2   : > { %1278 = vmatpush.bf16.msrb.mxu0 %v2173_v11  ;;  %v2056_v11 = vor.u32 %v2184_v27, %v2053_v36  ;;  %v2196_v36 = vld [vmem:[#allocation7 + $0x30] sm:$0xff] }
 0x4b3   : > { %v1231_v28 = vpack.c.bf16 %v1230_v24, %v1215_v25  ;;  %v1307_v10 = vadd.f32 %v2310_v5, %v1306_v8  ;;  %v2072_v24 = vor.u32 %v2188_v30, %v2069_v23  ;;  %v2059_v25 = vld [vmem:[#allocation6 + $0x60] sm:$0xf] }
 0x4b5   : > { %1999 = vmatmul.msk.bf16.vlgmr.msra.gmra.mxu3 %vm799_vm1, %v1231_v28  ;;  %1473 = vmatpush.bf16.msrb.mxu2 %v2072_v24  ;;  %v2060_v28 = vor.u32 %v2187_v26, %v2059_v25  ;;  %v2272_v25 = vld [vmem:[%s2858_s5] ss:$0 sm:$0xff] }
 0x4b6   : > { %1279 = vmatpush.bf16.msrb.mxu0 %v2172_v38  ;;  %v2183_v38 = vld [vmem:[#allocation6 + $0x44] sm:$0xf0] }
 0x4b9   : > { %1474 = vmatpush.bf16.msrb.mxu2 %v2064_v31  ;;  %v2273_v31 = vld [vmem:[%s2859_s6] ss:$0 sm:$0xff] }
 0x4bb   : > { %1988 = vmatmul.msk.bf16.vlgmr.msra.gmra.mxu0 %vm799_vm1, %v1102_v35  ;;  %v2185_v35 = vld [vmem:[#allocation6 + $0x54] sm:$0xf0] }
 0x4bc   : > { %v2052_v4 = vor.u32 %v2185_v35, %v2051_v32 }
 0x4bd   : > { %1475 = vmatpush.bf16.msrb.mxu2 %v2056_v11  ;;  %v2195_v11 = vld [vmem:[#allocation7 + $0x28] sm:$0xff] }
 0x528   : > { %v962_v9 = vpop.f32.mrf.mxu0 }
 0x530   : > { %v964_v40 = vpop.f32.mrf.mxu0 }
 0x531   : > { %v967_v41 = vpack.c.bf16 %v964_v40, %v962_v9  ;;  %v2182_v9 = vld [vmem:[#allocation6 + $0x44] sm:$0xf]  ;;  %v2044_v40 = vor.u32 %v2183_v38, %v2043_v37  ;;  %v2204_v37 = vld [vmem:[#allocation7 + $0x70] sm:$0xff] }
 0x532   : > { %v2194_v38 = vld [vmem:[#allocation7 + $0x20] sm:$0xff] }
 0x533   : > { %1977 = vmatmul.msk.bf16.vlgmr.msrb.gmra.mxu1 %vm778_vm0, %v967_v41  ;;  %v2045_v41 = vld [vmem:[#allocation6 + $0x48] sm:$0xf0] }
 0x534   : > { %1459 = vmatpush.bf16.msrb.mxu1 %v2068_v22 }
 0x538   : > { %v1118_v50 = vpop.f32.mrf.mxu0  ;;  %v1247_v42 = vpop.f32.mrf.mxu3  ;;  %1460 = vmatpush.bf16.msrb.mxu1 %v2060_v28 }
 0x53c   : > { %1461 = vmatpush.bf16.msrb.mxu1 %v2052_v4  ;;  %v2197_v4 = vld [vmem:[#allocation7 + $0x38] sm:$0xff] }
 0x53d   : > { %1657 = vmatpush.bf16.msrb.mxu3 %v2197_v4 }
 0x540   : > { %v1120_v44 = vpop.f32.mrf.mxu0  ;;  %v1249_v45 = vpop.f32.mrf.mxu3  ;;  %1462 = vmatpush.bf16.msrb.mxu1 %v2044_v40  ;;  %v2193_v40 = vld [vmem:[#allocation7 + $0x18] sm:$0xff] }
 0x541   : > { %v1123_v46 = vpack.c.bf16 %v1120_v44, %v1118_v50  ;;  %v1252_v47 = vpack.c.bf16 %v1249_v45, %v1247_v42  ;;  %v2048_v50 = vor.u32 %v2182_v9, %v2045_v41  ;;  %v2035_v42 = vld [vmem:[#allocation6 + $0x30] sm:$0xf]  ;;  %v2181_v44 = vld [vmem:[#allocation6 + $0x34] sm:$0xf0]  ;;  %v2180_v45 = vld [vmem:[#allocation6 + $0x34] sm:$0xf]  ;;  %1658 = vmatpush.bf16.msrb.mxu3 %v2196_v36 }
 0x542   : > { %v2203_v9 = vld [vmem:[#allocation7 + $0x68] sm:$0xff]  ;;  %v2202_v41 = vld [vmem:[#allocation7 + $0x60] sm:$0xff] }
 0x543   : > { %1997 = vmatmul.msk.bf16.vlgmr.msra.gmra.mxu1 %vm778_vm0, %v1123_v46  ;;  %2008 = vmatmul.msk.bf16.vlgmr.msrb.gmra.mxu0 %vm778_vm0, %v1252_v47  ;;  %vm1308_vm0 = vweird.f32 %v2310_v5  ;;  %v2036_v46 = vor.u32 %v2181_v44, %v2035_v42  ;;  %v2037_v47 = vld [vmem:[#allocation6 + $0x38] sm:$0xf0]  ;;  %v2191_v44 = vld [vmem:[#allocation7 + $0x8] sm:$0xff] }
 0x544   : > { %v2799_v12 = vsel %vm1308_vm0, %v2310_v5, %v1307_v10  ;;  %1476 = vmatpush.bf16.msrb.mxu2 %v2048_v50  ;;  %v2192_v50 = vld [vmem:[#allocation7 + $0x10] sm:$0xff]  ;;  %v2201_v42 = vld [vmem:[#allocation7 + $0x58] sm:$0xff] }
 0x545   : > { %1463 = vmatpush.bf16.msrb.mxu1 %v2036_v46  ;;  %1659 = vmatpush.bf16.msrb.mxu3 %v2195_v11  ;;  %v2200_v46 = vld [vmem:[#allocation7 + $0x50] sm:$0xff] }
 0x549   : > { %1660 = vmatpush.bf16.msrb.mxu3 %v2194_v38 }
 0x54d   : > { %1661 = vmatpush.bf16.msrb.mxu3 %v2193_v40 }
 0x551   : > { %1662 = vmatpush.bf16.msrb.mxu3 %v2192_v50 }
 0x555   : > { %1663 = vmatpush.bf16.msrb.mxu3 %v2191_v44 }
 0x5b0   : > { %v996_v48 = vpop.f32.mrf.mxu1 }
 0x5b1   : > { %v1026_v51 = vadd.f32 %v2671_v34, %v996_v48  ;;  %v1294_v34 = vunpack.c.h.bf16 %v550_v55  ;;  %v2040_v48 = vor.u32 %v2180_v45, %v2037_v47  ;;  %v2029_v55 = vld [vmem:[#allocation6 + $0x28] sm:$0xf0]  ;;  %v1373_v45 = vld [vmem:[%s2861_s8] sm:$0x3] }
 0x5b2   : > { %v2190_v47 = vld [vmem:[#allocation7] sm:$0xff] }
 0x5b3   : > { %1477 = vmatpush.bf16.msrb.mxu2 %v2040_v48  ;;  %v1375_v48 = vperm.slane %v1373_v45, 0  ;;  %1664 = vmatpush.bf16.msrb.mxu3 %v2190_v47 }
 0x5b8   : > { %v998_v49 = vpop.f32.mrf.mxu1 }
 0x5b9   : > { %v1028_v61 = vadd.f32 %v2673_v39, %v998_v49  ;;  %v2027_v49 = vld [vmem:[#allocation6 + $0x20] sm:$0xf] }
 0x5c0   : > { %v1152_v53 = vpop.f32.mrf.mxu1  ;;  %v1281_v54 = vpop.f32.mrf.mxu0 }
 0x5c1   : > { %v1157_v56 = vadd.f32 %v1152_v53, %v1026_v51  ;;  %v2179_v51 = vld [vmem:[#allocation6 + $0x24] sm:$0xf0]  ;;  %v2178_v53 = vld [vmem:[#allocation6 + $0x24] sm:$0xf] }
 0x5c3   : > { %v1286_v58 = vadd.f32 %v1281_v54, %v1157_v56  ;;  %v2028_v54 = vor.u32 %v2179_v51, %v2027_v49  ;;  %v2032_v56 = vor.u32 %v2178_v53, %v2029_v55  ;;  %v2199_v49 = vld [vmem:[#allocation7 + $0x48] sm:$0xff] }
 0x5c5   : > { %v1291_v60 = vadd.f32 %v2271_v57, %v1286_v58  ;;  %1464 = vmatpush.bf16.msrb.mxu1 %v2028_v54  ;;  %1478 = vmatpush.bf16.msrb.mxu2 %v2032_v56  ;;  %v2177_v58 = vld [vmem:[#allocation6 + $0x14] sm:$0xf0]  ;;  %v2198_v54 = vld [vmem:[#allocation7 + $0x40] sm:$0xff]  ;;  %v1376_v56 = vperm.slane %v1373_v45, 1 }
 0x5c7   : > { %v1295_v62 = vadd.f32 %v1293_v59, %v1291_v60  ;;  %v2176_v59 = vld [vmem:[#allocation6 + $0x14] sm:$0xf] }
 0x5c8   : > { %v1154_v63 = vpop.f32.mrf.mxu1  ;;  %v1283_v1 = vpop.f32.mrf.mxu0 }
 0x5c9   : > { %v1158_v52 = vadd.f32 %v1154_v63, %v1028_v61  ;;  %1299 = vadd.xlane.f32.xlu0 %v1295_v62  ;;  %v2021_v61 = vld [vmem:[#allocation6 + $0x18] sm:$0xf0]  ;;  %v2175_v63 = vld [vmem:[#allocation6 + $0x4] sm:$0xf0] }
 0x5cb   : > { %v1287_v2 = vadd.f32 %v1283_v1, %v1158_v52  ;;  %v2024_v1 = vor.u32 %v2176_v59, %v2021_v61 }
 0x5cd   : > { %v1292_v3 = vadd.f32 %v2271_v57, %v1287_v2  ;;  %v2019_v57 = vld [vmem:[#allocation6 + $0x10] sm:$0xf]  ;;  %v2174_v2 = vld [vmem:[#allocation6 + $0x4] sm:$0xf]  ;;  %1479 = vmatpush.bf16.msrb.mxu2 %v2024_v1 }
 0x5ce   : > { %v2020_v60 = vor.u32 %v2177_v58, %v2019_v57 }
 0x5cf   : > { %v1296_v43 = vadd.f32 %v1294_v34, %v1292_v3  ;;  %v2013_v34 = vld [vmem:[#allocation6 + $0x8] sm:$0xf0] }
 0x5d0   : > { %1465 = vmatpush.bf16.msrb.mxu1 %v2020_v60  ;;  %v2016_v33 = vor.u32 %v2174_v2, %v2013_v34 }
 0x5d1   : > { %1301 = vadd.xlane.f32.xlu1 %v1296_v43 }
 0x5d2   : > { %1480 = vmatpush.bf16.msrb.mxu2 %v2016_v33 }
 0x63c   : > { %v1300_v39 = vpop.xlane.xlu0 %1299 }
 0x63d   : > { %v1310_v13 = vmul.f32 %v2799_v12, %v1300_v39 }
 0x63f   : > { %v2802_v14 = vsub.f32 %v1295_v62, %v1310_v13  ;;  %v2011_v62 = vld [vmem:[#allocation6] sm:$0xf] }
 0x641   : > { %v1314_v15 = vmul.f32 %v2802_v14, %v2802_v14 }
 0x643   : > { %1316 = vadd.xlane.f32.xlu2 %v1314_v15 }
 0x644   : > { %v1302_v16 = vpop.xlane.xlu1 %1301 }
 0x645   : > { %v1311_v17 = vmul.f32 %v2799_v12, %v1302_v16 }
 0x647   : > { %v2807_v18 = vsub.f32 %v1296_v43, %v1311_v17  ;;  %v2012_v43 = vor.u32 %v2175_v63, %v2011_v62 }
 0x649   : > { %v1315_v19 = vmul.f32 %v2807_v18, %v2807_v18  ;;  %1466 = vmatpush.bf16.msrb.mxu1 %v2012_v43 }
 0x64b   : > { %1318 = vadd.xlane.f32.xlu0 %v1315_v19 }
 0x6b6   : > { %v1317_v52 = vpop.xlane.xlu2 %1316 }
 0x6b7   : > { %v1320_v3 = vmul.f32 %v1317_v52, %v2799_v12 }
 0x6b9   : > { %v1322_v5 = vadd.f32 1e-05, %v1320_v3 }
 0x6bb   : > { %2311 = vrsqrt.f32 %v1322_v5  ;;  %vm1330_vm6 = vweird.f32 %v1322_v5 }
 0x6be   : > { %v1319_v6 = vpop.xlane.xlu0 %1318 }
 0x6bf   : > { %v1321_v7 = vmul.f32 %v1319_v6, %v2799_v12 }
 0x6c1   : > { %v2312_v8 = vpop.eup %2311  ;;  %v1323_v10 = vadd.f32 1e-05, %v1321_v7 }
 0x6c2   : > { %v1325_v39 = vmul.f32 %v2312_v8, %v1322_v5  ;;  %vm1331_vm1 = vweird.f32 %v2312_v8 }
 0x6c3   : > { %2313 = vrsqrt.f32 %v1323_v10  ;;  %vm1332_vm7 = vmor %vm1330_vm6, %vm1331_vm1  ;;  %vm1340_vm9 = vweird.f32 %v1323_v10 }
 0x6c4   : > { %v1326_v13 = vmul.f32 %v2312_v8, %v1325_v39 }
 0x6c6   : > { %v1327_v15 = vmul.f32 0.5, %v1326_v13 }
 0x6c8   : > { %v1328_v16 = vsub.f32 1.5, %v1327_v15 }
 0x6c9   : > { %v2314_v17 = vpop.eup %2313 }
 0x6ca   : > { %v1329_v19 = vmul.f32 %v2312_v8, %v1328_v16  ;;  %v1335_v20 = vmul.f32 %v2314_v17, %v1323_v10  ;;  %vm1341_vm8 = vweird.f32 %v2314_v17 }
 0x6cb   : > { %vm1342_vm10 = vmor %vm1340_vm9, %vm1341_vm8 }
 0x6cc   : > { %v1336_v21 = vmul.f32 %v2314_v17, %v1335_v20  ;;  %v1333_v30 = vsel %vm1332_vm7, %v2312_v8, %v1329_v19 }
 0x6cd   : > { %v1344_v24 = vmul.f32 %v1333_v30, %v2802_v14 }
 0x6ce   : > { %v1337_v22 = vmul.f32 0.5, %v1336_v21 }
 0x6cf   : > { %v1349_v29 = vmul.f32 %v2272_v25, %v1344_v24 }
 0x6d0   : > { %v1338_v23 = vsub.f32 1.5, %v1337_v22 }
 0x6d1   : > { %v2821_v35 = vadd.f32 %v2273_v31, %v1349_v29 }
 0x6d2   : > { %v1339_v26 = vmul.f32 %v2314_v17, %v1338_v23 }
 0x6d4   : > { %v1343_v0 = vsel %vm1342_vm10, %v2314_v17, %v1339_v26 }
 0x6d5   : > { %v1345_v28 = vmul.f32 %v1343_v0, %v2807_v18  ;;  %v2205_v18 = vld [vmem:[#allocation7 + $0x78] sm:$0xff] }
 0x6d6   : > { %1671 = vmatpush.bf16.msra.mxu0 %v2205_v18 }
 0x6d7   : > { %v1350_v32 = vmul.f32 %v2272_v25, %v1345_v28 }
 0x6d9   : > { %v2823_v27 = vadd.f32 %v2273_v31, %v1350_v32 }
 0x6da   : > { %1672 = vmatpush.bf16.msra.mxu0 %v2204_v37  ;;  %v2274_v37 = vld [vmem:[%s2863_s10] ss:$0 sm:$0xff] }
 0x6db   : > { %v1356_v14 = vpack.c.bf16 %v2823_v27, %v2821_v35 }
 0x6dd   : > { %1467 = vmatmul.bf16.vlgmr.msrb.gmra.mxu1 %v1356_v14  ;;  %1481 = vmatmul.bf16.vlgmr.msrb.gmra.mxu2 %v1356_v14 }
 0x6de   : > { %1673 = vmatpush.bf16.msra.mxu0 %v2203_v9 }
 0x6e2   : > { %1674 = vmatpush.bf16.msra.mxu0 %v2202_v41 }
 0x6e6   : > { %1675 = vmatpush.bf16.msra.mxu0 %v2201_v42 }
 0x6ea   : > { %1676 = vmatpush.bf16.msra.mxu0 %v2200_v46 }
 0x6ee   : > { %1677 = vmatpush.bf16.msra.mxu0 %v2199_v49 }
 0x6f2   : > { %1678 = vmatpush.bf16.msra.mxu0 %v2198_v54 }
 0x75a   : > { %v1468_v51 = vpop.f32.mrf.mxu1 }
 0x75b   : > { %v1469_v53 = vadd.f32 %v1468_v51, %v1375_v48 }
 0x75d   : > { %v1491_v55 = vmul.f32 0.044715, %v1469_v53  ;;  %v1487_v22 = vmul.f32 0.5, %v1469_v53 }
 0x75f   : > { %v1495_v57 = vmul.f32 %v1491_v55, %v1469_v53 }
 0x760   : > { %v1482_v58 = vpop.f32.mrf.mxu2 }
 0x761   : > { %v1499_v59 = vmul.f32 %v1495_v57, %v1469_v53  ;;  %v1483_v60 = vadd.f32 %v1482_v58, %v1376_v56 }
 0x762   : > { %v1470_v61 = vpop.f32.mrf.mxu1 }
 0x763   : > { %v1503_v62 = vadd.f32 %v1499_v59, %v1469_v53  ;;  %v1492_v63 = vmul.f32 0.044715, %v1483_v60  ;;  %v1471_v52 = vadd.f32 %v1470_v61, %v1375_v48  ;;  %v1488_v32 = vmul.f32 0.5, %v1483_v60 }
 0x765   : > { %v1496_v1 = vmul.f32 %v1492_v63, %v1483_v60  ;;  %v1493_v2 = vmul.f32 0.044715, %v1471_v52  ;;  %v1507_v34 = vmul.f32 0.7978846, %v1503_v62  ;;  %v1489_v23 = vmul.f32 0.5, %v1471_v52 }
 0x767   : > { %v1500_v3 = vmul.f32 %v1496_v1, %v1483_v60  ;;  %v1497_v43 = vmul.f32 %v1493_v2, %v1471_v52  ;;  %2315 = vtanh.f32 %v1507_v34 }
 0x768   : > { %v1484_v33 = vpop.f32.mrf.mxu2 }
 0x769   : > { %v1504_v5 = vadd.f32 %v1500_v3, %v1483_v60  ;;  %v1501_v6 = vmul.f32 %v1497_v43, %v1471_v52  ;;  %v1485_v7 = vadd.f32 %v1484_v33, %v1376_v56 }
 0x76b   : > { %v1505_v8 = vadd.f32 %v1501_v6, %v1471_v52  ;;  %v1494_v10 = vmul.f32 0.044715, %v1485_v7  ;;  %v1508_v39 = vmul.f32 0.7978846, %v1504_v5  ;;  %v1490_v14 = vmul.f32 0.5, %v1485_v7 }
 0x76d   : > { %v1509_v13 = vmul.f32 0.7978846, %v1505_v8  ;;  %v1498_v15 = vmul.f32 %v1494_v10, %v1485_v7  ;;  %v2316_v17 = vpop.eup %2315 }
 0x76e   : > { %v1515_v21 = vadd.f32 1.0, %v2316_v17 }
 0x76f   : > { %v1502_v16 = vmul.f32 %v1498_v15, %v1485_v7  ;;  %2317 = vtanh.f32 %v1509_v13  ;;  %v2276_v13 = vld [vmem:[%s2884_s28] ss:$0 sm:$0xff] }
 0x770   : > { %2319 = vtanh.f32 %v1508_v39  ;;  %v1519_v26 = vmul.f32 %v1515_v21, %v1487_v22 }
 0x771   : > { %v1506_v19 = vadd.f32 %v1502_v16, %v1485_v7 }
 0x773   : > { %v1510_v20 = vmul.f32 0.7978846, %v1506_v19 }
 0x775   : > { %v2318_v30 = vpop.eup %2317  ;;  %2321 = vtanh.f32 %v1510_v20 }
 0x776   : > { %v1517_v24 = vadd.f32 1.0, %v2318_v30  ;;  %v2320_v25 = vpop.eup %2319 }
 0x777   : > { %v1516_v29 = vadd.f32 1.0, %v2320_v25 }
 0x778   : > { %v1521_v0 = vmul.f32 %v1517_v24, %v1489_v23 }
 0x779   : > { %v1520_v36 = vmul.f32 %v1516_v29, %v1488_v32 }
 0x77a   : > { %v1523_v28 = vpack.c.bf16 %v1521_v0, %v1519_v26 }
 0x77b   : > { %v2322_v31 = vpop.eup %2321 }
 0x77c   : > { %1665 = vmatmul.bf16.vlgmr.msrb.gmra.mxu3 %v1523_v28  ;;  %v1518_v4 = vadd.f32 1.0, %v2322_v31 }
 0x77e   : > { %v1522_v18 = vmul.f32 %v1518_v4, %v1490_v14 }
 0x780   : > { %v1524_v11 = vpack.c.bf16 %v1522_v18, %v1520_v36 }
 0x782   : > { %1679 = vmatmul.bf16.vlgmr.msra.gmra.mxu0 %v1524_v11 }
 0x7ff   : > { %v1666_v38 = vpop.f32.mrf.mxu3  ;;  %v1680_v9 = vpop.f32.mrf.mxu0 }
 0x800   : > { %v1667_v40 = vadd.f32 %v2274_v37, %v1666_v38 }
 0x802   : > { %v1681_v41 = vadd.f32 %v1680_v9, %v1667_v40 }
 0x804   : > { %v1685_v50 = vadd.f32 %v1681_v41, %v2821_v35 }
 0x806   : > { %1689 = vadd.xlane.f32.xlu1 %v1685_v50 }
 0x807   : > { %v1668_v42 = vpop.f32.mrf.mxu3  ;;  %v1682_v45 = vpop.f32.mrf.mxu0 }
 0x808   : > { %v1669_v44 = vadd.f32 %v2274_v37, %v1668_v42 }
 0x80a   : > { %v1683_v46 = vadd.f32 %v1682_v45, %v1669_v44 }
 0x80c   : > { %v1686_v47 = vadd.f32 %v1683_v46, %v2823_v27 }
 0x80e   : > { %1691 = vadd.xlane.f32.xlu2 %v1686_v47 }
 0x879   : > { %v1690_v48 = vpop.xlane.xlu1 %1689 }
 0x87a   : > { %v1693_v49 = vmul.f32 %v1690_v48, %v2799_v12 }
 0x87c   : > { %v1695_v51 = vsub.f32 %v1685_v50, %v1693_v49 }
 0x87e   : > { %v1697_v53 = vmul.f32 %v1695_v51, %v1695_v51 }
 0x880   : > { %1699 = vadd.xlane.f32.xlu0 %v1697_v53 }
 0x881   : > { %v1692_v54 = vpop.xlane.xlu2 %1691 }
 0x882   : > { %v1694_v55 = vmul.f32 %v1692_v54, %v2799_v12 }
 0x884   : > { %v1696_v56 = vsub.f32 %v1686_v47, %v1694_v55 }
 0x886   : > { %v1698_v57 = vmul.f32 %v1696_v56, %v1696_v56 }
 0x888   : > { %1701 = vadd.xlane.f32.xlu1 %v1698_v57 }
 0x8f3   : > { %v1700_v35 = vpop.xlane.xlu0 %1699 }
 0x8f4   : > { %v1703_v58 = vmul.f32 %v1700_v35, %v2799_v12 }
 0x8f6   : > { %v1705_v59 = vadd.f32 1e-05, %v1703_v58 }
 0x8f8   : > { %2323 = vrsqrt.f32 %v1705_v59  ;;  %vm1713_vm12 = vweird.f32 %v1705_v59 }
 0x8fb   : > { %v1702_v60 = vpop.xlane.xlu1 %1701 }
 0x8fc   : > { %v1704_v27 = vmul.f32 %v1702_v60, %v2799_v12  ;;  %v2275_v12 = vld [vmem:[%s2864_s11] ss:$0 sm:$0xff] }
 0x8fe   : > { %v2324_v61 = vpop.eup %2323  ;;  %v1706_v62 = vadd.f32 1e-05, %v1704_v27 }
 0x8ff   : > { %v1708_v63 = vmul.f32 %v2324_v61, %v1705_v59  ;;  %vm1714_vm11 = vweird.f32 %v2324_v61 }
 0x900   : > { %2325 = vrsqrt.f32 %v1706_v62  ;;  %vm1715_vm13 = vmor %vm1713_vm12, %vm1714_vm11  ;;  %vm1723_vm15 = vweird.f32 %v1706_v62 }
 0x901   : > { %v1709_v52 = vmul.f32 %v2324_v61, %v1708_v63 }
 0x903   : > { %v1710_v1 = vmul.f32 0.5, %v1709_v52 }
 0x905   : > { %v1711_v2 = vsub.f32 1.5, %v1710_v1 }
 0x906   : > { %v2326_v34 = vpop.eup %2325 }
 0x907   : > { %v1712_v3 = vmul.f32 %v2324_v61, %v1711_v2  ;;  %v1718_v43 = vmul.f32 %v2326_v34, %v1706_v62  ;;  %vm1724_vm14 = vweird.f32 %v2326_v34 }
 0x908   : > { %vm1725_vm2 = vmor %vm1723_vm15, %vm1724_vm14 }
 0x909   : > { %v1719_v33 = vmul.f32 %v2326_v34, %v1718_v43  ;;  %v1716_v5 = vsel %vm1715_vm13, %v2324_v61, %v1712_v3 }
 0x90a   : > { %v1727_v8 = vmul.f32 %v1716_v5, %v1695_v51 }
 0x90b   : > { %v1720_v6 = vmul.f32 0.5, %v1719_v33 }
 0x90c   : > { %v1732_v15 = vmul.f32 %v2275_v12, %v1727_v8 }
 0x90d   : > { %v1721_v7 = vsub.f32 1.5, %v1720_v6 }
 0x90e   : > { %v1737_v19 = vadd.f32 %v2276_v13, %v1732_v15 }
 0x90f   : > { %v1722_v10 = vmul.f32 %v2326_v34, %v1721_v7 }
 0x911   : > { %v1726_v39 = vsel %vm1725_vm2, %v2326_v34, %v1722_v10 }
 0x912   : > { %v1728_v16 = vmul.f32 %v1726_v39, %v1696_v56 }
 0x914   : > { %v1733_v17 = vmul.f32 %v2275_v12, %v1728_v16 }
 0x916   : > { %v1738_v20 = vadd.f32 %v2276_v13, %v1733_v17 }
 0x918   : > { %v2209_v21 = vpack.c.bf16 %v1738_v20, %v1737_v19 }
 0x91a   : > { %2210 = vst [vmem:[%s548_s22] sm:$0xff] %v2209_v21  }
 0x91b PF: > { %s2886_s25 = sld [smem:[#allocation12_spill]] }
 0x921   : > { %s27_s29 = sadd.s32 1, %s2886_s25  }
 0x922   : > { %p24_p7 = scmp.ge.s32.totalorder %s27_s29, 4  }
 0x924   :  { %26 = sbr.rel (!%p24_p7) target bundleno = 8 (0x8), region = 126 }
 0x929   :  { %1764 = vsyncpa [#allocation3], 1 }
 0x92a   :  { %1766 = vsyncpa [#allocation3 + $0x1], 1 }
 0x92b   :  { %1767 = vsyncpa [#allocation5], 1 }
 0x92c   :  { %1768 = vsyncpa [#allocation8], 1 }

// kernel: fcbart_forward.8
= control target key start
LH: loop header
LB: loop body
LE: loop exit
PB: predicated region body
PF: predicated region fallthrough
CT: control target
= control target key end

     0   :  { %s4593_s0 = inlined_call_operand.vmem [shape: bf16[2,16,128], index: 0, kind: input, shape index: {}]   ;;  %s4594_s1 = inlined_call_operand.vmem [shape: bf16[2,16,128], index: 1, kind: input, shape index: {}]   ;;  %s4595_s2 = inlined_call_operand.vmem [shape: bf16[128,384], index: 2, kind: input, shape index: {}]   ;;  %s4596_s3 = inlined_call_operand.vmem [shape: f32[1,384], index: 3, kind: input, shape index: {}]   ;;  %s4597_s4 = inlined_call_operand.vmem [shape: bf16[128,128], index: 4, kind: input, shape index: {}]   ;;  %s4598_s5 = inlined_call_operand.vmem [shape: f32[1,128], index: 5, kind: input, shape index: {}, may-alias: {5,7,9,13,15,19,21}]   ;;  %s4599_s6 = inlined_call_operand.vmem [shape: f32[1,128], index: 6, kind: input, shape index: {}, may-alias: {6,14,20}]   ;;  %s4600_s7 = inlined_call_operand.vmem [shape: f32[1,128], index: 7, kind: input, shape index: {}, may-alias: {5,7,9,13,15,19,21}]   ;;  %s4601_s8 = inlined_call_operand.hbm [shape: bf16[128,128], index: 8, kind: input, shape index: {}]   ;;  %s4602_s9 = inlined_call_operand.vmem [shape: f32[1,128], index: 9, kind: input, shape index: {}, may-alias: {5,7,9,13,15,19,21}]   ;;  %s4603_s10 = inlined_call_operand.hbm [shape: bf16[128,256], index: 10, kind: input, shape index: {}]   ;;  %s4604_s11 = inlined_call_operand.vmem [shape: f32[1,256], index: 11, kind: input, shape index: {}, may-alias: {11,17}]   ;;  %s4605_s12 = inlined_call_operand.hbm [shape: bf16[128,128], index: 12, kind: input, shape index: {}]   ;;  %s4606_s13 = inlined_call_operand.vmem [shape: f32[1,128], index: 13, kind: input, shape index: {}, may-alias: {5,7,9,13,15,19,21}]   ;;  %s4607_s14 = inlined_call_operand.vmem [shape: f32[1,128], index: 14, kind: input, shape index: {}, may-alias: {6,14,20}]   ;;  %s4608_s15 = inlined_call_operand.vmem [shape: f32[1,128], index: 15, kind: input, shape index: {}, may-alias: {5,7,9,13,15,19,21}]   ;;  %s4609_s16 = inlined_call_operand.hbm [shape: bf16[128,256], index: 16, kind: input, shape index: {}]   ;;  %s4610_s17 = inlined_call_operand.vmem [shape: f32[1,256], index: 17, kind: input, shape index: {}, may-alias: {11,17}]   ;;  %s4611_s18 = inlined_call_operand.hbm [shape: bf16[256,128], index: 18, kind: input, shape index: {}]   ;;  %s4612_s19 = inlined_call_operand.vmem [shape: f32[1,128], index: 19, kind: input, shape index: {}, may-alias: {5,7,9,13,15,19,21}]   ;;  %s4613_s20 = inlined_call_operand.vmem [shape: f32[1,128], index: 20, kind: input, shape index: {}, may-alias: {6,14,20}]   ;;  %s4614_s21 = inlined_call_operand.vmem [shape: f32[1,128], index: 21, kind: input, shape index: {}, may-alias: {5,7,9,13,15,19,21}]   ;;  %s4615_s22 = inlined_call_operand.vmem [shape: f32[2,1,16], index: 22, kind: input, shape index: {}]   ;;  %s4616_s23 = inlined_call_operand.vmem [shape: bf16[2,16,128], index: 23, kind: output, shape index: {}]  }
   0x1   :  { %4620 = sst [smem:[#allocation14_spill]] %s4593_s0 }
   0x2   :  { %4621 = sst [smem:[#allocation15_spill]] %s4594_s1 }
   0x3   :  { %4622 = sst [smem:[#allocation16_spill]] %s4595_s2 }
   0x4   :  { %4623 = sst [smem:[#allocation17_spill]] %s4596_s3 }
   0x5   :  { %4624 = sst [smem:[#allocation18_spill]] %s4597_s4 }
   0x6   :  { %4625 = sst [smem:[#allocation19_spill]] %s4598_s5 }
   0x7   :  { %4626 = sst [smem:[#allocation20_spill]] %s4599_s6 }
   0x8   :  { %4627 = sst [smem:[#allocation21_spill]] %s4600_s7 }
   0x9   :  { %4628 = sst [smem:[#allocation22_spill]] %s4601_s8 }
   0xa   :  { %4629 = sst [smem:[#allocation23_spill]] %s4603_s10 }
   0xb   :  { %4630 = sst [smem:[#allocation24_spill]] %s4609_s16 }
   0xc   :  { %4631 = sst [smem:[#allocation25_spill]] %s4616_s23 }
   0xd   :  { %28 = vsyncpa [#allocation3], 0 }
   0xe   :  { %29 = vsyncpa [#allocation5], 0 }
   0xf   :  { %30 = vsyncpa [#allocation8], 0  ;;  %s3965_s4 = smov 0  }
  0x10 LB: > { %4632 = sst [smem:[#allocation13_spill]] %s3829_s4  ;;  %s3974_s5 = sadd.s32 4294967295, %s3829_s4   ;;  %s3829_s4 = sphi %s3965_s4, %s36_s4  }
  0x11   : > { %s4633_s10 = sld [smem:[#allocation23_spill]]  ;;  %p2953_p0 = scmp.ge.s32.totalorder %s3829_s4, 1 }
  0x12   : > { %p565_p1 = scmp.lt.s32.totalorder %s3829_s4, 3  ;;  %p3532_p2 = scmp.eq.s32.totalorder %s3974_s5, 0 }
  0x13   : > { %s3831_s26 = smov [#allocation4]   ;;  %s4635_s16 = sld [smem:[#allocation24_spill]] }
  0x14   : > { %p3979_p3 = pnand %p2953_p0, %p565_p1  ;;  %s613_s2 = sshll.u32 %s3831_s26, 4  ;;  %s614_s2 = int_to_ptr.vmem [resolvable:$true] %s613_s2 }
  0x15   : > { %s3832_s29 = smov [#allocation7]   ;;  %s4637_s8 = sld [smem:[#allocation22_spill]] }
  0x16   : > { %p3516_p4 = pneg %p3979_p3  ;;  %s653_s3 = sshll.u32 %s3832_s29, 4  ;;  %s654_s3 = int_to_ptr.vmem [resolvable:$true] %s653_s3 }
  0x17   : > { %s611_s25 = sshll.u32 %s4633_s10, 4  ;;  %s3833_s26 = smov 128   ;;  %s612_s25 = int_to_ptr.hbm [resolvable:$true] %s611_s25 }
  0x18   : > { %p3990_p5 = pnand %p3532_p2, %p3516_p4  ;;  %s3834_s10 = smov 8  }
  0x19   : > { %s651_s7 = sshll.u32 %s4635_s16, 4  ;;  %s3835_s6 = smov [#allocation2]   ;;  %s652_s7 = int_to_ptr.hbm [resolvable:$true] %s651_s7 }
  0x1a   : > { %3522 = dma.hbm_to_vmem [thread:$0]  (!%p3990_p5), %s612_s25, 2048, %s614_s2, [#allocation5], %s3833_s26, %s3833_s26, %s3834_s10  }
  0x1b   : > { %s594_s24 = sshll.u32 %s4637_s8, 4  ;;  %s596_s27 = sshll.u32 %s3835_s6, 4  ;;  %s595_s24 = int_to_ptr.hbm [resolvable:$true] %s594_s24  ;;  %s597_s27 = int_to_ptr.vmem [resolvable:$true] %s596_s27 }
  0x1c   : > { %3528 = dma.hbm_to_vmem [thread:$0]  (!%p3990_p5), %s652_s7, 2048, %s654_s3, [#allocation8], %s3833_s26, %s3833_s26, %s3834_s10  }
  0x1d   : > { %s3836_s16 = smov 64   ;;  %s3837_s4 = smov 4  }
  0x1e   : > { %3519 = dma.hbm_to_vmem [thread:$0]  (!%p3990_p5), %s595_s24, 1024, %s597_s27, [#allocation3], %s3836_s16, %s3836_s16, %s3837_s4  }
  0x1f   : > { %s628_s30 = sshll.u32 %s4605_s12, 4  ;;  %s3838_s8 = smov [#allocation6]   ;;  %s629_s30 = int_to_ptr.hbm [resolvable:$true] %s628_s30 }
  0x20   : > { %s630_s23 = sshll.u32 %s3838_s8, 4  ;;  %s668_s10 = sshll.u32 %s4611_s18, 4  ;;  %s631_s23 = int_to_ptr.vmem [resolvable:$true] %s630_s23  ;;  %s669_s10 = int_to_ptr.hbm [resolvable:$true] %s668_s10 }
  0x21   : > { %3525 = dma.hbm_to_vmem [thread:$0]  (!%p3990_p5), %s629_s30, 1024, %s631_s23, [#allocation5], %s3836_s16, %s3836_s16, %s3837_s4  }
  0x22   : > { %s3839_s7 = smov [#allocation9]   ;;  %717 = sbr.rel (%p3979_p3) target bundleno = 3999 (0xf9f), region = 112 }
  0x23   : > { %s670_s3 = sshll.u32 %s3839_s7, 4  ;;  %s671_s3 = int_to_ptr.vmem [resolvable:$true] %s670_s3 }
  0x24   : > { %3531 = dma.hbm_to_vmem [thread:$0]  (!%p3990_p5), %s669_s10, 2048, %s671_s3, [#allocation8], %s3836_s16, %s3836_s16, %s3837_s4  }
  0x27   : > { %3816 = dma.done.wait (%p3532_p2), [#allocation3], 1024  }
  0x28   : > { %3818 = vsyncadd (%p3532_p2), [#allocation3], 4294966272 }
  0x29   : > { %3820 = dma.done.wait (%p3532_p2), [#allocation5], 3072  }
  0x2a   : > { %3822 = vsyncadd (%p3532_p2), [#allocation5], 4294964224 }
  0x2b   : > { %3824 = dma.done.wait (%p3532_p2), [#allocation8], 4096  }
  0x2c   : > { %3826 = vsyncadd (%p3532_p2), [#allocation8], 4294963200  ;;  %s4638_s23 = sld [smem:[#allocation16_spill]]  ;;  %p810_p6 = scmp.lt.s32.totalorder %s3974_s5, 1  ;;  %vm1064_vm0 = vcmask 261120   ;;  %vm1085_vm2 = vcmask 130048  }
  0x2d   : > { %s4639_s27 = sld [smem:[#allocation14_spill]]  ;;  %s3840_s25 = smov 96  }
  0x2e   : > { %s4657_s5 = smov (!%p810_p6, %s3974_s5), 1  ;;  %s4640_s0 = sld [smem:[#allocation17_spill]] }
  0x2f   : > { %s822_s4 = scalar_lea.vmem %s4615_s22, %s4657_s5  ;;  %s4147_s30 = sshll.u32 %s4657_s5, 3 }
  0x30   : > { %s3841_s2 = smov 32   ;;  %s3842_s10 = smov 64  }
  0x31   : > { %s4641_s8 = sld [smem:[#allocation18_spill]] }
  0x32   : > { %v3062_v0 = vld [vmem:[%s4638_s23 + $0xa8] sm:$0xf]  ;;  %v3417_v1 = vld [vmem:[%s4638_s23 + $0xb0] sm:$0xf0]  ;;  %v3416_v2 = vld [vmem:[%s4638_s23 + $0xac] sm:$0xf] }
  0x33   : > { %v3063_v3 = vor.u32 %v3417_v1, %v3062_v0  ;;  %v3064_v4 = vld [vmem:[%s4638_s23 + $0xb4] sm:$0xf0]  ;;  %v3050_v5 = vld [vmem:[%s4638_s23 + $0x90] sm:$0xf]  ;;  %v3414_v6 = vld [vmem:[%s4638_s23 + $0x98] sm:$0xf0]  ;;  %s4168_s29 = scalar_lea.vmem %s4639_s27, %s4147_s30 }
  0x34   : > { %v3067_v7 = vor.u32 %v3416_v2, %v3064_v4  ;;  %v3413_v8 = vld [vmem:[%s4638_s23 + $0x94] sm:$0xf]  ;;  %v3052_v9 = vld [vmem:[%s4638_s23 + $0x9c] sm:$0xf0]  ;;  %v3051_v10 = vor.u32 %v3414_v6, %v3050_v5  ;;  %v3038_v12 = vld [vmem:[%s4638_s23 + $0x78] sm:$0xf] }
  0x35   : > { %1007 = vmatpush.bf16.msra.mxu0 %v3063_v3  ;;  %v3055_v11 = vor.u32 %v3413_v8, %v3052_v9  ;;  %v3411_v13 = vld [vmem:[%s4638_s23 + $0x80] sm:$0xf0]  ;;  %v3410_v14 = vld [vmem:[%s4638_s23 + $0x7c] sm:$0xf]  ;;  %v3040_v15 = vld [vmem:[%s4638_s23 + $0x84] sm:$0xf0] }
  0x36   : > { %1021 = vmatpush.bf16.msra.mxu1 %v3067_v7  ;;  %v3039_v16 = vor.u32 %v3411_v13, %v3038_v12  ;;  %v3043_v17 = vor.u32 %v3410_v14, %v3040_v15  ;;  %v3026_v18 = vld [vmem:[%s4638_s23 + $0x60] sm:$0xf]  ;;  %v3408_v19 = vld [vmem:[%s4638_s23 + $0x68] sm:$0xf0]  ;;  %v3407_v20 = vld [vmem:[%s4638_s23 + $0x64] sm:$0xf] }
  0x37   : > { %v3028_v21 = vld [vmem:[%s4638_s23 + $0x6c] sm:$0xf0]  ;;  %v3014_v22 = vld [vmem:[%s4638_s23 + $0x48] sm:$0xf]  ;;  %v3027_v23 = vor.u32 %v3408_v19, %v3026_v18  ;;  %v3405_v24 = vld [vmem:[%s4638_s23 + $0x50] sm:$0xf0] }
  0x38   : > { %v3070_v25 = vld [vmem:[%s4638_s23 + $0xb0] sm:$0xf]  ;;  %v3031_v26 = vor.u32 %v3407_v20, %v3028_v21  ;;  %v3418_v27 = vld [vmem:[%s4638_s23 + $0xb8] sm:$0xf0]  ;;  %v3058_v28 = vld [vmem:[%s4638_s23 + $0x98] sm:$0xf]  ;;  %v3015_v33 = vor.u32 %v3405_v24, %v3014_v22 }
  0x39   : > { %1008 = vmatpush.bf16.msra.mxu0 %v3051_v10  ;;  %v3415_v29 = vld [vmem:[%s4638_s23 + $0xa0] sm:$0xf0]  ;;  %v3404_v30 = vld [vmem:[%s4638_s23 + $0x4c] sm:$0xf]  ;;  %v3016_v31 = vld [vmem:[%s4638_s23 + $0x54] sm:$0xf0]  ;;  %v3071_v32 = vor.u32 %v3418_v27, %v3070_v25 }
  0x3a   : > { %1022 = vmatpush.bf16.msra.mxu1 %v3055_v11  ;;  %v3002_v34 = vld [vmem:[%s4638_s23 + $0x30] sm:$0xf]  ;;  %v3402_v35 = vld [vmem:[%s4638_s23 + $0x38] sm:$0xf0]  ;;  %v3059_v36 = vor.u32 %v3415_v29, %v3058_v28  ;;  %v3019_v37 = vor.u32 %v3404_v30, %v3016_v31  ;;  %v3401_v38 = vld [vmem:[%s4638_s23 + $0x34] sm:$0xf] }
  0x3b   : > { %1035 = vmatpush.bf16.msra.mxu2 %v3071_v32  ;;  %v3046_v39 = vld [vmem:[%s4638_s23 + $0x80] sm:$0xf]  ;;  %v3412_v40 = vld [vmem:[%s4638_s23 + $0x88] sm:$0xf0]  ;;  %v2990_v42 = vld [vmem:[%s4638_s23 + $0x18] sm:$0xf]  ;;  %v3003_v46 = vor.u32 %v3402_v35, %v3002_v34 }
  0x3c   : > { %v3004_v41 = vld [vmem:[%s4638_s23 + $0x3c] sm:$0xf0]  ;;  %v3399_v43 = vld [vmem:[%s4638_s23 + $0x20] sm:$0xf0]  ;;  %v3034_v44 = vld [vmem:[%s4638_s23 + $0x68] sm:$0xf]  ;;  %v3047_v47 = vor.u32 %v3412_v40, %v3046_v39 }
  0x3d   : > { %1009 = vmatpush.bf16.msra.mxu0 %v3039_v16  ;;  %v3409_v45 = vld [vmem:[%s4638_s23 + $0x70] sm:$0xf0]  ;;  %v3007_v48 = vor.u32 %v3401_v38, %v3004_v41  ;;  %v3398_v49 = vld [vmem:[%s4638_s23 + $0x1c] sm:$0xf]  ;;  %v2992_v50 = vld [vmem:[%s4638_s23 + $0x24] sm:$0xf0]  ;;  %v2991_v51 = vor.u32 %v3399_v43, %v2990_v42 }
  0x3e   : > { %1023 = vmatpush.bf16.msra.mxu1 %v3043_v17  ;;  %v2978_v52 = vld [vmem:[%s4638_s23] sm:$0xf]  ;;  %v3035_v53 = vor.u32 %v3409_v45, %v3034_v44  ;;  %v2995_v54 = vor.u32 %v3398_v49, %v2992_v50  ;;  %v3396_v55 = vld [vmem:[%s4638_s23 + $0x8] sm:$0xf0]  ;;  %v3022_v56 = vld [vmem:[%s4638_s23 + $0x50] sm:$0xf] }
  0x3f   : > { %1036 = vmatpush.bf16.msra.mxu2 %v3059_v36  ;;  %v3406_v57 = vld [vmem:[%s4638_s23 + $0x58] sm:$0xf0]  ;;  %v3395_v58 = vld [vmem:[%s4638_s23 + $0x4] sm:$0xf]  ;;  %v2980_v59 = vld [vmem:[%s4638_s23 + $0xc] sm:$0xf0]  ;;  %v2979_v60 = vor.u32 %v3396_v55, %v2978_v52 }
  0x40   : > { %v3023_v61 = vor.u32 %v3406_v57, %v3022_v56  ;;  %v2983_v62 = vor.u32 %v3395_v58, %v2980_v59  ;;  %v3010_v63 = vld [vmem:[%s4638_s23 + $0x38] sm:$0xf]  ;;  %v3403_v0 = vld [vmem:[%s4638_s23 + $0x40] sm:$0xf0]  ;;  %v2998_v3 = vld [vmem:[%s4638_s23 + $0x20] sm:$0xf] }
  0x41   : > { %1010 = vmatpush.bf16.msra.mxu0 %v3027_v23  ;;  %v3393_v1 = vld [vmem:[%s4168_s29] sm:$0xff]  ;;  %v3011_v2 = vor.u32 %v3403_v0, %v3010_v63  ;;  %v3400_v4 = vld [vmem:[%s4638_s23 + $0x28] sm:$0xf0]  ;;  %v2986_v6 = vld [vmem:[%s4638_s23 + $0x8] sm:$0xf]  ;;  %s4648_s27 = sld [smem:[#allocation19_spill]] }
  0x42   : > { %1024 = vmatpush.bf16.msra.mxu1 %v3031_v26  ;;  %v2999_v5 = vor.u32 %v3400_v4, %v2998_v3  ;;  %v3397_v7 = vld [vmem:[%s4638_s23 + $0x10] sm:$0xf0]  ;;  %v865_v11 = vld [vmem:[%s4640_s0] sm:$0x7]  ;;  %v3843_v36 = vmov -1e+09  }
  0x43   : > { %1037 = vmatpush.bf16.msra.mxu2 %v3047_v47  ;;  %v2987_v8 = vor.u32 %v3397_v7, %v2986_v6  ;;  %v868_v12 = vperm.slane %v865_v11, 1  ;;  %v867_v15 = vperm.slane %v865_v11, 0  ;;  %v869_v26 = vperm.slane %v865_v11, 2  ;;  %v3419_v47 = vld [vmem:[%s4641_s8] sm:$0xff]  ;;  %s4649_s7 = sld [smem:[#allocation15_spill]] }
  0x44   : > { %s4650_s28 = sld [smem:[#allocation20_spill]] }
  0x45   : > { %1011 = vmatpush.bf16.msra.mxu0 %v3015_v33  ;;  %v1049_v33 = vlaneseq  ;;  %s4651_s6 = sld [smem:[#allocation21_spill]] }
  0x46   : > { %1025 = vmatpush.bf16.msra.mxu1 %v3019_v37  ;;  %s4654_s5 = sld [smem:[#allocation25_spill]] }
  0x47   : > { %1038 = vmatpush.bf16.msra.mxu2 %v3035_v53  ;;  %v1050_v34 = vshrl.u32 %v1049_v33, 7  ;;  %v1053_v35 = vand.u32 127, %v1049_v33 }
  0x49   : > { %1012 = vmatpush.bf16.msra.mxu0 %v3003_v46  ;;  %vm1054_vm1 = vcmp.le.s32.totalorder %v1053_v35, %v1050_v34  ;;  %v1051_v38 = vadd.s32 8, %v1050_v34  ;;  %v3420_v46 = vld [vmem:[%s4641_s8 + $0x8] sm:$0xff]  ;;  %s819_s3 = scalar_lea.vmem %s4649_s7, %s4147_s30 }
  0x4a   : > { %1026 = vmatpush.bf16.msra.mxu1 %v3007_v48  ;;  %v4206_v37 = vsel %vm1054_vm1, 0.0, %v3843_v36 }
  0x4b   : > { %1039 = vmatpush.bf16.msra.mxu2 %v3023_v61  ;;  %vm1055_vm3 = vcmp.le.s32.totalorder %v1053_v35, %v1051_v38 }
  0x4c   : > { %v4210_v42 = vsel %vm1055_vm3, 0.0, %v3843_v36 }
  0x4d   : > { %1013 = vmatpush.bf16.msra.mxu0 %v2991_v51 }
  0x4e   : > { %1027 = vmatpush.bf16.msra.mxu1 %v2995_v54 }
  0x4f   : > { %1040 = vmatpush.bf16.msra.mxu2 %v3011_v2 }
  0x51   : > { %1014 = vmatpush.bf16.msra.mxu0 %v2979_v60 }
  0x52   : > { %1028 = vmatpush.bf16.msra.mxu1 %v2983_v62 }
  0x53   : > { %1041 = vmatpush.bf16.msra.mxu2 %v2999_v5 }
  0x54   : > { %1015 = vmatmul.bf16.vlgmr.msra.gmra.mxu0 %v3393_v1 }
  0x55   : > { %1029 = vmatmul.bf16.vlgmr.msra.gmra.mxu1 %v3393_v1 }
  0x57   : > { %1042 = vmatpush.bf16.msra.mxu2 %v2987_v8 }
  0x5a   : > { %1043 = vmatmul.bf16.vlgmr.msra.gmra.mxu2 %v3393_v1 }
  0x5b   : > { %1308 = vmatpush.bf16.msrb.mxu2 %v3420_v46 }
  0x5f   : > { %1309 = vmatpush.bf16.msrb.mxu2 %v3419_v47 }
  0xd1   : > { %v1016_v9 = vpop.f32.mrf.mxu0 }
  0xd2   : > { %v1030_v10 = vpop.f32.mrf.mxu1  ;;  %v1017_v20 = vadd.f32 %v1016_v9, %v867_v15 }
  0xd3   : > { %v1031_v16 = vadd.f32 %v1030_v10, %v868_v12 }
  0xd4   : > { %v1058_v23 = vmul.f32 0.17677669, %v1017_v20 }
  0xd9   : > { %v1018_v13 = vpop.f32.mrf.mxu0 }
  0xda   : > { %v1032_v14 = vpop.f32.mrf.mxu1  ;;  %v1019_v18 = vadd.f32 %v1018_v13, %v867_v15 }
  0xdb   : > { %v1033_v17 = vadd.f32 %v1032_v14, %v868_v12 }
  0xdc   : > { %v1059_v22 = vmul.f32 0.17677669, %v1019_v18 }
  0xdd   : > { %v4192_v19 = vpack.c.bf16 %v1033_v17, %v1031_v16  ;;  %v1044_v24 = vpop.f32.mrf.mxu2 }
  0xde   : > { %v1061_v25 = vpack.c.bf16 %v1059_v22, %v1058_v23  ;;  %v1045_v27 = vadd.f32 %v1044_v24, %v869_v26 }
  0xdf   : > { %1161 = vrot.lane.b32.xlu2 %v4192_v19, %s3840_s25  ;;  %v1069_v21 = vsel %vm1064_vm0, %v4192_v19, 0 }
  0xe0   : > { %1078 = vmatpush.bf16.xpose.msra.mxu3 %v1069_v21 }
  0xe5   : > { %v1046_v28 = vpop.f32.mrf.mxu2 }
  0xe6   : > { %v1047_v29 = vadd.f32 %v1046_v28, %v869_v26 }
  0xe7   : > { %1158 = vrot.lane.b32.xlu2 %v1061_v25, %s3840_s25  ;;  %3072 = vmatmul.msk.bf16.vlgmr.msra.gmra.mxu3 %vm1064_vm0, %v1061_v25 }
  0xe8   : > { %v4200_v30 = vpack.c.bf16 %v1047_v29, %v1045_v27 }
  0xea   : > { %1145 = vmatpush.bf16.msrb.mxu3 %v4200_v30 }
  0xef   : > { %1445 = vrot.lane.b32.xlu2 %v1061_v25, %s3841_s2 }
  0xf7   : > { %1316 = vrot.lane.b32.xlu2 %v1061_v25, %s3842_s10 }
 0x139   : > { %v1162_v31 = vpop.permute.xlu2 %1161 }
 0x13a   : > { %v1167_v32 = vsel %vm1064_vm0, %v1162_v31, 0 }
 0x13b   : > { %1176 = vmatpush.bf16.xpose.msra.mxu3 %v1167_v32 }
 0x141   : > { %v1159_v23 = vpop.permute.xlu2 %1158 }
 0x149   : > { %v1446_v24 = vpop.permute.xlu2 %1445 }
 0x151   : > { %v1317_v25 = vpop.permute.xlu2 %1316 }
 0x16a   : > { %v1080_v39 = vpop.f32.mrf.mxu3 }
 0x16b   : > { %v1081_v40 = vadd.f32 %v1080_v39, %v4206_v37 }
 0x16d   : > { %v1086_v41 = vsel %vm1085_vm2, %v1081_v40, -inf }
 0x16e   : > { %1087 = vmax.xlane.f32.xlu0 %v1086_v41 }
 0x172   : > { %v1082_v43 = vpop.f32.mrf.mxu3 }
 0x173   : > { %v1083_v44 = vadd.f32 %v1082_v43, %v4210_v42 }
 0x175   : > { %v1089_v45 = vsel %vm1085_vm2, %v1083_v44, -inf }
 0x176   : > { %1090 = vmax.xlane.f32.xlu0 %v1089_v45 }
 0x18a   : > { %1447 = vrot.lane.b32.xlu0 %v4192_v19, %s3841_s2 }
 0x1e1   : > { %v1088_v48 = vpop.xlane.xlu0 %1087 }
 0x1e2   : > { %v1092_v49 = vsub.f32 %v1081_v40, %v1088_v48 }
 0x1e4   : > { %v1094_v50 = vmul.f32 1.442695, %v1092_v49 }
 0x1e6   : > { %3575 = vpow2.f32 %v1094_v50 }
 0x1e9   : > { %v1091_v51 = vpop.xlane.xlu0 %1090 }
 0x1ea   : > { %v1093_v52 = vsub.f32 %v1083_v44, %v1091_v51 }
 0x1ec   : > { %v3576_v53 = vpop.eup %3575  ;;  %v1096_v54 = vmul.f32 1.442695, %v1093_v52 }
 0x1ed   : > { %v1098_v55 = vsel %vm1085_vm2, %v3576_v53, 0.0 }
 0x1ee   : > { %3577 = vpow2.f32 %v1096_v54  ;;  %1099 = vadd.xlane.f32.xlu1 %v1098_v55 }
 0x1f4   : > { %v3578_v56 = vpop.eup %3577 }
 0x1f5   : > { %v1101_v57 = vsel %vm1085_vm2, %v3578_v56, 0.0 }
 0x1f6   : > { %1102 = vadd.xlane.f32.xlu1 %v1101_v57 }
 0x1fc   : > { %v1448_v58 = vpop.permute.xlu0 %1447 }
 0x1fd   : > { %v1453_v59 = vsel %vm1064_vm0, %v1448_v58, 0 }
 0x1fe   : > { %1462 = vmatpush.bf16.xpose.msra.mxu2 %v1453_v59 }
 0x20f   : > { %1318 = vrot.lane.b32.xlu1 %v4192_v19, %s3842_s10 }
 0x261   : > { %v1100_v60 = vpop.xlane.xlu1 %1099 }
 0x262   : > { %3579 = vrcp.f32 %v1100_v60  ;;  %v1115_v5 = vand.u32 2147483648, %v1100_v60  ;;  %vm1109_vm5 = vweird.f32 %v1100_v60  ;;  %v1113_v6 = vand.u32 2147483647, %v1100_v60 }
 0x264   : > { %v1116_v12 = vor.u32 1.1754944e-38, %v1115_v5  ;;  %vm1114_vm8 = vcmp.eq.f32.partialorder %v1113_v6, 8.507059e+37 }
 0x268   : > { %v3580_v61 = vpop.eup %3579 }
 0x269   : > { %v1105_v62 = vmul.f32 %v3580_v61, %v1100_v60  ;;  %v1103_v63 = vpop.xlane.xlu1 %1102  ;;  %vm1110_vm4 = vweird.f32 %v3580_v61 }
 0x26a   : > { %3581 = vrcp.f32 %v1103_v63  ;;  %vm1111_vm6 = vmor %vm1109_vm5, %vm1110_vm4  ;;  %v1130_v8 = vand.u32 2147483648, %v1103_v63  ;;  %v1128_v11 = vand.u32 2147483647, %v1103_v63  ;;  %vm1124_vm9 = vweird.f32 %v1103_v63 }
 0x26b   : > { %v1106_v0 = vsub.f32 1.0, %v1105_v62 }
 0x26c   : > { %v1131_v14 = vor.u32 1.1754944e-38, %v1130_v8  ;;  %vm1129_vm11 = vcmp.eq.f32.partialorder %v1128_v11, 8.507059e+37 }
 0x26d   : > { %v1107_v1 = vmul.f32 %v3580_v61, %v1106_v0 }
 0x26f   : > { %v1108_v3 = vadd.f32 %v3580_v61, %v1107_v1 }
 0x270   : > { %v3582_v2 = vpop.eup %3581 }
 0x271   : > { %v1120_v4 = vmul.f32 %v3582_v2, %v1103_v63  ;;  %v1112_v9 = vsel %vm1111_vm6, %v3580_v61, %v1108_v3  ;;  %vm1125_vm7 = vweird.f32 %v3582_v2 }
 0x272   : > { %vm1126_vm10 = vmor %vm1124_vm9, %vm1125_vm7  ;;  %v1117_v15 = vsel %vm1114_vm8, %v1116_v12, %v1112_v9 }
 0x273   : > { %v1121_v7 = vsub.f32 1.0, %v1120_v4  ;;  %v1118_v18 = vmul.f32 %v3576_v53, %v1117_v15 }
 0x275   : > { %v1122_v10 = vmul.f32 %v3582_v2, %v1121_v7 }
 0x277   : > { %v1123_v13 = vadd.f32 %v3582_v2, %v1122_v10 }
 0x279   : > { %v1127_v16 = vsel %vm1126_vm10, %v3582_v2, %v1123_v13 }
 0x27a   : > { %v1132_v17 = vsel %vm1129_vm11, %v1131_v14, %v1127_v16 }
 0x27b   : > { %v1133_v19 = vmul.f32 %v3578_v56, %v1132_v17 }
 0x27d   : > { %v1134_v20 = vpack.c.bf16 %v1133_v19, %v1118_v18 }
 0x27f   : > { %3073 = vmatmul.msk.bf16.vlgmr.msrb.gmra.mxu3 %vm1085_vm2, %v1134_v20 }
 0x281   : > { %v1319_v21 = vpop.permute.xlu1 %1318 }
 0x282   : > { %v1324_v22 = vsel %vm1064_vm0, %v1319_v21, 0 }
 0x283   : > { %1333 = vmatpush.bf16.xpose.msrb.mxu3 %v1324_v22 }
 0x28f   : > { %3074 = vmatmul.msk.bf16.vlgmr.msra.gmra.mxu3 %vm1064_vm0, %v1159_v23 }
 0x29f   : > { %3094 = vmatmul.msk.bf16.vlgmr.msrb.gmra.mxu3 %vm1064_vm0, %v1317_v25 }
 0x302   : > { %v1147_v26 = vpop.f32.mrf.mxu3 }
 0x30a   : > { %v1149_v27 = vpop.f32.mrf.mxu3 }
 0x30b   : > { %v1152_v28 = vpack.c.bf16 %v1149_v27, %v1147_v26 }
 0x30d   : > { %3093 = vmatmul.msk.bf16.vlgmr.msrb.gmra.mxu2 %vm1064_vm0, %v1152_v28 }
 0x312   : > { %v1178_v29 = vpop.f32.mrf.mxu3 }
 0x313   : > { %v1179_v31 = vadd.f32 %v1178_v29, %v4206_v37 }
 0x315   : > { %v1183_v32 = vsel %vm1085_vm2, %v1179_v31, -inf }
 0x316   : > { %1184 = vmax.xlane.f32.xlu2 %v1183_v32 }
 0x31a   : > { %v1180_v33 = vpop.f32.mrf.mxu3 }
 0x31b   : > { %v1181_v34 = vadd.f32 %v1180_v33, %v4210_v42 }
 0x31d   : > { %3105 = vmatmul.msk.bf16.vlgmr.msra.gmra.mxu2 %vm1064_vm0, %v1446_v24  ;;  %v1186_v35 = vsel %vm1085_vm2, %v1181_v34, -inf }
 0x31e   : > { %1187 = vmax.xlane.f32.xlu0 %v1186_v35 }
 0x322   : > { %v1335_v36 = vpop.f32.mrf.mxu3 }
 0x323   : > { %v1336_v38 = vadd.f32 %v1335_v36, %v4206_v37 }
 0x325   : > { %v1340_v39 = vsel %vm1085_vm2, %v1336_v38, -inf }
 0x326   : > { %1341 = vmax.xlane.f32.xlu0 %v1340_v39 }
 0x32a   : > { %v1337_v63 = vpop.f32.mrf.mxu3 }
 0x32b   : > { %v1338_v0 = vadd.f32 %v1337_v63, %v4210_v42 }
 0x32d   : > { %v1343_v1 = vsel %vm1085_vm2, %v1338_v0, -inf }
 0x389   : > { %v1185_v45 = vpop.xlane.xlu2 %1184 }
 0x38a   : > { %v1189_v48 = vsub.f32 %v1179_v31, %v1185_v45 }
 0x38c   : > { %v1191_v53 = vmul.f32 1.442695, %v1189_v48 }
 0x390   : > { %v4239_v40 = vpop.f32.mrf.mxu2 }
 0x391   : > { %v1188_v41 = vpop.xlane.xlu0 %1187 }
 0x392   : > { %v1190_v43 = vsub.f32 %v1181_v34, %v1188_v41 }
 0x394   : > { %v1193_v44 = vmul.f32 1.442695, %v1190_v43 }
 0x396   : > { %3583 = vpow2.f32 %v1193_v44 }
 0x398   : > { %v4241_v46 = vpop.f32.mrf.mxu2 }
 0x399   : > { %v1342_v47 = vpop.xlane.xlu0 %1341 }
 0x39a   : > { %v1346_v49 = vsub.f32 %v1336_v38, %v1342_v47 }
 0x39c   : > { %v4243_v50 = vpop.eup %3583  ;;  %v1348_v51 = vmul.f32 1.442695, %v1346_v49 }
 0x39d   : > { %v1198_v52 = vsel %vm1085_vm2, %v4243_v50, 0.0 }
 0x39e   : > { %3585 = vpow2.f32 %v1348_v51  ;;  %1199 = vadd.xlane.f32.xlu0 %v1198_v52 }
 0x39f   : > { %3587 = vpow2.f32 %v1191_v53 }
 0x3a0   : > { %v1464_v54 = vpop.f32.mrf.mxu2 }
 0x3a1   : > { %v1465_v55 = vadd.f32 %v1464_v54, %v4206_v37 }
 0x3a3   : > { %v1469_v56 = vsel %vm1085_vm2, %v1465_v55, -inf }
 0x3a4   : > { %v4249_v57 = vpop.eup %3585  ;;  %1470 = vmax.xlane.f32.xlu1 %v1469_v56 }
 0x3a5   : > { %v1352_v58 = vsel %vm1085_vm2, %v4249_v57, 0.0  ;;  %v4253_v59 = vpop.eup %3587 }
 0x3a6   : > { %1353 = vadd.xlane.f32.xlu0 %v1352_v58  ;;  %v1195_v37 = vsel %vm1085_vm2, %v4253_v59, 0.0 }
 0x3a8   : > { %v1466_v60 = vpop.f32.mrf.mxu2 }
 0x3a9   : > { %v1467_v61 = vadd.f32 %v1466_v60, %v4210_v42 }
 0x3ab   : > { %v1472_v62 = vsel %vm1085_vm2, %v1467_v61, -inf }
 0x3ac   : > { %1473 = vmax.xlane.f32.xlu2 %v1472_v62  ;;  %1196 = vadd.xlane.f32.xlu1 %v1195_v37 }
 0x3b4   : > { %1344 = vmax.xlane.f32.xlu2 %v1343_v1 }
 0x3ba   : > { %1518 = vrot.lane.b32.xlu0 %v4200_v30, %s3841_s2 }
 0x411   : > { %v4263_v2 = vpop.xlane.xlu0 %1199 }
 0x412   : > { %v1227_v39 = vand.u32 2147483648, %v4263_v2  ;;  %vm1221_vm1 = vweird.f32 %v4263_v2  ;;  %v1225_v44 = vand.u32 2147483647, %v4263_v2 }
 0x414   : > { %v1228_v53 = vor.u32 1.1754944e-38, %v1227_v39  ;;  %vm1226_vm5 = vcmp.eq.f32.partialorder %v1225_v44, 8.507059e+37 }
 0x417   : > { %v1471_v7 = vpop.xlane.xlu1 %1470 }
 0x418   : > { %v1475_v42 = vsub.f32 %v1465_v55, %v1471_v7 }
 0x419   : > { %v4265_v6 = vpop.xlane.xlu0 %1353 }
 0x41a   : > { %v1477_v14 = vmul.f32 1.442695, %v1475_v42 }
 0x41f   : > { %v1474_v3 = vpop.xlane.xlu2 %1473  ;;  %v1197_v19 = vpop.xlane.xlu1 %1196 }
 0x420   : > { %v1476_v4 = vsub.f32 %v1467_v61, %v1474_v3  ;;  %v1212_v33 = vand.u32 2147483648, %v1197_v19  ;;  %vm1206_vm14 = vweird.f32 %v1197_v19  ;;  %v1210_v36 = vand.u32 2147483647, %v1197_v19 }
 0x422   : > { %v1479_v5 = vmul.f32 1.442695, %v1476_v4  ;;  %v1213_v51 = vor.u32 1.1754944e-38, %v1212_v33  ;;  %vm1211_vm4 = vcmp.eq.f32.partialorder %v1210_v36, 8.507059e+37 }
 0x424   : > { %3589 = vpow2.f32 %v1479_v5 }
 0x427   : > { %v1345_v8 = vpop.xlane.xlu2 %1344 }
 0x428   : > { %v1347_v9 = vsub.f32 %v1338_v0, %v1345_v8 }
 0x42a   : > { %v4267_v10 = vpop.eup %3589  ;;  %v1350_v11 = vmul.f32 1.442695, %v1347_v9 }
 0x42b   : > { %v1484_v12 = vsel %vm1085_vm2, %v4267_v10, 0.0 }
 0x42c   : > { %3591 = vpow2.f32 %v1350_v11  ;;  %1485 = vadd.xlane.f32.xlu1 %v1484_v12  ;;  %v1519_v13 = vpop.permute.xlu0 %1518 }
 0x42d   : > { %1531 = vmatpush.bf16.msra.mxu3 %v1519_v13  ;;  %3593 = vpow2.f32 %v1477_v14 }
 0x42e   : > { %3595 = vrcp.f32 %v1197_v19 }
 0x42f   : > { %3597 = vrcp.f32 %v4263_v2 }
 0x432   : > { %v4271_v15 = vpop.eup %3591 }
 0x433   : > { %v1355_v16 = vsel %vm1085_vm2, %v4271_v15, 0.0  ;;  %v4275_v17 = vpop.eup %3593 }
 0x434   : > { %1356 = vadd.xlane.f32.xlu2 %v1355_v16  ;;  %v1481_v18 = vsel %vm1085_vm2, %v4275_v17, 0.0  ;;  %v3596_v20 = vpop.eup %3595 }
 0x435   : > { %v3598_v21 = vpop.eup %3597  ;;  %v1202_v22 = vmul.f32 %v3596_v20, %v1197_v19  ;;  %vm1207_vm12 = vweird.f32 %v3596_v20  ;;  %v3448_v19 = vld [vmem:[#allocation4 + $0x64] sm:$0xf0] }
 0x436   : > { %v1217_v24 = vmul.f32 %v3598_v21, %v4263_v2  ;;  %vm1222_vm13 = vweird.f32 %v3598_v21  ;;  %vm4301_vm15 = vmor %vm1206_vm14, %vm1207_vm12 }
 0x437   : > { %v1203_v25 = vsub.f32 1.0, %v1202_v22  ;;  %vm1223_vm3 = vmor %vm1221_vm1, %vm1222_vm13  ;;  %vm1363_vm1 = vweird.f32 %v4265_v6  ;;  %v1369_v22 = vand.u32 2147483648, %v4265_v6 }
 0x438   : > { %v1218_v26 = vsub.f32 1.0, %v1217_v24 }
 0x439   : > { %v1370_v33 = vor.u32 1.1754944e-38, %v1369_v22  ;;  %v3446_v22 = vld [vmem:[#allocation4 + $0x54] sm:$0xf0] }
 0x43a   : > { %v1219_v29 = vmul.f32 %v3598_v21, %v1218_v26 }
 0x43c   : > { %1482 = vadd.xlane.f32.xlu2 %v1481_v18  ;;  %v1220_v35 = vadd.f32 %v3598_v21, %v1219_v29 }
 0x43e   : > { %v1224_v52 = vsel %vm1223_vm3, %v3598_v21, %v1220_v35 }
 0x43f   : > { %v1229_v60 = vsel %vm1226_vm5, %v1228_v53, %v1224_v52 }
 0x440   : > { %v1230_v3 = vmul.f32 %v4243_v50, %v1229_v60 }
 0x445   : > { %1233 = vrot.lane.b32.xlu1 %v4200_v30, %s3840_s25 }
 0x454   : > { %1389 = vrot.lane.b32.xlu2 %v4200_v30, %s3842_s10  ;;  %v1204_v30 = vmul.f32 %v3596_v20, %v1203_v25  ;;  %v1367_v25 = vand.u32 2147483647, %v4265_v6 }
 0x456   : > { %v1205_v32 = vadd.f32 %v3596_v20, %v1204_v30 }
 0x458   : > { %v1209_v45 = vsel %vm4301_vm15, %v3596_v20, %v1205_v32 }
 0x459   : > { %v1214_v55 = vsel %vm1211_vm4, %v1213_v51, %v1209_v45 }
 0x45a   : > { %v1215_v61 = vmul.f32 %v4253_v59, %v1214_v55 }
 0x45c   : > { %v1231_v9 = vpack.c.bf16 %v1230_v3, %v1215_v61 }
 0x49f   : > { %v4284_v23 = vpop.xlane.xlu1 %1485 }
 0x4a0   : > { %3599 = vrcp.f32 %v4284_v23  ;;  %vm1507_vm7 = vweird.f32 %v4284_v23  ;;  %v1513_v5 = vand.u32 2147483648, %v4284_v23  ;;  %v1511_v7 = vand.u32 2147483647, %v4284_v23 }
 0x4a1   : > { %3601 = vrcp.f32 %v4265_v6 }
 0x4a2   : > { %v1514_v16 = vor.u32 1.1754944e-38, %v1513_v5  ;;  %vm1512_vm13 = vcmp.eq.f32.partialorder %v1511_v7, 8.507059e+37 }
 0x4a6   : > { %v4288_v27 = vpop.eup %3599 }
 0x4a7   : > { %v4291_v28 = vpop.xlane.xlu2 %1356  ;;  %v1503_v31 = vmul.f32 %v4288_v27, %v4284_v23  ;;  %v4296_v34 = vpop.eup %3601  ;;  %vm1508_vm6 = vweird.f32 %v4288_v27 }
 0x4a8   : > { %3603 = vrcp.f32 %v4291_v28  ;;  %v1359_v49 = vmul.f32 %v4296_v34, %v4265_v6  ;;  %vm4322_vm8 = vmor %vm1507_vm7, %vm1508_vm6  ;;  %vm1364_vm9 = vweird.f32 %v4296_v34  ;;  %vm1378_vm12 = vweird.f32 %v4291_v28 }
 0x4a9   : > { %v1504_v43 = vsub.f32 1.0, %v1503_v31  ;;  %v1384_v18 = vand.u32 2147483648, %v4291_v28  ;;  %v1382_v20 = vand.u32 2147483647, %v4291_v28  ;;  %vm1365_vm5 = vmor %vm1363_vm1, %vm1364_vm9  ;;  %vm1368_vm7 = vcmp.eq.f32.partialorder %v1367_v25, 8.507059e+37 }
 0x4aa   : > { %v1360_v58 = vsub.f32 1.0, %v1359_v49  ;;  %v3186_v25 = vld [vmem:[#allocation4 + $0x40] sm:$0xf] }
 0x4ab   : > { %v1505_v54 = vmul.f32 %v4288_v27, %v1504_v43  ;;  %v1385_v30 = vor.u32 1.1754944e-38, %v1384_v18  ;;  %vm1383_vm6 = vcmp.eq.f32.partialorder %v1382_v20, 8.507059e+37  ;;  %v3425_v43 = vld [vmem:[%s4641_s8 + $0x30] sm:$0xff] }
 0x4ac   : > { %v1361_v4 = vmul.f32 %v4296_v34, %v1360_v58 }
 0x4ad   : > { %v1506_v37 = vadd.f32 %v4288_v27, %v1505_v54 }
 0x4ae   : > { %v4298_v38 = vpop.eup %3603  ;;  %v1362_v14 = vadd.f32 %v4296_v34, %v1361_v4 }
 0x4af   : > { %v1374_v47 = vmul.f32 %v4298_v38, %v4291_v28  ;;  %v1483_v48 = vpop.xlane.xlu2 %1482  ;;  %v1510_v50 = vsel %vm4322_vm8, %v4288_v27, %v1506_v37  ;;  %vm1379_vm10 = vweird.f32 %v4298_v38 }
 0x4b0   : > { %3605 = vrcp.f32 %v1483_v48  ;;  %v1498_v42 = vand.u32 2147483648, %v1483_v48  ;;  %v1496_v13 = vand.u32 2147483647, %v1483_v48  ;;  %vm4337_vm14 = vmor %vm1378_vm12, %vm1379_vm10  ;;  %vm1492_vm15 = vweird.f32 %v1483_v48 }
 0x4b1   : > { %v1375_v56 = vsub.f32 1.0, %v1374_v47  ;;  %v1515_v23 = vsel %vm1512_vm13, %v1514_v16, %v1510_v50  ;;  %v1366_v29 = vsel %vm1365_vm5, %v4296_v34, %v1362_v14  ;;  %v3423_v34 = vld [vmem:[%s4641_s8 + $0x20] sm:$0xff]  ;;  %v3450_v14 = vld [vmem:[#allocation4 + $0x74] sm:$0xf0] }
 0x4b2   : > { %v1499_v24 = vor.u32 1.1754944e-38, %v1498_v42  ;;  %vm1497_vm4 = vcmp.eq.f32.partialorder %v1496_v13, 8.507059e+37  ;;  %v1516_v31 = vmul.f32 %v4267_v10, %v1515_v23  ;;  %v1371_v36 = vsel %vm1368_vm7, %v1370_v33, %v1366_v29  ;;  %v3422_v10 = vld [vmem:[%s4641_s8 + $0x18] sm:$0xff]  ;;  %v3210_v13 = vld [vmem:[#allocation4 + $0x70] sm:$0xf] }
 0x4b3   : > { %v1376_v63 = vmul.f32 %v4298_v38, %v1375_v56  ;;  %v1372_v39 = vmul.f32 %v4249_v57, %v1371_v36  ;;  %1279 = vmatpush.bf16.msrb.mxu1 %v3422_v10  ;;  %v3426_v57 = vld [vmem:[%s4641_s8 + $0x38] sm:$0xff]  ;;  %v3844_v42 = vmov 128.0   ;;  %v3202_v16 = vld [vmem:[#allocation4 + $0x60] sm:$0xf]  ;;  %v3211_v18 = vor.u32 %v3450_v14, %v3210_v13 }
 0x4b4   : > { %3607 = vrcp.f32 %v3844_v42  ;;  %v3203_v20 = vor.u32 %v3448_v19, %v3202_v16  ;;  %v3566_v13 = vld [vmem:[%s4650_s28] ss:$0 sm:$0xff] }
 0x4b5   : > { %v1377_v11 = vadd.f32 %v4298_v38, %v1376_v63  ;;  %v3565_v63 = vld [vmem:[%s4648_s27] ss:$0 sm:$0xff]  ;;  %1833 = vmatpush.bf16.msrb.mxu2 %v3211_v18 }
 0x4b6   : > { %v3606_v62 = vpop.eup %3605 }
 0x4b7   : > { %v1488_v0 = vmul.f32 %v3606_v62, %v1483_v48  ;;  %v1390_v1 = vpop.permute.xlu2 %1389  ;;  %v1234_v2 = vpop.permute.xlu1 %1233  ;;  %vm1493_vm11 = vweird.f32 %v3606_v62  ;;  %v1381_v26 = vsel %vm4337_vm14, %v4298_v38, %v1377_v11 }
 0x4b8   : > { %1246 = vmatpush.bf16.msrb.mxu0 %v1234_v2  ;;  %vm1494_vm3 = vmor %vm1492_vm15, %vm1493_vm11  ;;  %v1386_v6 = vsel %vm1383_vm6, %v1385_v30, %v1381_v26  ;;  %v3444_v26 = vld [vmem:[#allocation4 + $0x44] sm:$0xf0] }
 0x4b9   : > { %v1489_v8 = vsub.f32 1.0, %v1488_v0  ;;  %v1387_v38 = vmul.f32 %v4271_v15, %v1386_v6  ;;  %v3424_v15 = vld [vmem:[%s4641_s8 + $0x28] sm:$0xff]  ;;  %1834 = vmatpush.bf16.msrb.mxu2 %v3203_v20  ;;  %v3187_v30 = vor.u32 %v3444_v26, %v3186_v25 }
 0x4ba   : > { %v3608_v11 = vpop.eup %3607 }
 0x4bb   : > { %v1490_v12 = vmul.f32 %v3606_v62, %v1489_v8  ;;  %3075 = vmatmul.msk.bf16.vlgmr.msrb.gmra.mxu0 %vm1085_vm2, %v1231_v9  ;;  %v1388_v41 = vpack.c.bf16 %v1387_v38, %v1372_v39  ;;  %vm1594_vm8 = vweird.f32 %v3608_v11  ;;  %v3178_v39 = vld [vmem:[#allocation4 + $0x30] sm:$0xf] }
 0x4bc   : > { %1402 = vmatpush.bf16.msra.mxu0 %v1390_v1 }
 0x4bd   : > { %v1491_v21 = vadd.f32 %v3606_v62, %v1490_v12  ;;  %v1590_v12 = vmul.f32 128.0, %v3608_v11 }
 0x4bf   : > { %v1495_v27 = vsel %vm1494_vm3, %v3606_v62, %v1491_v21  ;;  %v829_v62 = vld [vmem:[%s4168_s29] sm:$0xff]   ;;  %v3194_v21 = vld [vmem:[#allocation4 + $0x50] sm:$0xf] }
 0x4c0   : > { %v1500_v28 = vsel %vm1497_vm4, %v1499_v24, %v1495_v27  ;;  %1564 = vmatpush.bf16.msrb.mxu0 %v3426_v57  ;;  %v1579_v1 = vunpack.c.l.bf16 %v829_v62  ;;  %v3195_v24 = vor.u32 %v3446_v22, %v3194_v21  ;;  %v3434_v57 = vld [vmem:[#allocation2 + $0x38] sm:$0xff] }
 0x4c1   : > { %v1501_v32 = vmul.f32 %v4275_v17, %v1500_v28  ;;  %v3421_v17 = vld [vmem:[%s4641_s8 + $0x10] sm:$0xff] }
 0x4c2   : > { %1280 = vmatpush.bf16.msrb.mxu1 %v3421_v17  ;;  %1835 = vmatpush.bf16.msrb.mxu2 %v3195_v24  ;;  %v3170_v17 = vld [vmem:[#allocation4 + $0x20] sm:$0xf] }
 0x4c3   : > { %v1517_v35 = vpack.c.bf16 %v1516_v31, %v1501_v32  ;;  %v4423_v24 = vld [vmem:[%s4604_s11] sm:$0x3] }
 0x4c4   : > { %1565 = vmatpush.bf16.msrb.mxu0 %v3425_v43  ;;  %v3162_v43 = vld [vmem:[#allocation4 + $0x10] sm:$0xf]  ;;  %v1743_v26 = vperm.slane %v4423_v24, 0 }
 0x4c5   : > { %3106 = vmatmul.msk.bf16.vlgmr.msra.gmra.mxu3 %vm1085_vm2, %v1517_v35 }
 0x4c6   : > { %1435 = vmatpush.bf16.msra.mxu1 %v3424_v15  ;;  %1836 = vmatpush.bf16.msrb.mxu2 %v3187_v30  ;;  %v3440_v15 = vld [vmem:[#allocation4 + $0x24] sm:$0xf0] }
 0x4ca   : > { %1436 = vmatpush.bf16.msra.mxu1 %v3423_v34  ;;  %v3171_v34 = vor.u32 %v3440_v15, %v3170_v17  ;;  %v4442_v17 = vld [vmem:[%s822_s4] ss:$0 sm:$0xff]  ;;  %s827_s4 = scalar_lea.vmem %s4654_s5, %s4147_s30 }
 0x4cb   : > { %3095 = vmatmul.msk.bf16.vlgmr.msra.gmra.mxu0 %vm1085_vm2, %v1388_v41  ;;  %v3442_v41 = vld [vmem:[#allocation4 + $0x34] sm:$0xf0] }
 0x4cc   : > { %v3179_v10 = vor.u32 %v3442_v41, %v3178_v39 }
 0x4ce   : > { %1837 = vmatpush.bf16.msrb.mxu2 %v3179_v10 }
 0x4d2   : > { %1838 = vmatpush.bf16.msrb.mxu2 %v3171_v34 }
 0x538   : > { %v1248_v44 = vpop.f32.mrf.mxu0 }
 0x540   : > { %v1250_v45 = vpop.f32.mrf.mxu0 }
 0x541   : > { %v1253_v47 = vpack.c.bf16 %v1250_v45, %v1248_v44  ;;  %v3438_v44 = vld [vmem:[#allocation4 + $0x14] sm:$0xf0]  ;;  %v3433_v45 = vld [vmem:[#allocation2 + $0x30] sm:$0xff] }
 0x543   : > { %3084 = vmatmul.msk.bf16.vlgmr.msrb.gmra.mxu1 %vm1064_vm0, %v1253_v47  ;;  %v3163_v47 = vor.u32 %v3438_v44, %v3162_v43 }
 0x544   : > { %1711 = vmatpush.bf16.msrb.mxu1 %v3434_v57 }
 0x545   : > { %1839 = vmatpush.bf16.msrb.mxu2 %v3163_v47  ;;  %v3449_v47 = vld [vmem:[#allocation4 + $0x74] sm:$0xf] }
 0x548   : > { %v1404_v48 = vpop.f32.mrf.mxu0  ;;  %v1533_v49 = vpop.f32.mrf.mxu3  ;;  %1712 = vmatpush.bf16.msrb.mxu1 %v3433_v45 }
 0x550   : > { %v1406_v51 = vpop.f32.mrf.mxu0  ;;  %v1535_v52 = vpop.f32.mrf.mxu3 }
 0x551   : > { %v1409_v53 = vpack.c.bf16 %v1406_v51, %v1404_v48  ;;  %v1538_v54 = vpack.c.bf16 %v1535_v52, %v1533_v49  ;;  %v3154_v48 = vld [vmem:[#allocation4] sm:$0xf]  ;;  %v3436_v49 = vld [vmem:[#allocation4 + $0x4] sm:$0xf0] }
 0x552   : > { %v3432_v51 = vld [vmem:[#allocation2 + $0x28] sm:$0xff]  ;;  %v3155_v52 = vor.u32 %v3436_v49, %v3154_v48  ;;  %v3212_v48 = vld [vmem:[#allocation4 + $0x78] sm:$0xf0]  ;;  %v3447_v49 = vld [vmem:[#allocation4 + $0x64] sm:$0xf] }
 0x553   : > { %3104 = vmatmul.msk.bf16.vlgmr.msra.gmra.mxu1 %vm1064_vm0, %v1409_v53  ;;  %3115 = vmatmul.msk.bf16.vlgmr.msrb.gmra.mxu0 %vm1064_vm0, %v1538_v54  ;;  %v4401_v53 = vld [vmem:[%s819_s3] sm:$0xff] }
 0x554   : > { %1713 = vmatpush.bf16.msrb.mxu1 %v3432_v51  ;;  %1840 = vmatpush.bf16.msrb.mxu2 %v3155_v52  ;;  %v3431_v54 = vld [vmem:[#allocation2 + $0x20] sm:$0xff]  ;;  %v3215_v51 = vor.u32 %v3449_v47, %v3212_v48  ;;  %v3204_v52 = vld [vmem:[#allocation4 + $0x68] sm:$0xf0] }
 0x556   : > { %1847 = vmatpush.bf16.msrb.mxu3 %v3215_v51 }
 0x557   : > { %1841 = vmatmul.bf16.vlgmr.msrb.gmra.mxu2 %v4401_v53 }
 0x558   : > { %1714 = vmatpush.bf16.msrb.mxu1 %v3431_v54  ;;  %v3207_v54 = vor.u32 %v3447_v49, %v3204_v52 }
 0x55a   : > { %1848 = vmatpush.bf16.msrb.mxu3 %v3207_v54 }
 0x5c0   : > { %v1282_v55 = vpop.f32.mrf.mxu1 }
 0x5c1   : > { %v1312_v58 = vadd.f32 %v4239_v40, %v1282_v55  ;;  %v1580_v40 = vunpack.c.h.bf16 %v829_v62  ;;  %v3430_v55 = vld [vmem:[#allocation2 + $0x18] sm:$0xff]  ;;  %v3427_v62 = vld [vmem:[#allocation2] sm:$0xff] }
 0x5c2   : > { %1715 = vmatpush.bf16.msrb.mxu1 %v3430_v55  ;;  %v3445_v55 = vld [vmem:[#allocation4 + $0x54] sm:$0xf] }
 0x5c8   : > { %v1284_v56 = vpop.f32.mrf.mxu1 }
 0x5c9   : > { %v1314_v3 = vadd.f32 %v4241_v46, %v1284_v56  ;;  %v1591_v46 = vsub.f32 1.0, %v1590_v12  ;;  %v3429_v56 = vld [vmem:[#allocation2 + $0x10] sm:$0xff] }
 0x5ca   : > { %1716 = vmatpush.bf16.msrb.mxu1 %v3429_v56  ;;  %v3196_v56 = vld [vmem:[#allocation4 + $0x58] sm:$0xf0] }
 0x5cb   : > { %v1592_v23 = vmul.f32 %v3608_v11, %v1591_v46  ;;  %v3567_v46 = vld [vmem:[%s4651_s6] ss:$0 sm:$0xff] }
 0x5cd   : > { %v1593_v27 = vadd.f32 %v3608_v11, %v1592_v23 }
 0x5cf   : > { %v4385_v28 = vsel %vm1594_vm8, %v3608_v11, %v1593_v27 }
 0x5d0   : > { %v1438_v60 = vpop.f32.mrf.mxu1  ;;  %v1567_v61 = vpop.f32.mrf.mxu0 }
 0x5d1   : > { %v1443_v37 = vadd.f32 %v1438_v60, %v1312_v58  ;;  %v3428_v58 = vld [vmem:[#allocation2 + $0x8] sm:$0xff] }
 0x5d2   : > { %1717 = vmatpush.bf16.msrb.mxu1 %v3428_v58  ;;  %v3199_v58 = vor.u32 %v3445_v55, %v3196_v56 }
 0x5d3   : > { %v1572_v0 = vadd.f32 %v1567_v61, %v1443_v37 }
 0x5d4   : > { %1849 = vmatpush.bf16.msrb.mxu3 %v3199_v58 }
 0x5d5   : > { %v1577_v2 = vadd.f32 %v3565_v63, %v1572_v0 }
 0x5d6   : > { %1718 = vmatpush.bf16.msrb.mxu1 %v3427_v62 }
 0x5d7   : > { %v1581_v4 = vadd.f32 %v1579_v1, %v1577_v2 }
 0x5d8   : > { %v1440_v5 = vpop.f32.mrf.mxu1  ;;  %v1569_v7 = vpop.f32.mrf.mxu0 }
 0x5d9   : > { %v1444_v59 = vadd.f32 %v1440_v5, %v1314_v3  ;;  %1585 = vadd.xlane.f32.xlu0 %v1581_v4 }
 0x5da   : > { %v1842_v25 = vpop.f32.mrf.mxu2 }
 0x5db   : > { %v1573_v8 = vadd.f32 %v1569_v7, %v1444_v59  ;;  %v1843_v27 = vadd.f32 %v1842_v25, %v1743_v26 }
 0x5dd   : > { %v1578_v9 = vadd.f32 %v3565_v63, %v1573_v8 }
 0x5df   : > { %v1582_v50 = vadd.f32 %v1580_v40, %v1578_v9 }
 0x5e1   : > { %1587 = vadd.xlane.f32.xlu1 %v1582_v50 }
 0x5e2   : > { %v1844_v30 = vpop.f32.mrf.mxu2 }
 0x64c   : > { %v1586_v29 = vpop.xlane.xlu0 %1585 }
 0x64d   : > { %v1596_v31 = vmul.f32 %v4385_v28, %v1586_v29  ;;  %v1845_v29 = vadd.f32 %v1844_v30, %v1743_v26 }
 0x64f   : > { %v4388_v32 = vsub.f32 %v1581_v4, %v1596_v31  ;;  %v4426_v31 = vpack.c.bf16 %v1845_v29, %v1843_v27  ;;  %v3452_v29 = vld [vmem:[#allocation6 + $0x8] sm:$0xff] }
 0x651   : > { %v1600_v33 = vmul.f32 %v4388_v32, %v4388_v32 }
 0x653   : > { %1602 = vadd.xlane.f32.xlu2 %v1600_v33 }
 0x654   : > { %v1588_v6 = vpop.xlane.xlu1 %1587 }
 0x655   : > { %v1597_v35 = vmul.f32 %v4385_v28, %v1588_v6  ;;  %v3568_v6 = vld [vmem:[%s4602_s9] ss:$0 sm:$0xff] }
 0x657   : > { %v4393_v36 = vsub.f32 %v1582_v50, %v1597_v35 }
 0x659   : > { %v1601_v38 = vmul.f32 %v4393_v36, %v4393_v36 }
 0x65b   : > { %1604 = vadd.xlane.f32.xlu0 %v1601_v38 }
 0x6c6   : > { %v1603_v60 = vpop.xlane.xlu2 %1602 }
 0x6c7   : > { %v1606_v61 = vmul.f32 %v1603_v60, %v4385_v28  ;;  %v3443_v60 = vld [vmem:[#allocation4 + $0x44] sm:$0xf] }
 0x6c9   : > { %v1608_v37 = vadd.f32 1e-05, %v1606_v61  ;;  %v3188_v61 = vld [vmem:[#allocation4 + $0x48] sm:$0xf0] }
 0x6ca   : > { %v3191_v62 = vor.u32 %v3443_v60, %v3188_v61 }
 0x6cb   : > { %3609 = vrsqrt.f32 %v1608_v37  ;;  %vm1616_vm10 = vweird.f32 %v1608_v37 }
 0x6cc   : > { %1850 = vmatpush.bf16.msrb.mxu3 %v3191_v62 }
 0x6ce   : > { %v1605_v63 = vpop.xlane.xlu0 %1604 }
 0x6cf   : > { %v1607_v0 = vmul.f32 %v1605_v63, %v4385_v28  ;;  %v3180_v63 = vld [vmem:[#allocation4 + $0x38] sm:$0xf0] }
 0x6d1   : > { %v3610_v1 = vpop.eup %3609  ;;  %v1609_v2 = vadd.f32 1e-05, %v1607_v0 }
 0x6d2   : > { %v1611_v3 = vmul.f32 %v3610_v1, %v1608_v37  ;;  %vm1617_vm9 = vweird.f32 %v3610_v1  ;;  %v3441_v37 = vld [vmem:[#allocation4 + $0x34] sm:$0xf] }
 0x6d3   : > { %3611 = vrsqrt.f32 %v1609_v2  ;;  %vm1618_vm11 = vmor %vm1616_vm10, %vm1617_vm9  ;;  %vm1626_vm13 = vweird.f32 %v1609_v2  ;;  %v3183_v0 = vor.u32 %v3441_v37, %v3180_v63 }
 0x6d4   : > { %v1612_v4 = vmul.f32 %v3610_v1, %v1611_v3 }
 0x6d5   : > { %1851 = vmatpush.bf16.msrb.mxu3 %v3183_v0 }
 0x6d6   : > { %v1613_v5 = vmul.f32 0.5, %v1612_v4  ;;  %v3437_v4 = vld [vmem:[#allocation4 + $0x14] sm:$0xf] }
 0x6d8   : > { %v1614_v59 = vsub.f32 1.5, %v1613_v5  ;;  %v3164_v5 = vld [vmem:[#allocation4 + $0x18] sm:$0xf0] }
 0x6d9   : > { %v3612_v7 = vpop.eup %3611 }
 0x6da   : > { %v1615_v8 = vmul.f32 %v3610_v1, %v1614_v59  ;;  %v1621_v40 = vmul.f32 %v3612_v7, %v1609_v2  ;;  %vm1627_vm12 = vweird.f32 %v3612_v7  ;;  %v3172_v2 = vld [vmem:[#allocation4 + $0x28] sm:$0xf0]  ;;  %v3167_v59 = vor.u32 %v3437_v4, %v3164_v5 }
 0x6db   : > { %vm1628_vm14 = vmor %vm1626_vm13, %vm1627_vm12 }
 0x6dc   : > { %v1622_v9 = vmul.f32 %v3612_v7, %v1621_v40  ;;  %v1619_v50 = vsel %vm1618_vm11, %v3610_v1, %v1615_v8  ;;  %v3439_v1 = vld [vmem:[#allocation4 + $0x24] sm:$0xf]  ;;  %v3156_v8 = vld [vmem:[#allocation4 + $0x8] sm:$0xf0] }
 0x6dd   : > { %v1630_v12 = vmul.f32 %v1619_v50, %v4388_v32  ;;  %v1875_v32 = vsel %vm1064_vm0, %v4426_v31, 0  ;;  %v3175_v3 = vor.u32 %v3439_v1, %v3172_v2 }
 0x6de   : > { %v1623_v42 = vmul.f32 0.5, %v1622_v9  ;;  %1884 = vmatpush.bf16.xpose.msra.mxu0 %v1875_v32  ;;  %v3451_v32 = vld [vmem:[#allocation6] sm:$0xff] }
 0x6df   : > { %v1635_v19 = vmul.f32 %v3566_v13, %v1630_v12  ;;  %1852 = vmatpush.bf16.msrb.mxu3 %v3175_v3 }
 0x6e0   : > { %v1624_v11 = vsub.f32 1.5, %v1623_v42 }
 0x6e1   : > { %v4414_v21 = vadd.f32 %v3567_v46, %v1635_v19 }
 0x6e2   : > { %v1625_v14 = vmul.f32 %v3612_v7, %v1624_v11 }
 0x6e3   : > { %1853 = vmatpush.bf16.msrb.mxu3 %v3167_v59 }
 0x6e4   : > { %v1629_v16 = vsel %vm1628_vm14, %v3612_v7, %v1625_v14  ;;  %v3435_v7 = vld [vmem:[#allocation4 + $0x4] sm:$0xf] }
 0x6e5   : > { %v1631_v18 = vmul.f32 %v1629_v16, %v4393_v36  ;;  %v3159_v40 = vor.u32 %v3435_v7, %v3156_v8 }
 0x6e7   : > { %v1636_v20 = vmul.f32 %v3566_v13, %v1631_v18  ;;  %1854 = vmatpush.bf16.msrb.mxu3 %v3159_v40 }
 0x6e9   : > { %v4416_v22 = vadd.f32 %v3567_v46, %v1636_v20 }
 0x6ea   : > { %1855 = vmatmul.bf16.vlgmr.msrb.gmra.mxu3 %v4401_v53 }
 0x6eb   : > { %v1642_v23 = vpack.c.bf16 %v4416_v22, %v4414_v21 }
 0x6ed   : > { %1719 = vmatmul.bf16.vlgmr.msrb.gmra.mxu1 %v1642_v23  ;;  %v1744_v23 = vperm.slane %v4423_v24, 1 }
 0x76a   : > { %v1720_v33 = vpop.f32.mrf.mxu1 }
 0x76b   : > { %v1721_v35 = vadd.f32 %v3568_v6, %v1720_v33 }
 0x76d   : > { %v1862_v39 = vmul.f32 0.17677669, %v1721_v35  ;;  %v1856_v53 = vpop.f32.mrf.mxu3 }
 0x76e   : > { %v1857_v26 = vadd.f32 %v1856_v53, %v1744_v23 }
 0x772   : > { %v1722_v36 = vpop.f32.mrf.mxu1 }
 0x773   : > { %v1723_v38 = vadd.f32 %v3568_v6, %v1722_v36 }
 0x775   : > { %v1863_v41 = vmul.f32 0.17677669, %v1723_v38  ;;  %v1858_v25 = vpop.f32.mrf.mxu3 }
 0x776   : > { %v1859_v27 = vadd.f32 %v1858_v25, %v1744_v23 }
 0x777   : > { %v4433_v10 = vpack.c.bf16 %v1863_v41, %v1862_v39 }
 0x778   : > { %v4465_v30 = vpack.c.bf16 %v1859_v27, %v1857_v26 }
 0x779   : > { %3216 = vmatmul.msk.bf16.vlgmr.msra.gmra.mxu0 %vm1064_vm0, %v4433_v10 }
 0x77a   : > { %1950 = vmatpush.bf16.msrb.mxu0 %v4465_v30 }
 0x77e   : > { %2113 = vmatpush.bf16.msra.mxu0 %v3452_v29 }
 0x782   : > { %2114 = vmatpush.bf16.msra.mxu0 %v3451_v32 }
 0x7f6   : > { %v1886_v15 = vpop.f32.mrf.mxu0 }
 0x7f7   : > { %v1887_v57 = vadd.f32 %v4442_v17, %v1886_v15 }
 0x7f9   : > { %v1891_v34 = vsel %vm1085_vm2, %v1887_v57, -inf }
 0x7fa   : > { %1892 = vmax.xlane.f32.xlu1 %v1891_v34 }
 0x7fe   : > { %v1888_v43 = vpop.f32.mrf.mxu0 }
 0x7ff   : > { %v1889_v44 = vadd.f32 %v4442_v17, %v1888_v43 }
 0x801   : > { %v1894_v45 = vsel %vm1085_vm2, %v1889_v44, -inf }
 0x802   : > { %1895 = vmax.xlane.f32.xlu2 %v1894_v45 }
 0x81a   : > { %1966 = vrot.lane.b32.xlu2 %v4426_v31, %s3840_s25 }
 0x822   : > { %2252 = vrot.lane.b32.xlu2 %v4426_v31, %s3841_s2 }
 0x86d   : > { %v1893_v9 = vpop.xlane.xlu1 %1892 }
 0x86e   : > { %v1897_v50 = vsub.f32 %v1887_v57, %v1893_v9 }
 0x870   : > { %v1899_v42 = vmul.f32 1.442695, %v1897_v50 }
 0x872   : > { %3613 = vpow2.f32 %v1899_v42 }
 0x875   : > { %v1896_v11 = vpop.xlane.xlu2 %1895 }
 0x876   : > { %v1898_v12 = vsub.f32 %v1889_v44, %v1896_v11 }
 0x878   : > { %v3614_v13 = vpop.eup %3613  ;;  %v1901_v14 = vmul.f32 1.442695, %v1898_v12 }
 0x879   : > { %v1903_v16 = vsel %vm1085_vm2, %v3614_v13, 0.0 }
 0x87a   : > { %3615 = vpow2.f32 %v1901_v14  ;;  %1904 = vadd.xlane.f32.xlu0 %v1903_v16 }
 0x87d   : > { %v1967_v18 = vpop.permute.xlu2 %1966 }
 0x87e   : > { %v1972_v19 = vsel %vm1064_vm0, %v1967_v18, 0 }
 0x87f   : > { %1981 = vmatpush.bf16.xpose.msra.mxu1 %v1972_v19 }
 0x880   : > { %v3616_v46 = vpop.eup %3615 }
 0x881   : > { %v1906_v20 = vsel %vm1085_vm2, %v3616_v46, 0.0 }
 0x882   : > { %1907 = vadd.xlane.f32.xlu1 %v1906_v20 }
 0x885   : > { %v2253_v60 = vpop.permute.xlu2 %2252 }
 0x886   : > { %v2258_v62 = vsel %vm1064_vm0, %v2253_v60, 0 }
 0x88e   : > { %1963 = vrot.lane.b32.xlu0 %v4433_v10, %s3840_s25 }
 0x896   : > { %2121 = vrot.lane.b32.xlu0 %v4433_v10, %s3842_s10 }
 0x89b   : > { %2123 = vrot.lane.b32.xlu1 %v4426_v31, %s3842_s10 }
 0x8a3   : > { %2250 = vrot.lane.b32.xlu1 %v4433_v10, %s3841_s2 }
 0x8ed   : > { %v1905_v33 = vpop.xlane.xlu0 %1904 }
 0x8ee   : > { %3617 = vrcp.f32 %v1905_v33  ;;  %v1920_v10 = vand.u32 2147483648, %v1905_v33  ;;  %vm1914_vm1 = vweird.f32 %v1905_v33  ;;  %v1918_v15 = vand.u32 2147483647, %v1905_v33 }
 0x8f0   : > { %v1921_v48 = vor.u32 1.1754944e-38, %v1920_v10  ;;  %vm1919_vm5 = vcmp.eq.f32.partialorder %v1918_v15, 8.507059e+37 }
 0x8f4   : > { %v3618_v31 = vpop.eup %3617 }
 0x8f5   : > { %v1910_v6 = vmul.f32 %v3618_v31, %v1905_v33  ;;  %v1908_v35 = vpop.xlane.xlu1 %1907  ;;  %vm1915_vm15 = vweird.f32 %v3618_v31 }
 0x8f6   : > { %3619 = vrcp.f32 %v1908_v35  ;;  %vm1916_vm3 = vmor %vm1914_vm1, %vm1915_vm15  ;;  %v1935_v34 = vand.u32 2147483648, %v1908_v35  ;;  %v1933_v47 = vand.u32 2147483647, %v1908_v35  ;;  %vm1929_vm6 = vweird.f32 %v1908_v35 }
 0x8f7   : > { %v1911_v36 = vsub.f32 1.0, %v1910_v6 }
 0x8f8   : > { %v1936_v52 = vor.u32 1.1754944e-38, %v1935_v34  ;;  %vm1934_vm8 = vcmp.eq.f32.partialorder %v1933_v47, 8.507059e+37 }
 0x8f9   : > { %v1912_v38 = vmul.f32 %v3618_v31, %v1911_v36 }
 0x8fb   : > { %v1913_v39 = vadd.f32 %v3618_v31, %v1912_v38 }
 0x8fc   : > { %v3620_v24 = vpop.eup %3619 }
 0x8fd   : > { %v1925_v41 = vmul.f32 %v3620_v24, %v1908_v35  ;;  %v1917_v44 = vsel %vm1916_vm3, %v3618_v31, %v1913_v39  ;;  %vm1930_vm4 = vweird.f32 %v3620_v24 }
 0x8fe   : > { %v1922_v51 = vsel %vm1919_vm5, %v1921_v48, %v1917_v44  ;;  %vm1931_vm7 = vmor %vm1929_vm6, %vm1930_vm4 }
 0x8ff   : > { %v1926_v57 = vsub.f32 1.0, %v1925_v41  ;;  %v1923_v56 = vmul.f32 %v3614_v13, %v1922_v51 }
 0x900   : > { %v1964_v43 = vpop.permute.xlu0 %1963 }
 0x901   : > { %v1927_v45 = vmul.f32 %v3620_v24, %v1926_v57  ;;  %3218 = vmatmul.msk.bf16.vlgmr.msra.gmra.mxu1 %vm1064_vm0, %v1964_v43 }
 0x903   : > { %v1928_v49 = vadd.f32 %v3620_v24, %v1927_v45 }
 0x905   : > { %v1932_v54 = vsel %vm1931_vm7, %v3620_v24, %v1928_v49 }
 0x906   : > { %v1937_v55 = vsel %vm1934_vm8, %v1936_v52, %v1932_v54 }
 0x907   : > { %v1938_v58 = vmul.f32 %v3616_v46, %v1937_v55 }
 0x908   : > { %v2122_v0 = vpop.permute.xlu0 %2121 }
 0x909   : > { %v1939_v61 = vpack.c.bf16 %v1938_v58, %v1923_v56 }
 0x90b   : > { %3217 = vmatmul.msk.bf16.vlgmr.msrb.gmra.mxu0 %vm1085_vm2, %v1939_v61 }
 0x90c   : > { %2267 = vmatpush.bf16.xpose.msrb.mxu0 %v2258_v62 }
 0x90d   : > { %v2124_v37 = vpop.permute.xlu1 %2123 }
 0x90e   : > { %v2129_v63 = vsel %vm1064_vm0, %v2124_v37, 0 }
 0x90f   : > { %2138 = vmatpush.bf16.xpose.msrb.mxu1 %v2129_v63 }
 0x915   : > { %v2251_v14 = vpop.permute.xlu1 %2250 }
 0x916   : > { %3238 = vmatmul.msk.bf16.vlgmr.msrb.gmra.mxu1 %vm1064_vm0, %v2122_v0 }
 0x97e   : > { %v1983_v1 = vpop.f32.mrf.mxu1 }
 0x97f   : > { %v1984_v2 = vadd.f32 %v4442_v17, %v1983_v1 }
 0x981   : > { %v1988_v3 = vsel %vm1085_vm2, %v1984_v2, -inf }
 0x982   : > { %1989 = vmax.xlane.f32.xlu0 %v1988_v3 }
 0x986   : > { %v1985_v4 = vpop.f32.mrf.mxu1 }
 0x987   : > { %v1986_v5 = vadd.f32 %v4442_v17, %v1985_v4 }
 0x988   : > { %v1952_v59 = vpop.f32.mrf.mxu0 }
 0x989   : > { %v1991_v7 = vsel %vm1085_vm2, %v1986_v5, -inf }
 0x98a   : > { %1992 = vmax.xlane.f32.xlu2 %v1991_v7 }
 0x990   : > { %v1954_v8 = vpop.f32.mrf.mxu0 }
 0x991   : > { %v1957_v40 = vpack.c.bf16 %v1954_v8, %v1952_v59 }
 0x993   : > { %3237 = vmatmul.msk.bf16.vlgmr.msra.gmra.mxu0 %vm1064_vm0, %v1957_v40  ;;  %v2140_v9 = vpop.f32.mrf.mxu1 }
 0x994   : > { %v2141_v50 = vadd.f32 %v4442_v17, %v2140_v9 }
 0x996   : > { %v2145_v42 = vsel %vm1085_vm2, %v2141_v50, -inf }
 0x997   : > { %2146 = vmax.xlane.f32.xlu1 %v2145_v42 }
 0x99b   : > { %v2142_v11 = vpop.f32.mrf.mxu1 }
 0x99c   : > { %v2143_v12 = vadd.f32 %v4442_v17, %v2142_v11 }
 0x99e   : > { %v2148_v13 = vsel %vm1085_vm2, %v2143_v12, -inf }
 0x99f   : > { %2149 = vmax.xlane.f32.xlu0 %v2148_v13 }
 0x9a3   : > { %3249 = vmatmul.msk.bf16.vlgmr.msrb.gmra.mxu0 %vm1064_vm0, %v2251_v14 }
 0x9f5   : > { %v1990_v16 = vpop.xlane.xlu0 %1989 }
 0x9f6   : > { %v1994_v18 = vsub.f32 %v1984_v2, %v1990_v16 }
 0x9f8   : > { %v1996_v19 = vmul.f32 1.442695, %v1994_v18 }
 0x9fa   : > { %3621 = vpow2.f32 %v1996_v19 }
 0x9fd   : > { %v1993_v27 = vpop.xlane.xlu2 %1992 }
 0x9fe   : > { %v1995_v32 = vsub.f32 %v1986_v5, %v1993_v27 }
 0xa00   : > { %v4483_v46 = vpop.eup %3621  ;;  %v1998_v31 = vmul.f32 1.442695, %v1995_v32 }
 0xa01   : > { %v2000_v20 = vsel %vm1085_vm2, %v4483_v46, 0.0 }
 0xa02   : > { %2001 = vadd.xlane.f32.xlu0 %v2000_v20 }
 0xa0a   : > { %v2147_v35 = vpop.xlane.xlu1 %2146 }
 0xa0b   : > { %v2151_v24 = vsub.f32 %v2141_v50, %v2147_v35 }
 0xa0d   : > { %v2153_v41 = vmul.f32 1.442695, %v2151_v24 }
 0xa10   : > { %v4487_v53 = vpop.f32.mrf.mxu0 }
 0xa12   : > { %v2150_v23 = vpop.xlane.xlu0 %2149 }
 0xa13   : > { %v2152_v25 = vsub.f32 %v2143_v12, %v2150_v23 }
 0xa15   : > { %v2155_v26 = vmul.f32 1.442695, %v2152_v25 }
 0xa17   : > { %3623 = vpow2.f32 %v2155_v26 }
 0xa18   : > { %v4489_v29 = vpop.f32.mrf.mxu0  ;;  %3625 = vpow2.f32 %v1998_v31 }
 0xa19   : > { %3627 = vpow2.f32 %v2153_v41 }
 0xa1d   : > { %v4491_v33 = vpop.eup %3623 }
 0xa1e   : > { %v2160_v6 = vsel %vm1085_vm2, %v4491_v33, 0.0  ;;  %v3626_v10 = vpop.eup %3625 }
 0xa1f   : > { %2161 = vadd.xlane.f32.xlu0 %v2160_v6  ;;  %v2003_v43 = vsel %vm1085_vm2, %v3626_v10, 0.0  ;;  %v4500_v44 = vpop.eup %3627 }
 0xa20   : > { %v2269_v36 = vpop.f32.mrf.mxu0  ;;  %v2157_v45 = vsel %vm1085_vm2, %v4500_v44, 0.0 }
 0xa21   : > { %v2270_v38 = vadd.f32 %v4442_v17, %v2269_v36 }
 0xa23   : > { %v2274_v39 = vsel %vm1085_vm2, %v2270_v38, -inf }
 0xa24   : > { %2275 = vmax.xlane.f32.xlu2 %v2274_v39 }
 0xa28   : > { %v2271_v15 = vpop.f32.mrf.mxu0 }
 0xa29   : > { %v2272_v57 = vadd.f32 %v4442_v17, %v2271_v15 }
 0xa2b   : > { %v2277_v34 = vsel %vm1085_vm2, %v2272_v57, -inf }
 0xa2c   : > { %2278 = vmax.xlane.f32.xlu1 %v2277_v34  ;;  %2004 = vadd.xlane.f32.xlu2 %v2003_v43 }
 0xa34   : > { %2158 = vadd.xlane.f32.xlu1 %v2157_v45 }
 0xa44   : > { %2038 = vrot.lane.b32.xlu2 %v4465_v30, %s3840_s25 }
 0xa75   : > { %v2002_v47 = vpop.xlane.xlu0 %2001 }
 0xa76   : > { %3629 = vrcp.f32 %v2002_v47  ;;  %v2017_v3 = vand.u32 2147483648, %v2002_v47  ;;  %vm2011_vm10 = vweird.f32 %v2002_v47  ;;  %v2015_v4 = vand.u32 2147483647, %v2002_v47 }
 0xa78   : > { %v2018_v50 = vor.u32 1.1754944e-38, %v2017_v3  ;;  %vm2016_vm13 = vcmp.eq.f32.partialorder %v2015_v4, 8.507059e+37 }
 0xa7c   : > { %v3630_v17 = vpop.eup %3629 }
 0xa7d   : > { %v2007_v52 = vmul.f32 %v3630_v17, %v2002_v47  ;;  %vm2012_vm9 = vweird.f32 %v3630_v17 }
 0xa7e   : > { %vm2013_vm11 = vmor %vm2011_vm10, %vm2012_vm9 }
 0xa7f   : > { %v2008_v54 = vsub.f32 1.0, %v2007_v52 }
 0xa81   : > { %v2009_v61 = vmul.f32 %v3630_v17, %v2008_v54 }
 0xa83   : > { %v2010_v0 = vadd.f32 %v3630_v17, %v2009_v61 }
 0xa85   : > { %v2014_v8 = vsel %vm2013_vm11, %v3630_v17, %v2010_v0 }
 0xa86   : > { %v2019_v12 = vsel %vm2016_vm13, %v2018_v50, %v2014_v8 }
 0xa87   : > { %v2020_v18 = vmul.f32 %v4483_v46, %v2019_v12  ;;  %v3454_v46 = vld [vmem:[#allocation6 + $0x18] sm:$0xff] }
 0xa88   : > { %2084 = vmatpush.bf16.msra.mxu3 %v3454_v46 }
 0xa92   : > { %v2162_v23 = vpop.xlane.xlu0 %2161 }
 0xa93   : > { %vm2183_vm5 = vweird.f32 %v2162_v23  ;;  %v2189_v17 = vand.u32 2147483648, %v2162_v23 }
 0xa95   : > { %v2190_v61 = vor.u32 1.1754944e-38, %v2189_v17 }
 0xa97   : > { %v2276_v48 = vpop.xlane.xlu2 %2275 }
 0xa98   : > { %v2280_v49 = vsub.f32 %v2270_v38, %v2276_v48  ;;  %v2187_v48 = vand.u32 2147483647, %v2162_v23 }
 0xa9a   : > { %v2282_v51 = vmul.f32 1.442695, %v2280_v49  ;;  %vm2188_vm10 = vcmp.eq.f32.partialorder %v2187_v48, 8.507059e+37 }
 0xa9c   : > { %3631 = vpow2.f32 %v2282_v51 }
 0xa9f   : > { %v2005_v55 = vpop.xlane.xlu2 %2004  ;;  %v2279_v56 = vpop.xlane.xlu1 %2278 }
 0xaa0   : > { %3633 = vrcp.f32 %v2005_v55  ;;  %v2281_v58 = vsub.f32 %v2272_v57, %v2279_v56  ;;  %v2032_v59 = vand.u32 2147483648, %v2005_v55  ;;  %v2030_v9 = vand.u32 2147483647, %v2005_v55 }
 0xaa1   : > { %vm2026_vm14 = vweird.f32 %v2005_v55 }
 0xaa2   : > { %v4506_v60 = vpop.eup %3631  ;;  %v2284_v62 = vmul.f32 1.442695, %v2281_v58  ;;  %v2033_v13 = vor.u32 1.1754944e-38, %v2032_v59  ;;  %vm2031_vm1 = vcmp.eq.f32.partialorder %v2030_v9, 8.507059e+37 }
 0xaa3   : > { %v2286_v37 = vsel %vm1085_vm2, %v4506_v60, 0.0 }
 0xaa4   : > { %2287 = vadd.xlane.f32.xlu1 %v2286_v37  ;;  %3635 = vpow2.f32 %v2284_v62 }
 0xaa5   : > { %3637 = vrcp.f32 %v2162_v23 }
 0xaa6   : > { %v3634_v63 = vpop.eup %3633 }
 0xaa7   : > { %v2022_v1 = vmul.f32 %v3634_v63, %v2005_v55  ;;  %v2039_v2 = vpop.permute.xlu2 %2038  ;;  %vm2027_vm12 = vweird.f32 %v3634_v63  ;;  %v2159_v25 = vpop.xlane.xlu1 %2158 }
 0xaa8   : > { %2051 = vmatpush.bf16.msra.mxu2 %v2039_v2  ;;  %vm2028_vm15 = vmor %vm2026_vm14, %vm2027_vm12  ;;  %3639 = vrcp.f32 %v2159_v25  ;;  %v2174_v43 = vand.u32 2147483648, %v2159_v25  ;;  %vm2168_vm7 = vweird.f32 %v2159_v25  ;;  %v2172_v49 = vand.u32 2147483647, %v2159_v25 }
 0xaa9   : > { %v2023_v5 = vsub.f32 1.0, %v2022_v1 }
 0xaaa   : > { %v4510_v7 = vpop.eup %3635  ;;  %v2175_v55 = vor.u32 1.1754944e-38, %v2174_v43  ;;  %vm2173_vm11 = vcmp.eq.f32.partialorder %v2172_v49, 8.507059e+37 }
 0xaab   : > { %v2024_v40 = vmul.f32 %v3634_v63, %v2023_v5  ;;  %v2289_v42 = vsel %vm1085_vm2, %v4510_v7, 0.0  ;;  %v3638_v26 = vpop.eup %3637 }
 0xaac   : > { %2290 = vadd.xlane.f32.xlu0 %v2289_v42  ;;  %v2179_v32 = vmul.f32 %v3638_v26, %v2162_v23  ;;  %vm2184_vm3 = vweird.f32 %v3638_v26 }
 0xaad   : > { %v2025_v11 = vadd.f32 %v3634_v63, %v2024_v40  ;;  %vm4520_vm6 = vmor %vm2183_vm5, %vm2184_vm3 }
 0xaae   : > { %v3640_v27 = vpop.eup %3639  ;;  %v2180_v35 = vsub.f32 1.0, %v2179_v32 }
 0xaaf   : > { %v2029_v14 = vsel %vm2028_vm15, %v3634_v63, %v2025_v11  ;;  %v2164_v31 = vmul.f32 %v3640_v27, %v2159_v25  ;;  %vm2169_vm4 = vweird.f32 %v3640_v27  ;;  %v3458_v25 = vld [vmem:[#allocation6 + $0x38] sm:$0xff] }
 0xab0   : > { %v2034_v16 = vsel %vm2031_vm1, %v2033_v13, %v2029_v14  ;;  %v2181_v24 = vmul.f32 %v3638_v26, %v2180_v35  ;;  %vm2170_vm8 = vmor %vm2168_vm7, %vm2169_vm4 }
 0xab1   : > { %v2035_v19 = vmul.f32 %v3626_v10, %v2034_v16  ;;  %v2165_v36 = vsub.f32 1.0, %v2164_v31 }
 0xab2   : > { %v2182_v57 = vadd.f32 %v3638_v26, %v2181_v24 }
 0xab3   : > { %v2036_v20 = vpack.c.bf16 %v2035_v19, %v2020_v18  ;;  %v2166_v39 = vmul.f32 %v3640_v27, %v2165_v36 }
 0xab4   : > { %v2186_v52 = vsel %vm4520_vm6, %v3638_v26, %v2182_v57  ;;  %v3456_v26 = vld [vmem:[#allocation6 + $0x28] sm:$0xff] }
 0xab5   : > { %3219 = vmatmul.msk.bf16.vlgmr.msra.gmra.mxu2 %vm1085_vm2, %v2036_v20  ;;  %v2167_v34 = vadd.f32 %v3640_v27, %v2166_v39  ;;  %v2191_v1 = vsel %vm2188_vm10, %v2190_v61, %v2186_v52  ;;  %v3474_v61 = vld [vmem:[#allocation7 + $0x74] sm:$0xf0] }
 0xab6   : > { %v2192_v9 = vmul.f32 %v4491_v33, %v2191_v1  ;;  %v3310_v1 = vld [vmem:[#allocation7 + $0x60] sm:$0xf] }
 0xab7   : > { %v2171_v54 = vsel %vm2170_vm8, %v3640_v27, %v2167_v34  ;;  %v3457_v27 = vld [vmem:[#allocation6 + $0x30] sm:$0xff] }
 0xab8   : > { %v2176_v37 = vsel %vm2173_vm11, %v2175_v55, %v2171_v54 }
 0xab9   : > { %v2177_v59 = vmul.f32 %v4500_v44, %v2176_v37 }
 0xabb   : > { %v2193_v14 = vpack.c.bf16 %v2192_v9, %v2177_v59  ;;  %v3469_v9 = vld [vmem:[#allocation7 + $0x54] sm:$0xf] }
 0xabd   : > { %2194 = vrot.lane.b32.xlu1 %v4465_v30, %s3842_s10 }
 0xac0   : > { %2323 = vrot.lane.b32.xlu0 %v4465_v30, %s3841_s2  ;;  %v3453_v30 = vld [vmem:[#allocation6 + $0x10] sm:$0xff] }
 0xac1   : > { %2085 = vmatpush.bf16.msra.mxu3 %v3453_v30  ;;  %v3569_v30 = vld [vmem:[%s4606_s13] ss:$0 sm:$0xff] }
 0xac5   : > { %2240 = vmatpush.bf16.msrb.mxu3 %v3456_v26 }
 0xb17   : > { %v2288_v6 = vpop.xlane.xlu1 %2287 }
 0xb18   : > { %3641 = vrcp.f32 %v2288_v6  ;;  %v2303_v62 = vand.u32 2147483648, %v2288_v6  ;;  %vm2297_vm12 = vweird.f32 %v2288_v6  ;;  %v2301_v63 = vand.u32 2147483647, %v2288_v6 }
 0xb1a   : > { %v2304_v8 = vor.u32 1.1754944e-38, %v2303_v62  ;;  %vm2302_vm15 = vcmp.eq.f32.partialorder %v2301_v63, 8.507059e+37  ;;  %v3473_v62 = vld [vmem:[#allocation7 + $0x74] sm:$0xf]  ;;  %v3320_v63 = vld [vmem:[#allocation7 + $0x78] sm:$0xf0] }
 0xb1e   : > { %v3642_v38 = vpop.eup %3641 }
 0xb1f   : > { %v2293_v41 = vmul.f32 %v3642_v38, %v2288_v6  ;;  %v2291_v10 = vpop.xlane.xlu0 %2290  ;;  %vm2298_vm9 = vweird.f32 %v3642_v38 }
 0xb20   : > { %3643 = vrcp.f32 %v2291_v10  ;;  %vm2299_vm13 = vmor %vm2297_vm12, %vm2298_vm9  ;;  %v2318_v2 = vand.u32 2147483648, %v2291_v10  ;;  %v2316_v5 = vand.u32 2147483647, %v2291_v10  ;;  %vm2312_vm1 = vweird.f32 %v2291_v10 }
 0xb21   : > { %v2294_v15 = vsub.f32 1.0, %v2293_v41 }
 0xb22   : > { %v2319_v42 = vor.u32 1.1754944e-38, %v2318_v2  ;;  %vm2317_vm4 = vcmp.eq.f32.partialorder %v2316_v5, 8.507059e+37  ;;  %v3472_v2 = vld [vmem:[#allocation7 + $0x64] sm:$0xf0]  ;;  %v3312_v5 = vld [vmem:[#allocation7 + $0x68] sm:$0xf0] }
 0xb23   : > { %v2295_v45 = vmul.f32 %v3642_v38, %v2294_v15 }
 0xb25   : > { %v2296_v56 = vadd.f32 %v3642_v38, %v2295_v45 }
 0xb26   : > { %v3644_v51 = vpop.eup %3643 }
 0xb27   : > { %v2308_v58 = vmul.f32 %v3644_v51, %v2291_v10  ;;  %v2300_v3 = vsel %vm2299_vm13, %v3642_v38, %v2296_v56  ;;  %vm2313_vm14 = vweird.f32 %v3644_v51 }
 0xb28   : > { %v2305_v50 = vsel %vm2302_vm15, %v2304_v8, %v2300_v3  ;;  %vm2314_vm3 = vmor %vm2312_vm1, %vm2313_vm14  ;;  %v3471_v3 = vld [vmem:[#allocation7 + $0x64] sm:$0xf]  ;;  %v3302_v8 = vld [vmem:[#allocation7 + $0x50] sm:$0xf] }
 0xb29   : > { %v2309_v0 = vsub.f32 1.0, %v2308_v58  ;;  %v2306_v16 = vmul.f32 %v4506_v60, %v2305_v50  ;;  %v3455_v60 = vld [vmem:[#allocation6 + $0x20] sm:$0xff]  ;;  %v3315_v59 = vor.u32 %v3471_v3, %v3312_v5 }
 0xb2a   : > { %2241 = vmatpush.bf16.msrb.mxu3 %v3455_v60  ;;  %v3464_v60 = vld [vmem:[#allocation7 + $0x24] sm:$0xf0] }
 0xb2b   : > { %v2310_v4 = vmul.f32 %v3644_v51, %v2309_v0  ;;  %v3323_v0 = vor.u32 %v3473_v62, %v3320_v63 }
 0xb2d   : > { %v2311_v40 = vadd.f32 %v3644_v51, %v2310_v4  ;;  %2555 = vmatpush.bf16.msra.mxu0 %v3323_v0  ;;  %v3311_v4 = vor.u32 %v3472_v2, %v3310_v1  ;;  %v3570_v1 = vld [vmem:[%s4607_s14] ss:$0 sm:$0xff] }
 0xb2f   : > { %v2195_v11 = vpop.permute.xlu1 %2194  ;;  %v2315_v12 = vsel %vm2314_vm3, %v3644_v51, %v2311_v40  ;;  %v3470_v40 = vld [vmem:[#allocation7 + $0x54] sm:$0xf0] }
 0xb30   : > { %2207 = vmatpush.bf16.msrb.mxu2 %v2195_v11  ;;  %v2320_v13 = vsel %vm2317_vm4, %v2319_v42, %v2315_v12  ;;  %v3303_v50 = vor.u32 %v3470_v40, %v3302_v8  ;;  %v3304_v42 = vld [vmem:[#allocation7 + $0x58] sm:$0xf0]  ;;  %v3294_v12 = vld [vmem:[#allocation7 + $0x40] sm:$0xf] }
 0xb31   : > { %v2321_v18 = vmul.f32 %v4510_v7, %v2320_v13  ;;  %2556 = vmatpush.bf16.msra.mxu0 %v3315_v59  ;;  %v3307_v11 = vor.u32 %v3469_v9, %v3304_v42  ;;  %v3468_v13 = vld [vmem:[#allocation7 + $0x44] sm:$0xf0]  ;;  %v3571_v59 = vld [vmem:[%s4608_s15] ss:$0 sm:$0xff]  ;;  %v3489_v42 = vld [vmem:[#allocation9 + $0x70] sm:$0xff] }
 0xb32   : > { %v2324_v44 = vpop.permute.xlu0 %2323 }
 0xb33   : > { %3239 = vmatmul.msk.bf16.vlgmr.msrb.gmra.mxu2 %vm1085_vm2, %v2193_v14  ;;  %2336 = vmatpush.bf16.msra.mxu1 %v2324_v44  ;;  %v2322_v19 = vpack.c.bf16 %v2321_v18, %v2306_v16  ;;  %v3467_v14 = vld [vmem:[#allocation7 + $0x44] sm:$0xf]  ;;  %v3295_v16 = vor.u32 %v3468_v13, %v3294_v12  ;;  %v3296_v18 = vld [vmem:[#allocation7 + $0x48] sm:$0xf0]  ;;  %v3481_v12 = vld [vmem:[#allocation9 + $0x30] sm:$0xff] }
 0xb34   : > { %2369 = vmatpush.bf16.msra.mxu2 %v3458_v25  ;;  %v3299_v44 = vor.u32 %v3467_v14, %v3296_v18  ;;  %v3288_v25 = vld [vmem:[#allocation7 + $0x38] sm:$0xf0]  ;;  %v3487_v13 = vld [vmem:[#allocation9 + $0x60] sm:$0xff]  ;;  %v3480_v14 = vld [vmem:[#allocation9 + $0x28] sm:$0xff] }
 0xb35   : > { %2557 = vmatpush.bf16.msra.mxu0 %v3307_v11  ;;  %v3488_v11 = vld [vmem:[#allocation9 + $0x68] sm:$0xff]  ;;  %v3479_v18 = vld [vmem:[#allocation9 + $0x20] sm:$0xff] }
 0xb36   : > { %3250 = vmatmul.msk.bf16.vlgmr.msra.gmra.mxu1 %vm1085_vm2, %v2322_v19  ;;  %v3286_v19 = vld [vmem:[#allocation7 + $0x30] sm:$0xf] }
 0xb38   : > { %v2053_v33 = vpop.f32.mrf.mxu2  ;;  %2370 = vmatpush.bf16.msra.mxu2 %v3457_v27  ;;  %v3278_v27 = vld [vmem:[#allocation7 + $0x20] sm:$0xf] }
 0xb39   : > { %2558 = vmatpush.bf16.msra.mxu0 %v3299_v44  ;;  %v3485_v44 = vld [vmem:[#allocation9 + $0x50] sm:$0xff] }
 0xb40   : > { %v2055_v20 = vpop.f32.mrf.mxu2 }
 0xb41   : > { %v2058_v23 = vpack.c.bf16 %v2055_v20, %v2053_v33  ;;  %v3466_v33 = vld [vmem:[#allocation7 + $0x34] sm:$0xf0]  ;;  %v3465_v20 = vld [vmem:[#allocation7 + $0x34] sm:$0xf] }
 0xb42   : > { %v3291_v26 = vor.u32 %v3465_v20, %v3288_v25  ;;  %v2455_v20 = vld [vmem:[%s4610_s17] sm:$0x3] }
 0xb43   : > { %3228 = vmatmul.msk.bf16.vlgmr.msra.gmra.mxu3 %vm1064_vm0, %v2058_v23  ;;  %v3287_v23 = vor.u32 %v3466_v33, %v3286_v19  ;;  %v3478_v19 = vld [vmem:[#allocation9 + $0x18] sm:$0xff]  ;;  %v3484_v33 = vld [vmem:[#allocation9 + $0x48] sm:$0xff]  ;;  %v2458_v25 = vperm.slane %v2455_v20, 1 }
 0xb44   : > { %2559 = vmatpush.bf16.msra.mxu0 %v3291_v26  ;;  %v3483_v26 = vld [vmem:[#allocation9 + $0x40] sm:$0xff] }
 0xbb3   : > { %v2338_v7 = vpop.f32.mrf.mxu1 }
 0xbb6   : > { %v2209_v32 = vpop.f32.mrf.mxu2 }
 0xbbb   : > { %v2340_v31 = vpop.f32.mrf.mxu1 }
 0xbbc   : > { %v2343_v6 = vpack.c.bf16 %v2340_v31, %v2338_v7  ;;  %v3463_v7 = vld [vmem:[#allocation7 + $0x24] sm:$0xf]  ;;  %v3280_v31 = vld [vmem:[#allocation7 + $0x28] sm:$0xf0] }
 0xbbe   : > { %v2211_v46 = vpop.f32.mrf.mxu2  ;;  %3259 = vmatmul.msk.bf16.vlgmr.msra.gmra.mxu2 %vm1064_vm0, %v2343_v6  ;;  %v3283_v6 = vor.u32 %v3463_v7, %v3280_v31  ;;  %v2457_v31 = vperm.slane %v2455_v20, 0 }
 0xbbf   : > { %v2214_v35 = vpack.c.bf16 %v2211_v46, %v2209_v32  ;;  %v3279_v32 = vor.u32 %v3464_v60, %v3278_v27  ;;  %v3270_v46 = vld [vmem:[#allocation7 + $0x10] sm:$0xf]  ;;  %v3476_v27 = vld [vmem:[#allocation9 + $0x8] sm:$0xff] }
 0xbc0   : > { %2560 = vmatpush.bf16.msra.mxu0 %v3283_v6  ;;  %v3475_v6 = vld [vmem:[#allocation9] sm:$0xff] }
 0xbc1   : > { %3248 = vmatmul.msk.bf16.vlgmr.msrb.gmra.mxu3 %vm1064_vm0, %v2214_v35  ;;  %v3462_v35 = vld [vmem:[#allocation7 + $0x14] sm:$0xf0] }
 0xbc6   : > { %v2087_v36 = vpop.f32.mrf.mxu3 }
 0xbc7   : > { %v2117_v24 = vadd.f32 %v4487_v53, %v2087_v36  ;;  %v3461_v36 = vld [vmem:[#allocation7 + $0x14] sm:$0xf] }
 0xbce   : > { %v2089_v38 = vpop.f32.mrf.mxu3 }
 0xbcf   : > { %v2119_v34 = vadd.f32 %v4489_v29, %v2089_v38 }
 0xc41   : > { %v2372_v39 = vpop.f32.mrf.mxu2 }
 0xc44   : > { %v2243_v41 = vpop.f32.mrf.mxu3 }
 0xc45   : > { %v2248_v10 = vadd.f32 %v2243_v41, %v2117_v24  ;;  %v3271_v24 = vor.u32 %v3462_v35, %v3270_v46  ;;  %v3262_v41 = vld [vmem:[#allocation7] sm:$0xf] }
 0xc47   : > { %v2377_v15 = vadd.f32 %v2372_v39, %v2248_v10  ;;  %v3272_v39 = vld [vmem:[#allocation7 + $0x18] sm:$0xf0]  ;;  %v3460_v10 = vld [vmem:[#allocation7 + $0x4] sm:$0xf0] }
 0xc49   : > { %v2382_v57 = vadd.f32 %v3569_v30, %v2377_v15  ;;  %v2374_v48 = vpop.f32.mrf.mxu2  ;;  %v3275_v15 = vor.u32 %v3461_v36, %v3272_v39 }
 0xc4b   : > { %v2384_v43 = vadd.f32 %v2382_v57, %v4414_v21  ;;  %v3459_v57 = vld [vmem:[#allocation7 + $0x4] sm:$0xf]  ;;  %2561 = vmatpush.bf16.msra.mxu0 %v3275_v15 }
 0xc4c   : > { %v2245_v45 = vpop.f32.mrf.mxu3 }
 0xc4d   : > { %v2249_v47 = vadd.f32 %v2245_v45, %v2119_v34  ;;  %2388 = vadd.xlane.f32.xlu2 %v2384_v43  ;;  %v3264_v34 = vld [vmem:[#allocation7 + $0x8] sm:$0xf0] }
 0xc4f   : > { %v2378_v17 = vadd.f32 %v2374_v48, %v2249_v47  ;;  %v3267_v47 = vor.u32 %v3459_v57, %v3264_v34 }
 0xc51   : > { %v2383_v49 = vadd.f32 %v3569_v30, %v2378_v17  ;;  %2562 = vmatpush.bf16.msra.mxu0 %v3267_v47 }
 0xc53   : > { %v2385_v53 = vadd.f32 %v2383_v49, %v4416_v22  ;;  %v3318_v22 = vld [vmem:[#allocation7 + $0x70] sm:$0xf] }
 0xc54   : > { %v3319_v37 = vor.u32 %v3474_v61, %v3318_v22 }
 0xc55   : > { %2390 = vadd.xlane.f32.xlu0 %v2385_v53 }
 0xc56   : > { %2541 = vmatpush.bf16.msra.mxu3 %v3319_v37 }
 0xc5a   : > { %2542 = vmatpush.bf16.msra.mxu3 %v3311_v4 }
 0xc5e   : > { %2543 = vmatpush.bf16.msra.mxu3 %v3303_v50  ;;  %v3490_v50 = vld [vmem:[#allocation9 + $0x78] sm:$0xff] }
 0xc5f   : > { %2753 = vmatpush.bf16.msrb.mxu2 %v3490_v50 }
 0xc62   : > { %2544 = vmatpush.bf16.msra.mxu3 %v3295_v16  ;;  %v3486_v16 = vld [vmem:[#allocation9 + $0x58] sm:$0xff] }
 0xc63   : > { %2754 = vmatpush.bf16.msrb.mxu2 %v3489_v42 }
 0xc66   : > { %2545 = vmatpush.bf16.msra.mxu3 %v3287_v23  ;;  %v3477_v23 = vld [vmem:[#allocation9 + $0x10] sm:$0xff] }
 0xc67   : > { %2755 = vmatpush.bf16.msrb.mxu2 %v3488_v11 }
 0xc6a   : > { %2546 = vmatpush.bf16.msra.mxu3 %v3279_v32 }
 0xc6b   : > { %2756 = vmatpush.bf16.msrb.mxu2 %v3487_v13 }
 0xc6e   : > { %2547 = vmatpush.bf16.msra.mxu3 %v3271_v24 }
 0xc6f   : > { %2757 = vmatpush.bf16.msrb.mxu2 %v3486_v16 }
 0xc73   : > { %2758 = vmatpush.bf16.msrb.mxu2 %v3485_v44 }
 0xc77   : > { %2759 = vmatpush.bf16.msrb.mxu2 %v3484_v33 }
 0xc7b   : > { %2760 = vmatpush.bf16.msrb.mxu2 %v3483_v26 }
 0xcc0   : > { %v2389_v51 = vpop.xlane.xlu2 %2388 }
 0xcc1   : > { %v2392_v52 = vmul.f32 %v2389_v51, %v4385_v28 }
 0xcc3   : > { %v4543_v54 = vsub.f32 %v2384_v43, %v2392_v52  ;;  %v3263_v43 = vor.u32 %v3460_v10, %v3262_v41 }
 0xcc5   : > { %v2396_v55 = vmul.f32 %v4543_v54, %v4543_v54  ;;  %2548 = vmatpush.bf16.msra.mxu3 %v3263_v43 }
 0xcc7   : > { %2398 = vadd.xlane.f32.xlu1 %v2396_v55 }
 0xcc8   : > { %v2391_v29 = vpop.xlane.xlu0 %2390 }
 0xcc9   : > { %v2393_v21 = vmul.f32 %v2391_v29, %v4385_v28 }
 0xccb   : > { %v4548_v56 = vsub.f32 %v2385_v53, %v2393_v21 }
 0xccd   : > { %v2397_v58 = vmul.f32 %v4548_v56, %v4548_v56 }
 0xccf   : > { %2400 = vadd.xlane.f32.xlu2 %v2397_v58 }
 0xd3a   : > { %v2399_v38 = vpop.xlane.xlu1 %2398 }
 0xd3b   : > { %v2402_v30 = vmul.f32 %v2399_v38, %v4385_v28 }
 0xd3d   : > { %v2404_v45 = vadd.f32 1e-05, %v2402_v30 }
 0xd3f   : > { %3645 = vrsqrt.f32 %v2404_v45  ;;  %vm2412_vm2 = vweird.f32 %v2404_v45 }
 0xd42   : > { %v2401_v48 = vpop.xlane.xlu2 %2400 }
 0xd43   : > { %v2403_v17 = vmul.f32 %v2401_v48, %v4385_v28 }
 0xd45   : > { %v3646_v49 = vpop.eup %3645  ;;  %v2405_v53 = vadd.f32 1e-05, %v2403_v17 }
 0xd46   : > { %v2407_v51 = vmul.f32 %v3646_v49, %v2404_v45  ;;  %vm2413_vm0 = vweird.f32 %v3646_v49 }
 0xd47   : > { %3647 = vrsqrt.f32 %v2405_v53  ;;  %vm2414_vm5 = vmor %vm2412_vm2, %vm2413_vm0  ;;  %vm2422_vm7 = vweird.f32 %v2405_v53 }
 0xd48   : > { %v2408_v52 = vmul.f32 %v3646_v49, %v2407_v51 }
 0xd4a   : > { %v2409_v55 = vmul.f32 0.5, %v2408_v52 }
 0xd4c   : > { %v2410_v29 = vsub.f32 1.5, %v2409_v55 }
 0xd4d   : > { %v3648_v21 = vpop.eup %3647 }
 0xd4e   : > { %v2411_v58 = vmul.f32 %v3646_v49, %v2410_v29  ;;  %v2417_v22 = vmul.f32 %v3648_v21, %v2405_v53  ;;  %vm2423_vm6 = vweird.f32 %v3648_v21 }
 0xd4f   : > { %vm2424_vm8 = vmor %vm2422_vm7, %vm2423_vm6 }
 0xd50   : > { %v2418_v61 = vmul.f32 %v3648_v21, %v2417_v22  ;;  %v2415_v62 = vsel %vm2414_vm5, %v3646_v49, %v2411_v58 }
 0xd51   : > { %v2426_v0 = vmul.f32 %v2415_v62, %v4543_v54 }
 0xd52   : > { %v2419_v37 = vmul.f32 0.5, %v2418_v61 }
 0xd53   : > { %v2431_v5 = vmul.f32 %v3570_v1, %v2426_v0 }
 0xd54   : > { %v2420_v63 = vsub.f32 1.5, %v2419_v37 }
 0xd55   : > { %v4562_v40 = vadd.f32 %v3571_v59, %v2431_v5 }
 0xd56   : > { %v2421_v2 = vmul.f32 %v3648_v21, %v2420_v63 }
 0xd58   : > { %v2425_v3 = vsel %vm2424_vm8, %v3648_v21, %v2421_v2 }
 0xd59   : > { %v2427_v4 = vmul.f32 %v2425_v3, %v4548_v56  ;;  %v3482_v56 = vld [vmem:[#allocation9 + $0x38] sm:$0xff] }
 0xd5a   : > { %2739 = vmatpush.bf16.msrb.mxu1 %v3482_v56 }
 0xd5b   : > { %v2432_v8 = vmul.f32 %v3570_v1, %v2427_v4 }
 0xd5d   : > { %v4564_v9 = vadd.f32 %v3571_v59, %v2432_v8 }
 0xd5e   : > { %2740 = vmatpush.bf16.msrb.mxu1 %v3481_v12  ;;  %v3572_v12 = vld [vmem:[%s4612_s19] ss:$0 sm:$0xff] }
 0xd5f   : > { %v2438_v54 = vpack.c.bf16 %v4564_v9, %v4562_v40 }
 0xd61   : > { %2549 = vmatmul.bf16.vlgmr.msra.gmra.mxu3 %v2438_v54  ;;  %2563 = vmatmul.bf16.vlgmr.msra.gmra.mxu0 %v2438_v54 }
 0xd62   : > { %2741 = vmatpush.bf16.msrb.mxu1 %v3480_v14 }
 0xd66   : > { %2742 = vmatpush.bf16.msrb.mxu1 %v3479_v18 }
 0xd6a   : > { %2743 = vmatpush.bf16.msrb.mxu1 %v3478_v19 }
 0xd6e   : > { %2744 = vmatpush.bf16.msrb.mxu1 %v3477_v23 }
 0xd72   : > { %2745 = vmatpush.bf16.msrb.mxu1 %v3476_v27 }
 0xd76   : > { %2746 = vmatpush.bf16.msrb.mxu1 %v3475_v6 }
 0xdde   : > { %v2564_v60 = vpop.f32.mrf.mxu0 }
 0xddf   : > { %v2565_v7 = vadd.f32 %v2564_v60, %v2458_v25 }
 0xde1   : > { %v2574_v32 = vmul.f32 0.044715, %v2565_v7  ;;  %v2570_v37 = vmul.f32 0.5, %v2565_v7 }
 0xde3   : > { %v2578_v46 = vmul.f32 %v2574_v32, %v2565_v7 }
 0xde4   : > { %v2550_v35 = vpop.f32.mrf.mxu3 }
 0xde5   : > { %v2582_v36 = vmul.f32 %v2578_v46, %v2565_v7  ;;  %v2551_v38 = vadd.f32 %v2550_v35, %v2457_v31 }
 0xde6   : > { %v2566_v24 = vpop.f32.mrf.mxu0 }
 0xde7   : > { %v2586_v39 = vadd.f32 %v2582_v36, %v2565_v7  ;;  %v2573_v41 = vmul.f32 0.044715, %v2551_v38  ;;  %v2567_v10 = vadd.f32 %v2566_v24, %v2458_v25  ;;  %v2569_v8 = vmul.f32 0.5, %v2551_v38 }
 0xde9   : > { %v2577_v30 = vmul.f32 %v2573_v41, %v2551_v38  ;;  %v2576_v15 = vmul.f32 0.044715, %v2567_v10  ;;  %v2590_v57 = vmul.f32 0.7978846, %v2586_v39  ;;  %v2572_v63 = vmul.f32 0.5, %v2567_v10 }
 0xdeb   : > { %v2581_v34 = vmul.f32 %v2577_v30, %v2551_v38  ;;  %v2580_v43 = vmul.f32 %v2576_v15, %v2567_v10  ;;  %3649 = vtanh.f32 %v2590_v57 }
 0xdec   : > { %v2552_v45 = vpop.f32.mrf.mxu3 }
 0xded   : > { %v2585_v47 = vadd.f32 %v2581_v34, %v2551_v38  ;;  %v2584_v48 = vmul.f32 %v2580_v43, %v2567_v10  ;;  %v2553_v17 = vadd.f32 %v2552_v45, %v2457_v31 }
 0xdef   : > { %v2588_v49 = vadd.f32 %v2584_v48, %v2567_v10  ;;  %v2575_v53 = vmul.f32 0.044715, %v2553_v17  ;;  %v2589_v51 = vmul.f32 0.7978846, %v2585_v47  ;;  %v2571_v54 = vmul.f32 0.5, %v2553_v17 }
 0xdf1   : > { %v2592_v52 = vmul.f32 0.7978846, %v2588_v49  ;;  %v2579_v55 = vmul.f32 %v2575_v53, %v2553_v17  ;;  %v3650_v21 = vpop.eup %3649 }
 0xdf2   : > { %v2598_v61 = vadd.f32 1.0, %v3650_v21 }
 0xdf3   : > { %v2583_v29 = vmul.f32 %v2579_v55, %v2553_v17  ;;  %3651 = vtanh.f32 %v2592_v52  ;;  %v3574_v52 = vld [vmem:[%s4614_s21] ss:$0 sm:$0xff] }
 0xdf4   : > { %3653 = vtanh.f32 %v2589_v51  ;;  %v2602_v2 = vmul.f32 %v2598_v61, %v2570_v37 }
 0xdf5   : > { %v2587_v58 = vadd.f32 %v2583_v29, %v2553_v17 }
 0xdf7   : > { %v2591_v22 = vmul.f32 0.7978846, %v2587_v58 }
 0xdf9   : > { %v3652_v62 = vpop.eup %3651  ;;  %3655 = vtanh.f32 %v2591_v22 }
 0xdfa   : > { %v2600_v0 = vadd.f32 1.0, %v3652_v62  ;;  %v3654_v1 = vpop.eup %3653 }
 0xdfb   : > { %v2597_v5 = vadd.f32 1.0, %v3654_v1 }
 0xdfc   : > { %v2604_v3 = vmul.f32 %v2600_v0, %v2572_v63 }
 0xdfd   : > { %v2601_v42 = vmul.f32 %v2597_v5, %v2569_v8 }
 0xdfe   : > { %v2606_v4 = vpack.c.bf16 %v2604_v3, %v2602_v2 }
 0xdff   : > { %v3656_v59 = vpop.eup %3655 }
 0xe00   : > { %2761 = vmatmul.bf16.vlgmr.msrb.gmra.mxu2 %v2606_v4  ;;  %v2599_v50 = vadd.f32 1.0, %v3656_v59 }
 0xe02   : > { %v2603_v56 = vmul.f32 %v2599_v50, %v2571_v54 }
 0xe04   : > { %v2605_v11 = vpack.c.bf16 %v2603_v56, %v2601_v42 }
 0xe06   : > { %2747 = vmatmul.bf16.vlgmr.msrb.gmra.mxu1 %v2605_v11 }
 0xe83   : > { %v2748_v13 = vpop.f32.mrf.mxu1  ;;  %v2762_v14 = vpop.f32.mrf.mxu2 }
 0xe84   : > { %v2749_v16 = vadd.f32 %v3572_v12, %v2748_v13 }
 0xe86   : > { %v2763_v18 = vadd.f32 %v2762_v14, %v2749_v16 }
 0xe88   : > { %v2767_v44 = vadd.f32 %v2763_v18, %v4562_v40 }
 0xe8a   : > { %2771 = vadd.xlane.f32.xlu2 %v2767_v44 }
 0xe8b   : > { %v2750_v19 = vpop.f32.mrf.mxu1  ;;  %v2764_v20 = vpop.f32.mrf.mxu2 }
 0xe8c   : > { %v2751_v33 = vadd.f32 %v3572_v12, %v2750_v19 }
 0xe8e   : > { %v2765_v23 = vadd.f32 %v2764_v20, %v2751_v33 }
 0xe90   : > { %v2768_v25 = vadd.f32 %v2765_v23, %v4564_v9 }
 0xe92   : > { %2773 = vadd.xlane.f32.xlu0 %v2768_v25 }
 0xefd   : > { %v2772_v26 = vpop.xlane.xlu2 %2771 }
 0xefe   : > { %v2775_v27 = vmul.f32 %v2772_v26, %v4385_v28 }
 0xf00   : > { %v2777_v60 = vsub.f32 %v2767_v44, %v2775_v27 }
 0xf02   : > { %v2779_v7 = vmul.f32 %v2777_v60, %v2777_v60 }
 0xf04   : > { %2781 = vadd.xlane.f32.xlu1 %v2779_v7 }
 0xf05   : > { %v2774_v32 = vpop.xlane.xlu0 %2773 }
 0xf06   : > { %v2776_v31 = vmul.f32 %v2774_v32, %v4385_v28 }
 0xf08   : > { %v2778_v6 = vsub.f32 %v2768_v25, %v2776_v31 }
 0xf0a   : > { %v2780_v46 = vmul.f32 %v2778_v6, %v2778_v6 }
 0xf0c   : > { %2783 = vadd.xlane.f32.xlu2 %v2780_v46 }
 0xf77   : > { %v2782_v40 = vpop.xlane.xlu1 %2781 }
 0xf78   : > { %v2785_v35 = vmul.f32 %v2782_v40, %v4385_v28 }
 0xf7a   : > { %v2787_v36 = vadd.f32 1e-05, %v2785_v35 }
 0xf7c   : > { %3657 = vrsqrt.f32 %v2787_v36  ;;  %vm2795_vm10 = vweird.f32 %v2787_v36 }
 0xf7f   : > { %v2784_v38 = vpop.xlane.xlu2 %2783 }
 0xf80   : > { %v2786_v9 = vmul.f32 %v2784_v38, %v4385_v28  ;;  %v3573_v28 = vld [vmem:[%s4613_s20] ss:$0 sm:$0xff] }
 0xf82   : > { %v3658_v24 = vpop.eup %3657  ;;  %v2788_v39 = vadd.f32 1e-05, %v2786_v9 }
 0xf83   : > { %v2790_v41 = vmul.f32 %v3658_v24, %v2787_v36  ;;  %vm2796_vm9 = vweird.f32 %v3658_v24 }
 0xf84   : > { %3659 = vrsqrt.f32 %v2788_v39  ;;  %vm2797_vm11 = vmor %vm2795_vm10, %vm2796_vm9  ;;  %vm2805_vm13 = vweird.f32 %v2788_v39 }
 0xf85   : > { %v2791_v10 = vmul.f32 %v3658_v24, %v2790_v41 }
 0xf87   : > { %v2792_v30 = vmul.f32 0.5, %v2791_v10 }
 0xf89   : > { %v2793_v15 = vsub.f32 1.5, %v2792_v30 }
 0xf8a   : > { %v3660_v57 = vpop.eup %3659 }
 0xf8b   : > { %v2794_v34 = vmul.f32 %v3658_v24, %v2793_v15  ;;  %v2800_v43 = vmul.f32 %v3660_v57, %v2788_v39  ;;  %vm2806_vm12 = vweird.f32 %v3660_v57 }
 0xf8c   : > { %vm2807_vm14 = vmor %vm2805_vm13, %vm2806_vm12 }
 0xf8d   : > { %v2801_v45 = vmul.f32 %v3660_v57, %v2800_v43  ;;  %v2798_v47 = vsel %vm2797_vm11, %v3658_v24, %v2794_v34 }
 0xf8e   : > { %v2809_v49 = vmul.f32 %v2798_v47, %v2777_v60 }
 0xf8f   : > { %v2802_v48 = vmul.f32 0.5, %v2801_v45 }
 0xf90   : > { %v2814_v55 = vmul.f32 %v3573_v28, %v2809_v49 }
 0xf91   : > { %v2803_v17 = vsub.f32 1.5, %v2802_v48 }
 0xf92   : > { %v2819_v58 = vadd.f32 %v3574_v52, %v2814_v55 }
 0xf93   : > { %v2804_v53 = vmul.f32 %v3660_v57, %v2803_v17 }
 0xf95   : > { %v2808_v51 = vsel %vm2807_vm14, %v3660_v57, %v2804_v53 }
 0xf96   : > { %v2810_v29 = vmul.f32 %v2808_v51, %v2778_v6 }
 0xf98   : > { %v2815_v21 = vmul.f32 %v3573_v28, %v2810_v29 }
 0xf9a   : > { %v2820_v22 = vadd.f32 %v3574_v52, %v2815_v21 }
 0xf9c   : > { %v3494_v61 = vpack.c.bf16 %v2820_v22, %v2819_v58 }
 0xf9e   : > { %3495 = vst [vmem:[%s827_s4] sm:$0xff] %v3494_v61  }
 0xf9f PF: > { %s4655_s25 = sld [smem:[#allocation13_spill]] }
 0xfa5   : > { %s36_s4 = sadd.s32 1, %s4655_s25  }
 0xfa6   : > { %p33_p7 = scmp.ge.s32.totalorder %s36_s4, 4  }
 0xfa8   :  { %35 = sbr.rel (!%p33_p7) target bundleno = 16 (0x10), region = 169 }
 0xfad   :  { %2846 = vsyncpa [#allocation3], 1 }
 0xfae   :  { %2848 = vsyncpa [#allocation3 + $0x1], 1 }
 0xfaf   :  { %2849 = vsyncpa [#allocation5], 1 }
 0xfb0   :  { %2850 = vsyncpa [#allocation8], 1 }

</bundles_post_ra>
